<compile_context>
chip_gen: v5e
topology: v5e:2x2
jax: 0.10.0
libtpu: 0.0.40
codegen_flags: <defaults>
</compile_context>

<pallas_src>
import math
import functools
import numpy as np

import jax
import jax.numpy as jnp
from jax.experimental import pallas as pl
from jax.experimental.pallas import tpu as pltpu


_LN_EPS = 1e-6


def _vmem_limit_bytes():
    """Generation-aware VMEM budget: ~3/4 of physical VMEM (64 MiB on v7x,
    128 MiB on v5e/v6e), capped to leave the compiler scheduling headroom."""
    try:
        phys = pltpu.get_tpu_info().vmem_capacity_bytes
    except Exception:
        phys = 64 * 1024 * 1024
    return int(min(phys * 3 // 4, 96 * 1024 * 1024))


_VMEM_LIMIT = _vmem_limit_bytes()


def _cp(*semantics):
    return pltpu.CompilerParams(dimension_semantics=semantics,
                                vmem_limit_bytes=_VMEM_LIMIT)


def _row_tile(rows, max_rows):
    """Row tile that divides `rows`, is a multiple of 8, and yields >= 2 grid
    steps whenever possible so both of v7x's TensorCores get work."""
    if rows % 8 != 0:
        return rows
    target = max(8, min(max_rows, rows // 2))
    tm = max(8, target - target % 8)
    while rows % tm != 0:
        tm -= 8
    return tm


def _ffn_row_cap(d_model, d_inner):
    """Cap the FFN row tile from the VMEM budget: double-buffered bf16 in/out
    tiles + the (tm, d_inner) f32 hidden activation + the f32 residual."""
    per_row = 2 * 2 * (2 * d_model) + 4 * (d_inner + 2 * d_model)
    cap = (_VMEM_LIMIT // 4) // max(per_row, 1)
    cap = max(8, min(1024, cap))
    return cap - cap % 8


def _const_spec(arr):
    """BlockSpec for a grid-invariant operand (whole array every grid step)."""
    n = arr.ndim
    return pl.BlockSpec(arr.shape, lambda b: (0,) * n)


# ----------------------------- in-kernel helpers -----------------------------

def _layernorm(y, g, b):
    mu = jnp.mean(y, axis=-1, keepdims=True)
    var = jnp.mean(jnp.square(y - mu), axis=-1, keepdims=True)
    return (y - mu) * jax.lax.rsqrt(var + _LN_EPS) * g + b


def _softmax_rows(s):
    s = s - jnp.max(s, axis=-1, keepdims=True)
    p = jnp.exp(s)
    return p * pl.reciprocal(jnp.sum(p, axis=-1, keepdims=True), approx=True)


# ----------------------------- Pallas kernels -----------------------------

def _embed_ln_kernel(e_ref, p_ref, g_ref, b_ref, o_ref):
    x = e_ref[0] + p_ref[...]                      # (L, D) f32: emb + pos enc
    o_ref[0] = _layernorm(x, g_ref[...], b_ref[...]).astype(o_ref.dtype)


def embed_ln(emb_rows, pos_rows, gamma, beta):
    """Fused (embedding + positional encoding) add + LayerNorm -> bf16."""
    B, L, D = emb_rows.shape
    return pl.pallas_call(
        _embed_ln_kernel,
        grid=(B,),
        in_specs=[pl.BlockSpec((1, L, D), lambda b: (b, 0, 0)),
                  _const_spec(pos_rows),
                  _const_spec(gamma),
                  _const_spec(beta)],
        out_specs=pl.BlockSpec((1, L, D), lambda b: (b, 0, 0)),
        out_shape=jax.ShapeDtypeStruct((B, L, D), jnp.bfloat16),
        compiler_params=_cp("parallel"),
    )(emb_rows, pos_rows, gamma, beta)


def _self_attn_ln_kernel(x_ref, bias_ref, wq_ref, wk_ref, wv_ref, wo_ref,
                         g_ref, b_ref, o_ref, *, heads):
    """Per batch element: fused QKV proj + per-head attention + W_o + residual + LN."""
    x_bf = x_ref[0]                                # (L, D) bf16
    x_f32 = x_bf.astype(jnp.float32)
    bias = bias_ref[0]                             # (1, L) f32 additive pad mask
    acc = jnp.zeros(x_f32.shape, jnp.float32)
    for h in range(heads):                         # static unroll; head-major weights
        qh = jnp.dot(x_bf, wq_ref[h], preferred_element_type=jnp.float32)   # (L, dk)
        kh = jnp.dot(x_bf, wk_ref[h], preferred_element_type=jnp.float32)   # (L, dk)
        vh = jnp.dot(x_bf, wv_ref[h], preferred_element_type=jnp.float32)   # (L, dv)
        s = jnp.einsum("qd,kd->qk", qh.astype(jnp.bfloat16), kh.astype(jnp.bfloat16),
                       preferred_element_type=jnp.float32) + bias
        p = _softmax_rows(s)
        oh = jnp.dot(p.astype(jnp.bfloat16), vh.astype(jnp.bfloat16),
                     preferred_element_type=jnp.float32)                    # (L, dv)
        acc = acc + jnp.dot(oh.astype(jnp.bfloat16), wo_ref[h],
                            preferred_element_type=jnp.float32)             # (L, D)
    y = _layernorm(acc + x_f32, g_ref[...], b_ref[...])
    o_ref[0] = y.astype(o_ref.dtype)


def self_attention_block(p, x, bias, heads):
    B, L, D = x.shape
    gamma = p["ln_g"].reshape(1, D)
    beta = p["ln_b"].reshape(1, D)
    kernel = functools.partial(_self_attn_ln_kernel, heads=heads)
    return pl.pallas_call(
        kernel,
        grid=(B,),
        in_specs=[pl.BlockSpec((1, L, D), lambda b: (b, 0, 0)),
                  pl.BlockSpec((1, 1, L), lambda b: (b, 0, 0)),
                  _const_spec(p["wq"]), _const_spec(p["wk"]),
                  _const_spec(p["wv"]), _const_spec(p["wo"]),
                  _const_spec(gamma), _const_spec(beta)],
        out_specs=pl.BlockSpec((1, L, D), lambda b: (b, 0, 0)),
        out_shape=jax.ShapeDtypeStruct((B, L, D), jnp.bfloat16),
        compiler_params=_cp("parallel"),
    )(x, bias, p["wq"], p["wk"], p["wv"], p["wo"], gamma, beta)


def _ffn_ln_kernel(x_ref, w1_ref, b1_ref, w2_ref, b2_ref, g_ref, be_ref, o_ref):
    x_bf = x_ref[...]                              # (tm, D) bf16
    x_f32 = x_bf.astype(jnp.float32)
    h = jnp.dot(x_bf, w1_ref[...], preferred_element_type=jnp.float32) + b1_ref[...]
    h = jnp.maximum(h, 0.0)                        # ReLU
    y = jnp.dot(h.astype(jnp.bfloat16), w2_ref[...],
                preferred_element_type=jnp.float32) + b2_ref[...] + x_f32
    o_ref[...] = _layernorm(y, g_ref[...], be_ref[...]).astype(o_ref.dtype)


def ffn_block(p, x):
    """Fused position-wise FFN + residual + LayerNorm, row-tiled."""
    B, L, D = x.shape
    d_inner = p["w1"].shape[1]
    x2 = x.reshape(-1, D)
    M = x2.shape[0]
    tm = _row_tile(M, _ffn_row_cap(D, d_inner))
    b1 = p["b1"].reshape(1, d_inner)
    b2 = p["b2"].reshape(1, D)
    gamma = p["ln_g"].reshape(1, D)
    beta = p["ln_b"].reshape(1, D)
    out = pl.pallas_call(
        _ffn_ln_kernel,
        grid=(M // tm,),
        in_specs=[pl.BlockSpec((tm, D), lambda i: (i, 0)),
                  _const_spec(p["w1"]), _const_spec(b1),
                  _const_spec(p["w2"]), _const_spec(b2),
                  _const_spec(gamma), _const_spec(beta)],
        out_specs=pl.BlockSpec((tm, D), lambda i: (i, 0)),
        out_shape=jax.ShapeDtypeStruct((M, D), jnp.bfloat16),
        compiler_params=_cp("parallel"),
    )(x2, p["w1"], b1, p["w2"], b2, gamma, beta)
    return out.reshape(B, L, D)


def _decoder_cls_kernel(cls_ref, enc_ref, bias_ref, g0_ref, b0_ref,
                        svw_ref, sow_ref, sg_ref, sb_ref,
                        cqw_ref, ckw_ref, cvw_ref, cow_ref, cg_ref, cb_ref,
                        f1w_ref, f1b_ref, f2w_ref, f2b_ref, fg_ref, fb_ref,
                        wp_ref, o_ref, *, n_layers, heads):
    """Whole decoder stack for the single CLS token + bias-free classifier head."""
    x = _layernorm(cls_ref[...], g0_ref[...], b0_ref[...])     # (1, D) f32
    enc = enc_ref[0]                                           # (L, D) bf16
    bias = bias_ref[0]                                         # (1, L) f32
    for l in range(n_layers):                                  # static unroll over layers
        # -- masked self-attention over the single CLS token: the softmax over
        #    one key is identically 1, so the sublayer is exactly (x @ W_v) @ W_o.
        xb = x.astype(jnp.bfloat16)
        v = jnp.dot(xb, svw_ref[l], preferred_element_type=jnp.float32)        # (1, H*dv)
        a = jnp.dot(v.astype(jnp.bfloat16), sow_ref[l],
                    preferred_element_type=jnp.float32)                        # (1, D)
        x = _layernorm(a + x, sg_ref[l], sb_ref[l])
        # -- cross-attention over the encoder output (head-major weights)
        xb = x.astype(jnp.bfloat16)
        acc = jnp.zeros(x.shape, jnp.float32)
        for h in range(heads):
            qh = jnp.dot(xb, cqw_ref[l, h], preferred_element_type=jnp.float32)   # (1, dk)
            kh = jnp.dot(enc, ckw_ref[l, h], preferred_element_type=jnp.float32)  # (L, dk)
            vh = jnp.dot(enc, cvw_ref[l, h], preferred_element_type=jnp.float32)  # (L, dv)
            s = jnp.einsum("qd,kd->qk", qh.astype(jnp.bfloat16), kh.astype(jnp.bfloat16),
                           preferred_element_type=jnp.float32) + bias              # (1, L)
            p = _softmax_rows(s)
            oh = jnp.dot(p.astype(jnp.bfloat16), vh.astype(jnp.bfloat16),
                         preferred_element_type=jnp.float32)                       # (1, dv)
            acc = acc + jnp.dot(oh.astype(jnp.bfloat16), cow_ref[l, h],
                                preferred_element_type=jnp.float32)                # (1, D)
        x = _layernorm(acc + x, cg_ref[l], cb_ref[l])
        # -- position-wise FFN
        xb = x.astype(jnp.bfloat16)
        hid = jnp.maximum(jnp.dot(xb, f1w_ref[l], preferred_element_type=jnp.float32)
                          + f1b_ref[l], 0.0)
        y = jnp.dot(hid.astype(jnp.bfloat16), f2w_ref[l],
                    preferred_element_type=jnp.float32) + f2b_ref[l] + x
        x = _layernorm(y, fg_ref[l], fb_ref[l])
    # -- bias-free classifier head (fused: no separate launch for a (B, C) matmul)
    o_ref[0] = jnp.dot(x.astype(jnp.bfloat16), wp_ref[...],
                       preferred_element_type=jnp.float32)


def decoder_classify(dp, w_proj, enc_out, src_bias, cfg):
    """Single fused kernel: decoder prologue LN, all decoder layers, class head."""
    B, L, D = enc_out.shape
    C = w_proj.shape[1]
    # make_target_seq: one CLS token per batch element -> one shared (1, D) row.
    # The (pad & subsequent) target mask has no effect with a single token.
    cls_row = (dp["emb"][cfg["cls_label_id"]] + dp["pos_table"][0]).reshape(1, D)
    g0 = dp["ln_g"].reshape(1, D)
    b0 = dp["ln_b"].reshape(1, D)
    operands = (cls_row, enc_out, src_bias, g0, b0,
                dp["self_wv"], dp["self_wo"], dp["self_g"], dp["self_b"],
                dp["cross_wq"], dp["cross_wk"], dp["cross_wv"], dp["cross_wo"],
                dp["cross_g"], dp["cross_b"],
                dp["ffn_w1"], dp["ffn_b1"], dp["ffn_w2"], dp["ffn_b2"],
                dp["ffn_g"], dp["ffn_b"],
                w_proj)
    in_specs = [_const_spec(cls_row),
                pl.BlockSpec((1, L, D), lambda b: (b, 0, 0)),
                pl.BlockSpec((1, 1, L), lambda b: (b, 0, 0))]
    in_specs += [_const_spec(a) for a in operands[3:]]
    kernel = functools.partial(_decoder_cls_kernel,
                               n_layers=cfg["layers"], heads=cfg["heads"])
    out = pl.pallas_call(
        kernel,
        grid=(B,),
        in_specs=in_specs,
        out_specs=pl.BlockSpec((1, 1, C), lambda b: (b, 0, 0)),
        out_shape=jax.ShapeDtypeStruct((B, 1, C), jnp.float32),
        compiler_params=_cp("parallel"),
    )(*operands)
    return out.reshape(B, C)


# ----------------------------- model (JAX glue) -----------------------------

def encoder_forward(ep, src_seq, src_bias, cfg):
    H = cfg["heads"]
    B, L = src_seq.shape
    D = cfg["dim_model"]
    emb_rows = ep["emb"][src_seq]                          # (B, L, D) f32 (XLA gather)
    # TODO(synk): dropout is identity (inference semantics)
    x = embed_ln(emb_rows, ep["pos_table"][:L],
                 ep["ln_g"].reshape(1, D), ep["ln_b"].reshape(1, D))
    for lp in ep["layers"]:
        x = self_attention_block(lp["attn"], x, src_bias, H)
        x = ffn_block(lp["ffn"], x)
    return x                                               # bf16 (B, L, D)


def classification_transformer_forward(params, source_seq, cfg):
    # pad mask in additive-bias form: 0 where keep, -1e9 where pad (B, 1, L)
    keep = (source_seq != cfg["pad_id"]).astype(jnp.float32)[:, None, :]
    src_bias = (keep - 1.0) * 1e9
    enc_out = encoder_forward(params["encoder"], source_seq, src_bias, cfg)
    return decoder_classify(params["decoder"], params["w_proj"],
                            enc_out, src_bias, cfg)        # (B, num_classes)


# ----------------------------- parameter init -----------------------------

def xavier(key, shape):
    a = math.sqrt(6.0 / (shape[0] + shape[1]))
    return jax.random.uniform(key, shape, jnp.float32, -a, a)


def sinusoid_table(n_pos, d):
    pos = np.arange(n_pos)[:, None].astype(np.float64)
    i = np.arange(d)[None, :]
    angle = pos / np.power(10000.0, 2 * (i // 2) / d)
    tbl = np.zeros((n_pos, d), np.float32)
    tbl[:, 0::2] = np.sin(angle[:, 0::2])
    tbl[:, 1::2] = np.cos(angle[:, 1::2])
    return jnp.asarray(tbl)


def init_mha_head_major(key, d_model, heads, dk, dv):
    ks = jax.random.split(key, 4)
    scale = 1.0 / math.sqrt(dk)                            # fold 1/sqrt(dk) into W_q
    wq = xavier(ks[0], (d_model, heads * dk)) * scale
    wk = xavier(ks[1], (d_model, heads * dk))
    wv = xavier(ks[2], (d_model, heads * dv))
    wo = xavier(ks[3], (heads * dv, d_model))
    hm = lambda w, dh: jnp.transpose(w.reshape(d_model, heads, dh), (1, 0, 2))
    return dict(
        wq=hm(wq, dk).astype(jnp.bfloat16),                # (H, D, dk)
        wk=hm(wk, dk).astype(jnp.bfloat16),                # (H, D, dk)
        wv=hm(wv, dv).astype(jnp.bfloat16),                # (H, D, dv)
        wo=wo.reshape(heads, dv, d_model).astype(jnp.bfloat16),   # (H, dv, D)
        ln_g=jnp.ones((d_model,), jnp.float32),
        ln_b=jnp.zeros((d_model,), jnp.float32),
    )


def init_ffn(key, d_model, d_inner):
    k1, k2 = jax.random.split(key)
    return dict(
        w1=xavier(k1, (d_model, d_inner)).astype(jnp.bfloat16),
        b1=jnp.zeros((d_inner,), jnp.float32),
        w2=xavier(k2, (d_inner, d_model)).astype(jnp.bfloat16),
        b2=jnp.zeros((d_model,), jnp.float32),
        ln_g=jnp.ones((d_model,), jnp.float32),
        ln_b=jnp.zeros((d_model,), jnp.float32),
    )


def init_encoder(key, cfg):
    D, H = cfg["dim_model"], cfg["heads"]
    dk, dv, di = cfg["dim_key"], cfg["dim_value"], cfg["dim_inner"]
    keys = jax.random.split(key, 1 + cfg["layers"])
    layers = []
    for lk in keys[1:]:
        k1, k2 = jax.random.split(lk)
        layers.append(dict(attn=init_mha_head_major(k1, D, H, dk, dv),
                           ffn=init_ffn(k2, D, di)))
    return dict(emb=xavier(keys[0], (cfg["vocab_size"], cfg["emb_dim"])),
                pos_table=sinusoid_table(cfg["num_pos"], cfg["emb_dim"]),
                ln_g=jnp.ones((D,), jnp.float32),
                ln_b=jnp.zeros((D,), jnp.float32),
                layers=layers)


def init_decoder(key, cfg):
    D, H = cfg["dim_model"], cfg["heads"]
    dk, dv, di = cfg["dim_key"], cfg["dim_value"], cfg["dim_inner"]
    keys = jax.random.split(key, 1 + cfg["layers"])
    s_wv, s_wo, s_g, s_b = [], [], [], []
    c = dict(wq=[], wk=[], wv=[], wo=[], g=[], b=[])
    f = dict(w1=[], b1=[], w2=[], b2=[], g=[], b=[])
    for lk in keys[1:]:
        sk = jax.random.split(lk, 4)
        # decoder self-attention: with a single CLS token only W_v / W_o reach
        # the output (softmax over one key == 1), so W_q / W_k are not needed.
        s_wv.append(xavier(sk[0], (D, H * dv)).astype(jnp.bfloat16))
        s_wo.append(xavier(sk[1], (H * dv, D)).astype(jnp.bfloat16))
        s_g.append(jnp.ones((1, D), jnp.float32))
        s_b.append(jnp.zeros((1, D), jnp.float32))
        ca = init_mha_head_major(sk[2], D, H, dk, dv)
        c["wq"].append(ca["wq"]); c["wk"].append(ca["wk"])
        c["wv"].append(ca["wv"]); c["wo"].append(ca["wo"])
        c["g"].append(ca["ln_g"].reshape(1, D)); c["b"].append(ca["ln_b"].reshape(1, D))
        fp = init_ffn(sk[3], D, di)
        f["w1"].append(fp["w1"]); f["b1"].append(fp["b1"].reshape(1, di))
        f["w2"].append(fp["w2"]); f["b2"].append(fp["b2"].reshape(1, D))
        f["g"].append(fp["ln_g"].reshape(1, D)); f["b"].append(fp["ln_b"].reshape(1, D))
    st = lambda xs: jnp.stack(xs, axis=0)                  # stacked per-layer weights
    return dict(
        emb=xavier(keys[0], (cfg["vocab_size"], cfg["emb_dim"])),
        pos_table=sinusoid_table(cfg["num_pos"], cfg["emb_dim"]),
        ln_g=jnp.ones((D,), jnp.float32), ln_b=jnp.zeros((D,), jnp.float32),
        self_wv=st(s_wv), self_wo=st(s_wo), self_g=st(s_g), self_b=st(s_b),
        cross_wq=st(c["wq"]), cross_wk=st(c["wk"]),
        cross_wv=st(c["wv"]), cross_wo=st(c["wo"]),
        cross_g=st(c["g"]), cross_b=st(c["b"]),
        ffn_w1=st(f["w1"]), ffn_b1=st(f["b1"]),
        ffn_w2=st(f["w2"]), ffn_b2=st(f["b2"]),
        ffn_g=st(f["g"]), ffn_b=st(f["b"]),
    )


def init_params(key, cfg):
    k_enc, k_dec, k_proj = jax.random.split(key, 3)
    return dict(
        encoder=init_encoder(k_enc, cfg),
        decoder=init_decoder(k_dec, cfg),
        w_proj=xavier(k_proj, (cfg["dim_model"], cfg["num_classes"])).astype(jnp.bfloat16),
    )


# ----------------------------- main -----------------------------

if __name__ == "__main__":
    cfg = dict(vocab_size=50, pad_id=0, cls_label_id=2, num_classes=5,
               emb_dim=32, dim_model=32, dim_inner=64, layers=2, heads=4,
               dim_key=8, dim_value=8, num_pos=50)

    key = jax.random.PRNGKey(0)
    pkey, dkey = jax.random.split(key)
    params = init_params(pkey, cfg)

    B, L = 2, 8
    source_seq = jax.random.randint(dkey, (B, L), 1, cfg["vocab_size"], jnp.int32)
    source_seq = source_seq.at[1, -2:].set(cfg["pad_id"])   # exercise the pad mask

    fwd = jax.jit(functools.partial(classification_transformer_forward, cfg=cfg))
    logits = jax.block_until_ready(fwd(params, source_seq))

    assert logits.shape == (B, cfg["num_classes"])
    assert bool(jnp.all(jnp.isfinite(logits)))
    print("KERNEL_OK")
</pallas_src>

<mosaic_0001>
module attributes {stable_mosaic.version = 11 : i64} {
  func.func @_embed_ln_kernel(%arg0: i32, %arg1: memref<1x8x32xf32, #tpu.memory_space<vmem>>, %arg2: memref<8x32xf32, #tpu.memory_space<vmem>>, %arg3: memref<1x32xf32, #tpu.memory_space<vmem>>, %arg4: memref<1x32xf32, #tpu.memory_space<vmem>>, %arg5: memref<1x8x32xbf16, #tpu.memory_space<vmem>>) attributes {dimension_semantics = [#tpu.dimension_semantics<parallel>], iteration_bounds = array<i64: 2>, scalar_prefetch = 0 : i64, scratch_operands = 0 : i64, tpu.core_type = #tpu.core_type<tc>, window_params = [{transform_indices = @transform_0, window_bounds = array<i64: 1, 8, 32>}, {pipeline_mode = #tpu.pipeline_mode<synchronous>, transform_indices = @transform_1, window_bounds = array<i64: 8, 32>}, {pipeline_mode = #tpu.pipeline_mode<synchronous>, transform_indices = @transform_2, window_bounds = array<i64: 1, 32>}, {pipeline_mode = #tpu.pipeline_mode<synchronous>, transform_indices = @transform_3, window_bounds = array<i64: 1, 32>}, {transform_indices = @transform_4, window_bounds = array<i64: 1, 8, 32>}]} {
    %c0 = arith.constant 0 : index
    %c0_0 = arith.constant 0 : index
    %c0_1 = arith.constant 0 : index
    %0 = vector.load %arg1[%c0, %c0_0, %c0_1] : memref<1x8x32xf32, #tpu.memory_space<vmem>>, vector<1x8x32xf32>
    %1 = vector.shape_cast %0 : vector<1x8x32xf32> to vector<8x32xf32>
    %c0_2 = arith.constant 0 : index
    %c0_3 = arith.constant 0 : index
    %2 = vector.load %arg2[%c0_2, %c0_3] : memref<8x32xf32, #tpu.memory_space<vmem>>, vector<8x32xf32>
    %3 = arith.addf %1, %2 : vector<8x32xf32>
    %c0_4 = arith.constant 0 : index
    %c0_5 = arith.constant 0 : index
    %4 = vector.load %arg3[%c0_4, %c0_5] : memref<1x32xf32, #tpu.memory_space<vmem>>, vector<1x32xf32>
    %c0_6 = arith.constant 0 : index
    %c0_7 = arith.constant 0 : index
    %5 = vector.load %arg4[%c0_6, %c0_7] : memref<1x32xf32, #tpu.memory_space<vmem>>, vector<1x32xf32>
    %cst = arith.constant dense<0.000000e+00> : vector<8xf32>
    %6 = vector.multi_reduction <add>, %3, %cst [1] : vector<8x32xf32> to vector<8xf32>
    %7 = vector.shape_cast %6 : vector<8xf32> to vector<8x1xf32>
    %cst_8 = arith.constant 3.200000e+01 : f32
    %8 = vector.broadcast %cst_8 : f32 to vector<8x1xf32>
    %9 = arith.divf %7, %8 : vector<8x1xf32>
    %10 = vector.broadcast %9 : vector<8x1xf32> to vector<8x32xf32>
    %11 = arith.subf %3, %10 : vector<8x32xf32>
    %12 = arith.mulf %11, %11 : vector<8x32xf32>
    %cst_9 = arith.constant dense<0.000000e+00> : vector<8xf32>
    %13 = vector.multi_reduction <add>, %12, %cst_9 [1] : vector<8x32xf32> to vector<8xf32>
    %14 = vector.shape_cast %13 : vector<8xf32> to vector<8x1xf32>
    %cst_10 = arith.constant 3.200000e+01 : f32
    %15 = vector.broadcast %cst_10 : f32 to vector<8x1xf32>
    %16 = arith.divf %14, %15 : vector<8x1xf32>
    %17 = vector.broadcast %9 : vector<8x1xf32> to vector<8x32xf32>
    %18 = arith.subf %3, %17 : vector<8x32xf32>
    %cst_11 = arith.constant 9.99999997E-7 : f32
    %19 = vector.broadcast %cst_11 : f32 to vector<8x1xf32>
    %20 = arith.addf %16, %19 : vector<8x1xf32>
    %21 = math.rsqrt %20 : vector<8x1xf32>
    %22 = vector.broadcast %21 : vector<8x1xf32> to vector<8x32xf32>
    %23 = arith.mulf %18, %22 : vector<8x32xf32>
    %24 = vector.broadcast %4 : vector<1x32xf32> to vector<8x32xf32>
    %25 = arith.mulf %23, %24 : vector<8x32xf32>
    %26 = vector.broadcast %5 : vector<1x32xf32> to vector<8x32xf32>
    %27 = arith.addf %25, %26 : vector<8x32xf32>
    %28 = arith.truncf %27 : vector<8x32xf32> to vector<8x32xbf16>
    %c0_12 = arith.constant 0 : index
    %c0_13 = arith.constant 0 : index
    %c0_14 = arith.constant 0 : index
    %29 = vector.load %arg5[%c0_12, %c0_13, %c0_14] : memref<1x8x32xbf16, #tpu.memory_space<vmem>>, vector<1x8x32xbf16>
    %30 = vector.shape_cast %29 : vector<1x8x32xbf16> to vector<8x32xbf16>
    %31 = vector.shape_cast %28 : vector<8x32xbf16> to vector<1x8x32xbf16>
    tpu.vector_store %arg5[%c0_12, %c0_13, %c0_14], %31 {strides = array<i32>} : memref<1x8x32xbf16, #tpu.memory_space<vmem>>, vector<1x8x32xbf16>,
    return
  }
  func.func @transform_0(%arg0: i32) -> (i32, i32, i32) {
    %c0_i32 = arith.constant 0 : i32
    %c0_i32_0 = arith.constant 0 : i32
    %c0_i32_1 = arith.constant 0 : i32
    return %arg0, %c0_i32, %c0_i32_0 : i32, i32, i32
  }
  func.func @transform_1(%arg0: i32) -> (i32, i32) {
    %c0_i32 = arith.constant 0 : i32
    %c0_i32_0 = arith.constant 0 : i32
    %c0_i32_1 = arith.constant 0 : i32
    return %c0_i32, %c0_i32_0 : i32, i32
  }
  func.func @transform_2(%arg0: i32) -> (i32, i32) {
    %c0_i32 = arith.constant 0 : i32
    %c0_i32_0 = arith.constant 0 : i32
    %c0_i32_1 = arith.constant 0 : i32
    return %c0_i32, %c0_i32_0 : i32, i32
  }
  func.func @transform_3(%arg0: i32) -> (i32, i32) {
    %c0_i32 = arith.constant 0 : i32
    %c0_i32_0 = arith.constant 0 : i32
    %c0_i32_1 = arith.constant 0 : i32
    return %c0_i32, %c0_i32_0 : i32, i32
  }
  func.func @transform_4(%arg0: i32) -> (i32, i32, i32) {
    %c0_i32 = arith.constant 0 : i32
    %c0_i32_0 = arith.constant 0 : i32
    %c0_i32_1 = arith.constant 0 : i32
    return %arg0, %c0_i32, %c0_i32_0 : i32, i32, i32
  }
}

module attributes {stable_mosaic.version = 11 : i64} {
  func.func @_ffn_ln_kernel(%arg0: i32, %arg1: memref<8x32xbf16, #tpu.memory_space<vmem>>, %arg2: memref<32x64xbf16, #tpu.memory_space<vmem>>, %arg3: memref<1x64xf32, #tpu.memory_space<vmem>>, %arg4: memref<64x32xbf16, #tpu.memory_space<vmem>>, %arg5: memref<1x32xf32, #tpu.memory_space<vmem>>, %arg6: memref<1x32xf32, #tpu.memory_space<vmem>>, %arg7: memref<1x32xf32, #tpu.memory_space<vmem>>, %arg8: memref<8x32xbf16, #tpu.memory_space<vmem>>) attributes {dimension_semantics = [#tpu.dimension_semantics<parallel>], iteration_bounds = array<i64: 2>, scalar_prefetch = 0 : i64, scratch_operands = 0 : i64, tpu.core_type = #tpu.core_type<tc>, window_params = [{transform_indices = @transform_0, window_bounds = array<i64: 8, 32>}, {pipeline_mode = #tpu.pipeline_mode<synchronous>, transform_indices = @transform_1, window_bounds = array<i64: 32, 64>}, {pipeline_mode = #tpu.pipeline_mode<synchronous>, transform_indices = @transform_2, window_bounds = array<i64: 1, 64>}, {pipeline_mode = #tpu.pipeline_mode<synchronous>, transform_indices = @transform_3, window_bounds = array<i64: 64, 32>}, {pipeline_mode = #tpu.pipeline_mode<synchronous>, transform_indices = @transform_4, window_bounds = array<i64: 1, 32>}, {pipeline_mode = #tpu.pipeline_mode<synchronous>, transform_indices = @transform_5, window_bounds = array<i64: 1, 32>}, {pipeline_mode = #tpu.pipeline_mode<synchronous>, transform_indices = @transform_6, window_bounds = array<i64: 1, 32>}, {transform_indices = @transform_7, window_bounds = array<i64: 8, 32>}]} {
    %c0 = arith.constant 0 : index
    %c0_0 = arith.constant 0 : index
    %0 = vector.load %arg1[%c0, %c0_0] : memref<8x32xbf16, #tpu.memory_space<vmem>>, vector<8x32xbf16>
    %1 = arith.extf %0 : vector<8x32xbf16> to vector<8x32xf32>
    %c0_1 = arith.constant 0 : index
    %c0_2 = arith.constant 0 : index
    %2 = vector.load %arg2[%c0_1, %c0_2] : memref<32x64xbf16, #tpu.memory_space<vmem>>, vector<32x64xbf16>
    %cst = arith.constant dense<0.000000e+00> : vector<8x64xf32>
    %3 = tpu.matmul %0, %2, %cst {dimension_numbers = #tpu.dot_dimension_numbers<[1], [0], [0], [1], [0, 0, 1, 1], [], []>} : vector<8x32xbf16>, vector<32x64xbf16>, vector<8x64xf32> -> vector<8x64xf32>
    %c0_3 = arith.constant 0 : index
    %c0_4 = arith.constant 0 : index
    %4 = vector.load %arg3[%c0_3, %c0_4] : memref<1x64xf32, #tpu.memory_space<vmem>>, vector<1x64xf32>
    %5 = vector.broadcast %4 : vector<1x64xf32> to vector<8x64xf32>
    %6 = arith.addf %3, %5 : vector<8x64xf32>
    %cst_5 = arith.constant 0.000000e+00 : f32
    %7 = vector.broadcast %cst_5 : f32 to vector<8x64xf32>
    %8 = arith.maximumf %6, %7 : vector<8x64xf32>
    %9 = arith.truncf %8 : vector<8x64xf32> to vector<8x64xbf16>
    %c0_6 = arith.constant 0 : index
    %c0_7 = arith.constant 0 : index
    %10 = vector.load %arg4[%c0_6, %c0_7] : memref<64x32xbf16, #tpu.memory_space<vmem>>, vector<64x32xbf16>
    %cst_8 = arith.constant dense<0.000000e+00> : vector<8x32xf32>
    %11 = tpu.matmul %9, %10, %cst_8 {dimension_numbers = #tpu.dot_dimension_numbers<[1], [0], [0], [1], [0, 0, 1, 1], [], []>} : vector<8x64xbf16>, vector<64x32xbf16>, vector<8x32xf32> -> vector<8x32xf32>
    %c0_9 = arith.constant 0 : index
    %c0_10 = arith.constant 0 : index
    %12 = vector.load %arg5[%c0_9, %c0_10] : memref<1x32xf32, #tpu.memory_space<vmem>>, vector<1x32xf32>
    %13 = vector.broadcast %12 : vector<1x32xf32> to vector<8x32xf32>
    %14 = arith.addf %11, %13 : vector<8x32xf32>
    %15 = arith.addf %14, %1 : vector<8x32xf32>
    %c0_11 = arith.constant 0 : index
    %c0_12 = arith.constant 0 : index
    %16 = vector.load %arg6[%c0_11, %c0_12] : memref<1x32xf32, #tpu.memory_space<vmem>>, vector<1x32xf32>
    %c0_13 = arith.constant 0 : index
    %c0_14 = arith.constant 0 : index
    %17 = vector.load %arg7[%c0_13, %c0_14] : memref<1x32xf32, #tpu.memory_space<vmem>>, vector<1x32xf32>
    %cst_15 = arith.constant dense<0.000000e+00> : vector<8xf32>
    %18 = vector.multi_reduction <add>, %15, %cst_15 [1] : vector<8x32xf32> to vector<8xf32>
    %19 = vector.shape_cast %18 : vector<8xf32> to vector<8x1xf32>
    %cst_16 = arith.constant 3.200000e+01 : f32
    %20 = vector.broadcast %cst_16 : f32 to vector<8x1xf32>
    %21 = arith.divf %19, %20 : vector<8x1xf32>
    %22 = vector.broadcast %21 : vector<8x1xf32> to vector<8x32xf32>
    %23 = arith.subf %15, %22 : vector<8x32xf32>
    %24 = arith.mulf %23, %23 : vector<8x32xf32>
    %cst_17 = arith.constant dense<0.000000e+00> : vector<8xf32>
    %25 = vector.multi_reduction <add>, %24, %cst_17 [1] : vector<8x32xf32> to vector<8xf32>
    %26 = vector.shape_cast %25 : vector<8xf32> to vector<8x1xf32>
    %cst_18 = arith.constant 3.200000e+01 : f32
    %27 = vector.broadcast %cst_18 : f32 to vector<8x1xf32>
    %28 = arith.divf %26, %27 : vector<8x1xf32>
    %29 = vector.broadcast %21 : vector<8x1xf32> to vector<8x32xf32>
    %30 = arith.subf %15, %29 : vector<8x32xf32>
    %cst_19 = arith.constant 9.99999997E-7 : f32
    %31 = vector.broadcast %cst_19 : f32 to vector<8x1xf32>
    %32 = arith.addf %28, %31 : vector<8x1xf32>
    %33 = math.rsqrt %32 : vector<8x1xf32>
    %34 = vector.broadcast %33 : vector<8x1xf32> to vector<8x32xf32>
    %35 = arith.mulf %30, %34 : vector<8x32xf32>
    %36 = vector.broadcast %16 : vector<1x32xf32> to vector<8x32xf32>
    %37 = arith.mulf %35, %36 : vector<8x32xf32>
    %38 = vector.broadcast %17 : vector<1x32xf32> to vector<8x32xf32>
    %39 = arith.addf %37, %38 : vector<8x32xf32>
    %40 = arith.truncf %39 : vector<8x32xf32> to vector<8x32xbf16>
    %c0_20 = arith.constant 0 : index
    %c0_21 = arith.constant 0 : index
    %41 = vector.load %arg8[%c0_20, %c0_21] : memref<8x32xbf16, #tpu.memory_space<vmem>>, vector<8x32xbf16>
    tpu.vector_store %arg8[%c0_20, %c0_21], %40 {strides = array<i32>} : memref<8x32xbf16, #tpu.memory_space<vmem>>, vector<8x32xbf16>,
    return
  }
  func.func @transform_0(%arg0: i32) -> (i32, i32) {
    %c0_i32 = arith.constant 0 : i32
    %c0_i32_0 = arith.constant 0 : i32
    return %arg0, %c0_i32 : i32, i32
  }
  func.func @transform_1(%arg0: i32) -> (i32, i32) {
    %c0_i32 = arith.constant 0 : i32
    %c0_i32_0 = arith.constant 0 : i32
    %c0_i32_1 = arith.constant 0 : i32
    return %c0_i32, %c0_i32_0 : i32, i32
  }
  func.func @transform_2(%arg0: i32) -> (i32, i32) {
    %c0_i32 = arith.constant 0 : i32
    %c0_i32_0 = arith.constant 0 : i32
    %c0_i32_1 = arith.constant 0 : i32
    return %c0_i32, %c0_i32_0 : i32, i32
  }
  func.func @transform_3(%arg0: i32) -> (i32, i32) {
    %c0_i32 = arith.constant 0 : i32
    %c0_i32_0 = arith.constant 0 : i32
    %c0_i32_1 = arith.constant 0 : i32
    return %c0_i32, %c0_i32_0 : i32, i32
  }
  func.func @transform_4(%arg0: i32) -> (i32, i32) {
    %c0_i32 = arith.constant 0 : i32
    %c0_i32_0 = arith.constant 0 : i32
    %c0_i32_1 = arith.constant 0 : i32
    return %c0_i32, %c0_i32_0 : i32, i32
  }
  func.func @transform_5(%arg0: i32) -> (i32, i32) {
    %c0_i32 = arith.constant 0 : i32
    %c0_i32_0 = arith.constant 0 : i32
    %c0_i32_1 = arith.constant 0 : i32
    return %c0_i32, %c0_i32_0 : i32, i32
  }
  func.func @transform_6(%arg0: i32) -> (i32, i32) {
    %c0_i32 = arith.constant 0 : i32
    %c0_i32_0 = arith.constant 0 : i32
    %c0_i32_1 = arith.constant 0 : i32
    return %c0_i32, %c0_i32_0 : i32, i32
  }
  func.func @transform_7(%arg0: i32) -> (i32, i32) {
    %c0_i32 = arith.constant 0 : i32
    %c0_i32_0 = arith.constant 0 : i32
    return %arg0, %c0_i32 : i32, i32
  }
}

module attributes {stable_mosaic.version = 11 : i64} {
  func.func @_self_attn_ln_kernel(%arg0: i32, %arg1: memref<1x8x32xbf16, #tpu.memory_space<vmem>>, %arg2: memref<1x1x8xf32, #tpu.memory_space<vmem>>, %arg3: memref<4x32x8xbf16, #tpu.memory_space<vmem>>, %arg4: memref<4x32x8xbf16, #tpu.memory_space<vmem>>, %arg5: memref<4x32x8xbf16, #tpu.memory_space<vmem>>, %arg6: memref<4x8x32xbf16, #tpu.memory_space<vmem>>, %arg7: memref<1x32xf32, #tpu.memory_space<vmem>>, %arg8: memref<1x32xf32, #tpu.memory_space<vmem>>, %arg9: memref<1x8x32xbf16, #tpu.memory_space<vmem>>) attributes {dimension_semantics = [#tpu.dimension_semantics<parallel>], iteration_bounds = array<i64: 2>, scalar_prefetch = 0 : i64, scratch_operands = 0 : i64, tpu.core_type = #tpu.core_type<tc>, window_params = [{transform_indices = @transform_0, window_bounds = array<i64: 1, 8, 32>}, {transform_indices = @transform_1, window_bounds = array<i64: 1, 1, 8>}, {pipeline_mode = #tpu.pipeline_mode<synchronous>, transform_indices = @transform_2, window_bounds = array<i64: 4, 32, 8>}, {pipeline_mode = #tpu.pipeline_mode<synchronous>, transform_indices = @transform_3, window_bounds = array<i64: 4, 32, 8>}, {pipeline_mode = #tpu.pipeline_mode<synchronous>, transform_indices = @transform_4, window_bounds = array<i64: 4, 32, 8>}, {pipeline_mode = #tpu.pipeline_mode<synchronous>, transform_indices = @transform_5, window_bounds = array<i64: 4, 8, 32>}, {pipeline_mode = #tpu.pipeline_mode<synchronous>, transform_indices = @transform_6, window_bounds = array<i64: 1, 32>}, {pipeline_mode = #tpu.pipeline_mode<synchronous>, transform_indices = @transform_7, window_bounds = array<i64: 1, 32>}, {transform_indices = @transform_8, window_bounds = array<i64: 1, 8, 32>}]} {
    %c0 = arith.constant 0 : index
    %c0_0 = arith.constant 0 : index
    %c0_1 = arith.constant 0 : index
    %0 = vector.load %arg1[%c0, %c0_0, %c0_1] : memref<1x8x32xbf16, #tpu.memory_space<vmem>>, vector<1x8x32xbf16>
    %1 = vector.shape_cast %0 : vector<1x8x32xbf16> to vector<8x32xbf16>
    %2 = arith.extf %1 : vector<8x32xbf16> to vector<8x32xf32>
    %c0_2 = arith.constant 0 : index
    %c0_3 = arith.constant 0 : index
    %c0_4 = arith.constant 0 : index
    %3 = vector.load %arg2[%c0_2, %c0_3, %c0_4] : memref<1x1x8xf32, #tpu.memory_space<vmem>>, vector<1x1x8xf32>
    %4 = vector.shape_cast %3 : vector<1x1x8xf32> to vector<1x8xf32>
    %cst = arith.constant 0.000000e+00 : f32
    %5 = vector.broadcast %cst : f32 to vector<8x32xf32>
    %c0_5 = arith.constant 0 : index
    %c0_6 = arith.constant 0 : index
    %c0_7 = arith.constant 0 : index
    %6 = vector.load %arg3[%c0_5, %c0_6, %c0_7] : memref<4x32x8xbf16, #tpu.memory_space<vmem>>, vector<1x32x8xbf16>
    %7 = vector.shape_cast %6 : vector<1x32x8xbf16> to vector<32x8xbf16>
    %cst_8 = arith.constant dense<0.000000e+00> : vector<8x8xf32>
    %8 = tpu.matmul %1, %7, %cst_8 {dimension_numbers = #tpu.dot_dimension_numbers<[1], [0], [0], [1], [0, 0, 1, 1], [], []>} : vector<8x32xbf16>, vector<32x8xbf16>, vector<8x8xf32> -> vector<8x8xf32>
    %c0_9 = arith.constant 0 : index
    %c0_10 = arith.constant 0 : index
    %c0_11 = arith.constant 0 : index
    %9 = vector.load %arg4[%c0_9, %c0_10, %c0_11] : memref<4x32x8xbf16, #tpu.memory_space<vmem>>, vector<1x32x8xbf16>
    %10 = vector.shape_cast %9 : vector<1x32x8xbf16> to vector<32x8xbf16>
    %cst_12 = arith.constant dense<0.000000e+00> : vector<8x8xf32>
    %11 = tpu.matmul %1, %10, %cst_12 {dimension_numbers = #tpu.dot_dimension_numbers<[1], [0], [0], [1], [0, 0, 1, 1], [], []>} : vector<8x32xbf16>, vector<32x8xbf16>, vector<8x8xf32> -> vector<8x8xf32>
    %c0_13 = arith.constant 0 : index
    %c0_14 = arith.constant 0 : index
    %c0_15 = arith.constant 0 : index
    %12 = vector.load %arg5[%c0_13, %c0_14, %c0_15] : memref<4x32x8xbf16, #tpu.memory_space<vmem>>, vector<1x32x8xbf16>
    %13 = vector.shape_cast %12 : vector<1x32x8xbf16> to vector<32x8xbf16>
    %cst_16 = arith.constant dense<0.000000e+00> : vector<8x8xf32>
    %14 = tpu.matmul %1, %13, %cst_16 {dimension_numbers = #tpu.dot_dimension_numbers<[1], [0], [0], [1], [0, 0, 1, 1], [], []>} : vector<8x32xbf16>, vector<32x8xbf16>, vector<8x8xf32> -> vector<8x8xf32>
    %15 = arith.truncf %8 : vector<8x8xf32> to vector<8x8xbf16>
    %16 = arith.truncf %11 : vector<8x8xf32> to vector<8x8xbf16>
    "tpu.trace_start"() <{level = 10 : i32, message = "qd,kd->qk"}> : () -> ()
    %cst_17 = arith.constant dense<0.000000e+00> : vector<8x8xf32>
    %17 = tpu.matmul %15, %16, %cst_17 {dimension_numbers = #tpu.dot_dimension_numbers<[1], [1], [0], [0], [0, 0, 1, 0], [], []>} : vector<8x8xbf16>, vector<8x8xbf16>, vector<8x8xf32> -> vector<8x8xf32>
    "tpu.trace_stop"() : () -> ()
    %18 = vector.broadcast %4 : vector<1x8xf32> to vector<8x8xf32>
    %19 = arith.addf %17, %18 : vector<8x8xf32>
    %cst_18 = arith.constant dense<0xFF800000> : vector<8xf32>
    %20 = vector.multi_reduction <maximumf>, %19, %cst_18 [1] : vector<8x8xf32> to vector<8xf32>
    %21 = vector.shape_cast %20 : vector<8xf32> to vector<8x1xf32>
    %22 = vector.broadcast %21 : vector<8x1xf32> to vector<8x8xf32>
    %23 = arith.subf %19, %22 : vector<8x8xf32>
    %24 = math.exp %23 : vector<8x8xf32>
    %cst_19 = arith.constant dense<0.000000e+00> : vector<8xf32>
    %25 = vector.multi_reduction <add>, %24, %cst_19 [1] : vector<8x8xf32> to vector<8xf32>
    %26 = vector.shape_cast %25 : vector<8xf32> to vector<8x1xf32>
    %27 = tpu.reciprocal %26 {approx = true} : vector<8x1xf32> -> vector<8x1xf32>
    %28 = vector.broadcast %27 : vector<8x1xf32> to vector<8x8xf32>
    %29 = arith.mulf %24, %28 : vector<8x8xf32>
    %30 = arith.truncf %29 : vector<8x8xf32> to vector<8x8xbf16>
    %31 = arith.truncf %14 : vector<8x8xf32> to vector<8x8xbf16>
    %cst_20 = arith.constant dense<0.000000e+00> : vector<8x8xf32>
    %32 = tpu.matmul %30, %31, %cst_20 {dimension_numbers = #tpu.dot_dimension_numbers<[1], [0], [0], [1], [0, 0, 1, 1], [], []>} : vector<8x8xbf16>, vector<8x8xbf16>, vector<8x8xf32> -> vector<8x8xf32>
    %33 = arith.truncf %32 : vector<8x8xf32> to vector<8x8xbf16>
    %c0_21 = arith.constant 0 : index
    %c0_22 = arith.constant 0 : index
    %c0_23 = arith.constant 0 : index
    %34 = vector.load %arg6[%c0_21, %c0_22, %c0_23] : memref<4x8x32xbf16, #tpu.memory_space<vmem>>, vector<1x8x32xbf16>
    %35 = vector.shape_cast %34 : vector<1x8x32xbf16> to vector<8x32xbf16>
    %cst_24 = arith.constant dense<0.000000e+00> : vector<8x32xf32>
    %36 = tpu.matmul %33, %35, %cst_24 {dimension_numbers = #tpu.dot_dimension_numbers<[1], [0], [0], [1], [0, 0, 1, 1], [], []>} : vector<8x8xbf16>, vector<8x32xbf16>, vector<8x32xf32> -> vector<8x32xf32>
    %37 = arith.addf %5, %36 : vector<8x32xf32>
    %c1 = arith.constant 1 : index
    %c0_25 = arith.constant 0 : index
    %c0_26 = arith.constant 0 : index
    %38 = vector.load %arg3[%c1, %c0_25, %c0_26] : memref<4x32x8xbf16, #tpu.memory_space<vmem>>, vector<1x32x8xbf16>
    %39 = vector.shape_cast %38 : vector<1x32x8xbf16> to vector<32x8xbf16>
    %cst_27 = arith.constant dense<0.000000e+00> : vector<8x8xf32>
    %40 = tpu.matmul %1, %39, %cst_27 {dimension_numbers = #tpu.dot_dimension_numbers<[1], [0], [0], [1], [0, 0, 1, 1], [], []>} : vector<8x32xbf16>, vector<32x8xbf16>, vector<8x8xf32> -> vector<8x8xf32>
    %c1_28 = arith.constant 1 : index
    %c0_29 = arith.constant 0 : index
    %c0_30 = arith.constant 0 : index
    %41 = vector.load %arg4[%c1_28, %c0_29, %c0_30] : memref<4x32x8xbf16, #tpu.memory_space<vmem>>, vector<1x32x8xbf16>
    %42 = vector.shape_cast %41 : vector<1x32x8xbf16> to vector<32x8xbf16>
    %cst_31 = arith.constant dense<0.000000e+00> : vector<8x8xf32>
    %43 = tpu.matmul %1, %42, %cst_31 {dimension_numbers = #tpu.dot_dimension_numbers<[1], [0], [0], [1], [0, 0, 1, 1], [], []>} : vector<8x32xbf16>, vector<32x8xbf16>, vector<8x8xf32> -> vector<8x8xf32>
    %c1_32 = arith.constant 1 : index
    %c0_33 = arith.constant 0 : index
    %c0_34 = arith.constant 0 : index
    %44 = vector.load %arg5[%c1_32, %c0_33, %c0_34] : memref<4x32x8xbf16, #tpu.memory_space<vmem>>, vector<1x32x8xbf16>
    %45 = vector.shape_cast %44 : vector<1x32x8xbf16> to vector<32x8xbf16>
    %cst_35 = arith.constant dense<0.000000e+00> : vector<8x8xf32>
    %46 = tpu.matmul %1, %45, %cst_35 {dimension_numbers = #tpu.dot_dimension_numbers<[1], [0], [0], [1], [0, 0, 1, 1], [], []>} : vector<8x32xbf16>, vector<32x8xbf16>, vector<8x8xf32> -> vector<8x8xf32>
    %47 = arith.truncf %40 : vector<8x8xf32> to vector<8x8xbf16>
    %48 = arith.truncf %43 : vector<8x8xf32> to vector<8x8xbf16>
    "tpu.trace_start"() <{level = 10 : i32, message = "qd,kd->qk"}> : () -> ()
    %cst_36 = arith.constant dense<0.000000e+00> : vector<8x8xf32>
    %49 = tpu.matmul %47, %48, %cst_36 {dimension_numbers = #tpu.dot_dimension_numbers<[1], [1], [0], [0], [0, 0, 1, 0], [], []>} : vector<8x8xbf16>, vector<8x8xbf16>, vector<8x8xf32> -> vector<8x8xf32>
    "tpu.trace_stop"() : () -> ()
    %50 = vector.broadcast %4 : vector<1x8xf32> to vector<8x8xf32>
    %51 = arith.addf %49, %50 : vector<8x8xf32>
    %cst_37 = arith.constant dense<0xFF800000> : vector<8xf32>
    %52 = vector.multi_reduction <maximumf>, %51, %cst_37 [1] : vector<8x8xf32> to vector<8xf32>
    %53 = vector.shape_cast %52 : vector<8xf32> to vector<8x1xf32>
    %54 = vector.broadcast %53 : vector<8x1xf32> to vector<8x8xf32>
    %55 = arith.subf %51, %54 : vector<8x8xf32>
    %56 = math.exp %55 : vector<8x8xf32>
    %cst_38 = arith.constant dense<0.000000e+00> : vector<8xf32>
    %57 = vector.multi_reduction <add>, %56, %cst_38 [1] : vector<8x8xf32> to vector<8xf32>
    %58 = vector.shape_cast %57 : vector<8xf32> to vector<8x1xf32>
    %59 = tpu.reciprocal %58 {approx = true} : vector<8x1xf32> -> vector<8x1xf32>
    %60 = vector.broadcast %59 : vector<8x1xf32> to vector<8x8xf32>
    %61 = arith.mulf %56, %60 : vector<8x8xf32>
    %62 = arith.truncf %61 : vector<8x8xf32> to vector<8x8xbf16>
    %63 = arith.truncf %46 : vector<8x8xf32> to vector<8x8xbf16>
    %cst_39 = arith.constant dense<0.000000e+00> : vector<8x8xf32>
    %64 = tpu.matmul %62, %63, %cst_39 {dimension_numbers = #tpu.dot_dimension_numbers<[1], [0], [0], [1], [0, 0, 1, 1], [], []>} : vector<8x8xbf16>, vector<8x8xbf16>, vector<8x8xf32> -> vector<8x8xf32>
    %65 = arith.truncf %64 : vector<8x8xf32> to vector<8x8xbf16>
    %c1_40 = arith.constant 1 : index
    %c0_41 = arith.constant 0 : index
    %c0_42 = arith.constant 0 : index
    %66 = vector.load %arg6[%c1_40, %c0_41, %c0_42] : memref<4x8x32xbf16, #tpu.memory_space<vmem>>, vector<1x8x32xbf16>
    %67 = vector.shape_cast %66 : vector<1x8x32xbf16> to vector<8x32xbf16>
    %cst_43 = arith.constant dense<0.000000e+00> : vector<8x32xf32>
    %68 = tpu.matmul %65, %67, %cst_43 {dimension_numbers = #tpu.dot_dimension_numbers<[1], [0], [0], [1], [0, 0, 1, 1], [], []>} : vector<8x8xbf16>, vector<8x32xbf16>, vector<8x32xf32> -> vector<8x32xf32>
    %69 = arith.addf %37, %68 : vector<8x32xf32>
    %c2 = arith.constant 2 : index
    %c0_44 = arith.constant 0 : index
    %c0_45 = arith.constant 0 : index
    %70 = vector.load %arg3[%c2, %c0_44, %c0_45] : memref<4x32x8xbf16, #tpu.memory_space<vmem>>, vector<1x32x8xbf16>
    %71 = vector.shape_cast %70 : vector<1x32x8xbf16> to vector<32x8xbf16>
    %cst_46 = arith.constant dense<0.000000e+00> : vector<8x8xf32>
    %72 = tpu.matmul %1, %71, %cst_46 {dimension_numbers = #tpu.dot_dimension_numbers<[1], [0], [0], [1], [0, 0, 1, 1], [], []>} : vector<8x32xbf16>, vector<32x8xbf16>, vector<8x8xf32> -> vector<8x8xf32>
    %c2_47 = arith.constant 2 : index
    %c0_48 = arith.constant 0 : index
    %c0_49 = arith.constant 0 : index
    %73 = vector.load %arg4[%c2_47, %c0_48, %c0_49] : memref<4x32x8xbf16, #tpu.memory_space<vmem>>, vector<1x32x8xbf16>
    %74 = vector.shape_cast %73 : vector<1x32x8xbf16> to vector<32x8xbf16>
    %cst_50 = arith.constant dense<0.000000e+00> : vector<8x8xf32>
    %75 = tpu.matmul %1, %74, %cst_50 {dimension_numbers = #tpu.dot_dimension_numbers<[1], [0], [0], [1], [0, 0, 1, 1], [], []>} : vector<8x32xbf16>, vector<32x8xbf16>, vector<8x8xf32> -> vector<8x8xf32>
    %c2_51 = arith.constant 2 : index
    %c0_52 = arith.constant 0 : index
    %c0_53 = arith.constant 0 : index
    %76 = vector.load %arg5[%c2_51, %c0_52, %c0_53] : memref<4x32x8xbf16, #tpu.memory_space<vmem>>, vector<1x32x8xbf16>
    %77 = vector.shape_cast %76 : vector<1x32x8xbf16> to vector<32x8xbf16>
    %cst_54 = arith.constant dense<0.000000e+00> : vector<8x8xf32>
    %78 = tpu.matmul %1, %77, %cst_54 {dimension_numbers = #tpu.dot_dimension_numbers<[1], [0], [0], [1], [0, 0, 1, 1], [], []>} : vector<8x32xbf16>, vector<32x8xbf16>, vector<8x8xf32> -> vector<8x8xf32>
    %79 = arith.truncf %72 : vector<8x8xf32> to vector<8x8xbf16>
    %80 = arith.truncf %75 : vector<8x8xf32> to vector<8x8xbf16>
    "tpu.trace_start"() <{level = 10 : i32, message = "qd,kd->qk"}> : () -> ()
    %cst_55 = arith.constant dense<0.000000e+00> : vector<8x8xf32>
    %81 = tpu.matmul %79, %80, %cst_55 {dimension_numbers = #tpu.dot_dimension_numbers<[1], [1], [0], [0], [0, 0, 1, 0], [], []>} : vector<8x8xbf16>, vector<8x8xbf16>, vector<8x8xf32> -> vector<8x8xf32>
    "tpu.trace_stop"() : () -> ()
    %82 = vector.broadcast %4 : vector<1x8xf32> to vector<8x8xf32>
    %83 = arith.addf %81, %82 : vector<8x8xf32>
    %cst_56 = arith.constant dense<0xFF800000> : vector<8xf32>
    %84 = vector.multi_reduction <maximumf>, %83, %cst_56 [1] : vector<8x8xf32> to vector<8xf32>
    %85 = vector.shape_cast %84 : vector<8xf32> to vector<8x1xf32>
    %86 = vector.broadcast %85 : vector<8x1xf32> to vector<8x8xf32>
    %87 = arith.subf %83, %86 : vector<8x8xf32>
    %88 = math.exp %87 : vector<8x8xf32>
    %cst_57 = arith.constant dense<0.000000e+00> : vector<8xf32>
    %89 = vector.multi_reduction <add>, %88, %cst_57 [1] : vector<8x8xf32> to vector<8xf32>
    %90 = vector.shape_cast %89 : vector<8xf32> to vector<8x1xf32>
    %91 = tpu.reciprocal %90 {approx = true} : vector<8x1xf32> -> vector<8x1xf32>
    %92 = vector.broadcast %91 : vector<8x1xf32> to vector<8x8xf32>
    %93 = arith.mulf %88, %92 : vector<8x8xf32>
    %94 = arith.truncf %93 : vector<8x8xf32> to vector<8x8xbf16>
    %95 = arith.truncf %78 : vector<8x8xf32> to vector<8x8xbf16>
    %cst_58 = arith.constant dense<0.000000e+00> : vector<8x8xf32>
    %96 = tpu.matmul %94, %95, %cst_58 {dimension_numbers = #tpu.dot_dimension_numbers<[1], [0], [0], [1], [0, 0, 1, 1], [], []>} : vector<8x8xbf16>, vector<8x8xbf16>, vector<8x8xf32> -> vector<8x8xf32>
    %97 = arith.truncf %96 : vector<8x8xf32> to vector<8x8xbf16>
    %c2_59 = arith.constant 2 : index
    %c0_60 = arith.constant 0 : index
    %c0_61 = arith.constant 0 : index
    %98 = vector.load %arg6[%c2_59, %c0_60, %c0_61] : memref<4x8x32xbf16, #tpu.memory_space<vmem>>, vector<1x8x32xbf16>
    %99 = vector.shape_cast %98 : vector<1x8x32xbf16> to vector<8x32xbf16>
    %cst_62 = arith.constant dense<0.000000e+00> : vector<8x32xf32>
    %100 = tpu.matmul %97, %99, %cst_62 {dimension_numbers = #tpu.dot_dimension_numbers<[1], [0], [0], [1], [0, 0, 1, 1], [], []>} : vector<8x8xbf16>, vector<8x32xbf16>, vector<8x32xf32> -> vector<8x32xf32>
    %101 = arith.addf %69, %100 : vector<8x32xf32>
    %c3 = arith.constant 3 : index
    %c0_63 = arith.constant 0 : index
    %c0_64 = arith.constant 0 : index
    %102 = vector.load %arg3[%c3, %c0_63, %c0_64] : memref<4x32x8xbf16, #tpu.memory_space<vmem>>, vector<1x32x8xbf16>
    %103 = vector.shape_cast %102 : vector<1x32x8xbf16> to vector<32x8xbf16>
    %cst_65 = arith.constant dense<0.000000e+00> : vector<8x8xf32>
    %104 = tpu.matmul %1, %103, %cst_65 {dimension_numbers = #tpu.dot_dimension_numbers<[1], [0], [0], [1], [0, 0, 1, 1], [], []>} : vector<8x32xbf16>, vector<32x8xbf16>, vector<8x8xf32> -> vector<8x8xf32>
    %c3_66 = arith.constant 3 : index
    %c0_67 = arith.constant 0 : index
    %c0_68 = arith.constant 0 : index
    %105 = vector.load %arg4[%c3_66, %c0_67, %c0_68] : memref<4x32x8xbf16, #tpu.memory_space<vmem>>, vector<1x32x8xbf16>
    %106 = vector.shape_cast %105 : vector<1x32x8xbf16> to vector<32x8xbf16>
    %cst_69 = arith.constant dense<0.000000e+00> : vector<8x8xf32>
    %107 = tpu.matmul %1, %106, %cst_69 {dimension_numbers = #tpu.dot_dimension_numbers<[1], [0], [0], [1], [0, 0, 1, 1], [], []>} : vector<8x32xbf16>, vector<32x8xbf16>, vector<8x8xf32> -> vector<8x8xf32>
    %c3_70 = arith.constant 3 : index
    %c0_71 = arith.constant 0 : index
    %c0_72 = arith.constant 0 : index
    %108 = vector.load %arg5[%c3_70, %c0_71, %c0_72] : memref<4x32x8xbf16, #tpu.memory_space<vmem>>, vector<1x32x8xbf16>
    %109 = vector.shape_cast %108 : vector<1x32x8xbf16> to vector<32x8xbf16>
    %cst_73 = arith.constant dense<0.000000e+00> : vector<8x8xf32>
    %110 = tpu.matmul %1, %109, %cst_73 {dimension_numbers = #tpu.dot_dimension_numbers<[1], [0], [0], [1], [0, 0, 1, 1], [], []>} : vector<8x32xbf16>, vector<32x8xbf16>, vector<8x8xf32> -> vector<8x8xf32>
    %111 = arith.truncf %104 : vector<8x8xf32> to vector<8x8xbf16>
    %112 = arith.truncf %107 : vector<8x8xf32> to vector<8x8xbf16>
    "tpu.trace_start"() <{level = 10 : i32, message = "qd,kd->qk"}> : () -> ()
    %cst_74 = arith.constant dense<0.000000e+00> : vector<8x8xf32>
    %113 = tpu.matmul %111, %112, %cst_74 {dimension_numbers = #tpu.dot_dimension_numbers<[1], [1], [0], [0], [0, 0, 1, 0], [], []>} : vector<8x8xbf16>, vector<8x8xbf16>, vector<8x8xf32> -> vector<8x8xf32>
    "tpu.trace_stop"() : () -> ()
    %114 = vector.broadcast %4 : vector<1x8xf32> to vector<8x8xf32>
    %115 = arith.addf %113, %114 : vector<8x8xf32>
    %cst_75 = arith.constant dense<0xFF800000> : vector<8xf32>
    %116 = vector.multi_reduction <maximumf>, %115, %cst_75 [1] : vector<8x8xf32> to vector<8xf32>
    %117 = vector.shape_cast %116 : vector<8xf32> to vector<8x1xf32>
    %118 = vector.broadcast %117 : vector<8x1xf32> to vector<8x8xf32>
    %119 = arith.subf %115, %118 : vector<8x8xf32>
    %120 = math.exp %119 : vector<8x8xf32>
    %cst_76 = arith.constant dense<0.000000e+00> : vector<8xf32>
    %121 = vector.multi_reduction <add>, %120, %cst_76 [1] : vector<8x8xf32> to vector<8xf32>
    %122 = vector.shape_cast %121 : vector<8xf32> to vector<8x1xf32>
    %123 = tpu.reciprocal %122 {approx = true} : vector<8x1xf32> -> vector<8x1xf32>
    %124 = vector.broadcast %123 : vector<8x1xf32> to vector<8x8xf32>
    %125 = arith.mulf %120, %124 : vector<8x8xf32>
    %126 = arith.truncf %125 : vector<8x8xf32> to vector<8x8xbf16>
    %127 = arith.truncf %110 : vector<8x8xf32> to vector<8x8xbf16>
    %cst_77 = arith.constant dense<0.000000e+00> : vector<8x8xf32>
    %128 = tpu.matmul %126, %127, %cst_77 {dimension_numbers = #tpu.dot_dimension_numbers<[1], [0], [0], [1], [0, 0, 1, 1], [], []>} : vector<8x8xbf16>, vector<8x8xbf16>, vector<8x8xf32> -> vector<8x8xf32>
    %129 = arith.truncf %128 : vector<8x8xf32> to vector<8x8xbf16>
    %c3_78 = arith.constant 3 : index
    %c0_79 = arith.constant 0 : index
    %c0_80 = arith.constant 0 : index
    %130 = vector.load %arg6[%c3_78, %c0_79, %c0_80] : memref<4x8x32xbf16, #tpu.memory_space<vmem>>, vector<1x8x32xbf16>
    %131 = vector.shape_cast %130 : vector<1x8x32xbf16> to vector<8x32xbf16>
    %cst_81 = arith.constant dense<0.000000e+00> : vector<8x32xf32>
    %132 = tpu.matmul %129, %131, %cst_81 {dimension_numbers = #tpu.dot_dimension_numbers<[1], [0], [0], [1], [0, 0, 1, 1], [], []>} : vector<8x8xbf16>, vector<8x32xbf16>, vector<8x32xf32> -> vector<8x32xf32>
    %133 = arith.addf %101, %132 : vector<8x32xf32>
    %134 = arith.addf %133, %2 : vector<8x32xf32>
    %c0_82 = arith.constant 0 : index
    %c0_83 = arith.constant 0 : index
    %135 = vector.load %arg7[%c0_82, %c0_83] : memref<1x32xf32, #tpu.memory_space<vmem>>, vector<1x32xf32>
    %c0_84 = arith.constant 0 : index
    %c0_85 = arith.constant 0 : index
    %136 = vector.load %arg8[%c0_84, %c0_85] : memref<1x32xf32, #tpu.memory_space<vmem>>, vector<1x32xf32>
    %cst_86 = arith.constant dense<0.000000e+00> : vector<8xf32>
    %137 = vector.multi_reduction <add>, %134, %cst_86 [1] : vector<8x32xf32> to vector<8xf32>
    %138 = vector.shape_cast %137 : vector<8xf32> to vector<8x1xf32>
    %cst_87 = arith.constant 3.200000e+01 : f32
    %139 = vector.broadcast %cst_87 : f32 to vector<8x1xf32>
    %140 = arith.divf %138, %139 : vector<8x1xf32>
    %141 = vector.broadcast %140 : vector<8x1xf32> to vector<8x32xf32>
    %142 = arith.subf %134, %141 : vector<8x32xf32>
    %143 = arith.mulf %142, %142 : vector<8x32xf32>
    %cst_88 = arith.constant dense<0.000000e+00> : vector<8xf32>
    %144 = vector.multi_reduction <add>, %143, %cst_88 [1] : vector<8x32xf32> to vector<8xf32>
    %145 = vector.shape_cast %144 : vector<8xf32> to vector<8x1xf32>
    %cst_89 = arith.constant 3.200000e+01 : f32
    %146 = vector.broadcast %cst_89 : f32 to vector<8x1xf32>
    %147 = arith.divf %145, %146 : vector<8x1xf32>
    %148 = vector.broadcast %140 : vector<8x1xf32> to vector<8x32xf32>
    %149 = arith.subf %134, %148 : vector<8x32xf32>
    %cst_90 = arith.constant 9.99999997E-7 : f32
    %150 = vector.broadcast %cst_90 : f32 to vector<8x1xf32>
    %151 = arith.addf %147, %150 : vector<8x1xf32>
    %152 = math.rsqrt %151 : vector<8x1xf32>
    %153 = vector.broadcast %152 : vector<8x1xf32> to vector<8x32xf32>
    %154 = arith.mulf %149, %153 : vector<8x32xf32>
    %155 = vector.broadcast %135 : vector<1x32xf32> to vector<8x32xf32>
    %156 = arith.mulf %154, %155 : vector<8x32xf32>
    %157 = vector.broadcast %136 : vector<1x32xf32> to vector<8x32xf32>
    %158 = arith.addf %156, %157 : vector<8x32xf32>
    %159 = arith.truncf %158 : vector<8x32xf32> to vector<8x32xbf16>
    %c0_91 = arith.constant 0 : index
    %c0_92 = arith.constant 0 : index
    %c0_93 = arith.constant 0 : index
    %160 = vector.load %arg9[%c0_91, %c0_92, %c0_93] : memref<1x8x32xbf16, #tpu.memory_space<vmem>>, vector<1x8x32xbf16>
    %161 = vector.shape_cast %160 : vector<1x8x32xbf16> to vector<8x32xbf16>
    %162 = vector.shape_cast %159 : vector<8x32xbf16> to vector<1x8x32xbf16>
    tpu.vector_store %arg9[%c0_91, %c0_92, %c0_93], %162 {strides = array<i32>} : memref<1x8x32xbf16, #tpu.memory_space<vmem>>, vector<1x8x32xbf16>,
    return
  }
  func.func @transform_0(%arg0: i32) -> (i32, i32, i32) {
    %c0_i32 = arith.constant 0 : i32
    %c0_i32_0 = arith.constant 0 : i32
    %c0_i32_1 = arith.constant 0 : i32
    return %arg0, %c0_i32, %c0_i32_0 : i32, i32, i32
  }
  func.func @transform_1(%arg0: i32) -> (i32, i32, i32) {
    %c0_i32 = arith.constant 0 : i32
    %c0_i32_0 = arith.constant 0 : i32
    %c0_i32_1 = arith.constant 0 : i32
    return %arg0, %c0_i32, %c0_i32_0 : i32, i32, i32
  }
  func.func @transform_2(%arg0: i32) -> (i32, i32, i32) {
    %c0_i32 = arith.constant 0 : i32
    %c0_i32_0 = arith.constant 0 : i32
    %c0_i32_1 = arith.constant 0 : i32
    %c0_i32_2 = arith.constant 0 : i32
    return %c0_i32, %c0_i32_0, %c0_i32_1 : i32, i32, i32
  }
  func.func @transform_3(%arg0: i32) -> (i32, i32, i32) {
    %c0_i32 = arith.constant 0 : i32
    %c0_i32_0 = arith.constant 0 : i32
    %c0_i32_1 = arith.constant 0 : i32
    %c0_i32_2 = arith.constant 0 : i32
    return %c0_i32, %c0_i32_0, %c0_i32_1 : i32, i32, i32
  }
  func.func @transform_4(%arg0: i32) -> (i32, i32, i32) {
    %c0_i32 = arith.constant 0 : i32
    %c0_i32_0 = arith.constant 0 : i32
    %c0_i32_1 = arith.constant 0 : i32
    %c0_i32_2 = arith.constant 0 : i32
    return %c0_i32, %c0_i32_0, %c0_i32_1 : i32, i32, i32
  }
  func.func @transform_5(%arg0: i32) -> (i32, i32, i32) {
    %c0_i32 = arith.constant 0 : i32
    %c0_i32_0 = arith.constant 0 : i32
    %c0_i32_1 = arith.constant 0 : i32
    %c0_i32_2 = arith.constant 0 : i32
    return %c0_i32, %c0_i32_0, %c0_i32_1 : i32, i32, i32
  }
  func.func @transform_6(%arg0: i32) -> (i32, i32) {
    %c0_i32 = arith.constant 0 : i32
    %c0_i32_0 = arith.constant 0 : i32
    %c0_i32_1 = arith.constant 0 : i32
    return %c0_i32, %c0_i32_0 : i32, i32
  }
  func.func @transform_7(%arg0: i32) -> (i32, i32) {
    %c0_i32 = arith.constant 0 : i32
    %c0_i32_0 = arith.constant 0 : i32
    %c0_i32_1 = arith.constant 0 : i32
    return %c0_i32, %c0_i32_0 : i32, i32
  }
  func.func @transform_8(%arg0: i32) -> (i32, i32, i32) {
    %c0_i32 = arith.constant 0 : i32
    %c0_i32_0 = arith.constant 0 : i32
    %c0_i32_1 = arith.constant 0 : i32
    return %arg0, %c0_i32, %c0_i32_0 : i32, i32, i32
  }
}

module attributes {stable_mosaic.version = 11 : i64} {
  func.func @_decoder_cls_kernel(%arg0: i32, %arg1: memref<1x32xf32, #tpu.memory_space<vmem>>, %arg2: memref<1x8x32xbf16, #tpu.memory_space<vmem>>, %arg3: memref<1x1x8xf32, #tpu.memory_space<vmem>>, %arg4: memref<1x32xf32, #tpu.memory_space<vmem>>, %arg5: memref<1x32xf32, #tpu.memory_space<vmem>>, %arg6: memref<2x32x32xbf16, #tpu.memory_space<vmem>>, %arg7: memref<2x32x32xbf16, #tpu.memory_space<vmem>>, %arg8: memref<2x1x32xf32, #tpu.memory_space<vmem>>, %arg9: memref<2x1x32xf32, #tpu.memory_space<vmem>>, %arg10: memref<2x4x32x8xbf16, #tpu.memory_space<vmem>>, %arg11: memref<2x4x32x8xbf16, #tpu.memory_space<vmem>>, %arg12: memref<2x4x32x8xbf16, #tpu.memory_space<vmem>>, %arg13: memref<2x4x8x32xbf16, #tpu.memory_space<vmem>>, %arg14: memref<2x1x32xf32, #tpu.memory_space<vmem>>, %arg15: memref<2x1x32xf32, #tpu.memory_space<vmem>>, %arg16: memref<2x32x64xbf16, #tpu.memory_space<vmem>>, %arg17: memref<2x1x64xf32, #tpu.memory_space<vmem>>, %arg18: memref<2x64x32xbf16, #tpu.memory_space<vmem>>, %arg19: memref<2x1x32xf32, #tpu.memory_space<vmem>>, %arg20: memref<2x1x32xf32, #tpu.memory_space<vmem>>, %arg21: memref<2x1x32xf32, #tpu.memory_space<vmem>>, %arg22: memref<32x5xbf16, #tpu.memory_space<vmem>>, %arg23: memref<1x1x5xf32, #tpu.memory_space<vmem>>) attributes {dimension_semantics = [#tpu.dimension_semantics<parallel>], iteration_bounds = array<i64: 2>, scalar_prefetch = 0 : i64, scratch_operands = 0 : i64, tpu.core_type = #tpu.core_type<tc>, window_params = [{pipeline_mode = #tpu.pipeline_mode<synchronous>, transform_indices = @transform_0, window_bounds = array<i64: 1, 32>}, {transform_indices = @transform_1, window_bounds = array<i64: 1, 8, 32>}, {transform_indices = @transform_2, window_bounds = array<i64: 1, 1, 8>}, {pipeline_mode = #tpu.pipeline_mode<synchronous>, transform_indices = @transform_3, window_bounds = array<i64: 1, 32>}, {pipeline_mode = #tpu.pipeline_mode<synchronous>, transform_indices = @transform_4, window_bounds = array<i64: 1, 32>}, {pipeline_mode = #tpu.pipeline_mode<synchronous>, transform_indices = @transform_5, window_bounds = array<i64: 2, 32, 32>}, {pipeline_mode = #tpu.pipeline_mode<synchronous>, transform_indices = @transform_6, window_bounds = array<i64: 2, 32, 32>}, {pipeline_mode = #tpu.pipeline_mode<synchronous>, transform_indices = @transform_7, window_bounds = array<i64: 2, 1, 32>}, {pipeline_mode = #tpu.pipeline_mode<synchronous>, transform_indices = @transform_8, window_bounds = array<i64: 2, 1, 32>}, {pipeline_mode = #tpu.pipeline_mode<synchronous>, transform_indices = @transform_9, window_bounds = array<i64: 2, 4, 32, 8>}, {pipeline_mode = #tpu.pipeline_mode<synchronous>, transform_indices = @transform_10, window_bounds = array<i64: 2, 4, 32, 8>}, {pipeline_mode = #tpu.pipeline_mode<synchronous>, transform_indices = @transform_11, window_bounds = array<i64: 2, 4, 32, 8>}, {pipeline_mode = #tpu.pipeline_mode<synchronous>, transform_indices = @transform_12, window_bounds = array<i64: 2, 4, 8, 32>}, {pipeline_mode = #tpu.pipeline_mode<synchronous>, transform_indices = @transform_13, window_bounds = array<i64: 2, 1, 32>}, {pipeline_mode = #tpu.pipeline_mode<synchronous>, transform_indices = @transform_14, window_bounds = array<i64: 2, 1, 32>}, {pipeline_mode = #tpu.pipeline_mode<synchronous>, transform_indices = @transform_15, window_bounds = array<i64: 2, 32, 64>}, {pipeline_mode = #tpu.pipeline_mode<synchronous>, transform_indices = @transform_16, window_bounds = array<i64: 2, 1, 64>}, {pipeline_mode = #tpu.pipeline_mode<synchronous>, transform_indices = @transform_17, window_bounds = array<i64: 2, 64, 32>}, {pipeline_mode = #tpu.pipeline_mode<synchronous>, transform_indices = @transform_18, window_bounds = array<i64: 2, 1, 32>}, {pipeline_mode = #tpu.pipeline_mode<synchronous>, transform_indices = @transform_19, window_bounds = array<i64: 2, 1, 32>}, {pipeline_mode = #tpu.pipeline_mode<synchronous>, transform_indices = @transform_20, window_bounds = array<i64: 2, 1, 32>}, {pipeline_mode = #tpu.pipeline_mode<synchronous>, transform_indices = @transform_21, window_bounds = array<i64: 32, 5>}, {transform_indices = @transform_22, window_bounds = array<i64: 1, 1, 5>}]} {
    %c0 = arith.constant 0 : index
    %c0_0 = arith.constant 0 : index
    %0 = vector.load %arg1[%c0, %c0_0] : memref<1x32xf32, #tpu.memory_space<vmem>>, vector<1x32xf32>
    %c0_1 = arith.constant 0 : index
    %c0_2 = arith.constant 0 : index
    %1 = vector.load %arg4[%c0_1, %c0_2] : memref<1x32xf32, #tpu.memory_space<vmem>>, vector<1x32xf32>
    %c0_3 = arith.constant 0 : index
    %c0_4 = arith.constant 0 : index
    %2 = vector.load %arg5[%c0_3, %c0_4] : memref<1x32xf32, #tpu.memory_space<vmem>>, vector<1x32xf32>
    %cst = arith.constant dense<0.000000e+00> : vector<1xf32>
    %3 = vector.multi_reduction <add>, %0, %cst [1] : vector<1x32xf32> to vector<1xf32>
    %4 = vector.shape_cast %3 : vector<1xf32> to vector<1x1xf32>
    %cst_5 = arith.constant 3.200000e+01 : f32
    %5 = vector.broadcast %cst_5 : f32 to vector<1x1xf32>
    %6 = arith.divf %4, %5 : vector<1x1xf32>
    %7 = vector.broadcast %6 : vector<1x1xf32> to vector<1x32xf32>
    %8 = arith.subf %0, %7 : vector<1x32xf32>
    %9 = arith.mulf %8, %8 : vector<1x32xf32>
    %cst_6 = arith.constant dense<0.000000e+00> : vector<1xf32>
    %10 = vector.multi_reduction <add>, %9, %cst_6 [1] : vector<1x32xf32> to vector<1xf32>
    %11 = vector.shape_cast %10 : vector<1xf32> to vector<1x1xf32>
    %cst_7 = arith.constant 3.200000e+01 : f32
    %12 = vector.broadcast %cst_7 : f32 to vector<1x1xf32>
    %13 = arith.divf %11, %12 : vector<1x1xf32>
    %14 = vector.broadcast %6 : vector<1x1xf32> to vector<1x32xf32>
    %15 = arith.subf %0, %14 : vector<1x32xf32>
    %cst_8 = arith.constant 9.99999997E-7 : f32
    %16 = vector.broadcast %cst_8 : f32 to vector<1x1xf32>
    %17 = arith.addf %13, %16 : vector<1x1xf32>
    %18 = math.rsqrt %17 : vector<1x1xf32>
    %19 = vector.broadcast %18 : vector<1x1xf32> to vector<1x32xf32>
    %20 = arith.mulf %15, %19 : vector<1x32xf32>
    %21 = arith.mulf %20, %1 : vector<1x32xf32>
    %22 = arith.addf %21, %2 : vector<1x32xf32>
    %c0_9 = arith.constant 0 : index
    %c0_10 = arith.constant 0 : index
    %c0_11 = arith.constant 0 : index
    %23 = vector.load %arg2[%c0_9, %c0_10, %c0_11] : memref<1x8x32xbf16, #tpu.memory_space<vmem>>, vector<1x8x32xbf16>
    %24 = vector.shape_cast %23 : vector<1x8x32xbf16> to vector<8x32xbf16>
    %c0_12 = arith.constant 0 : index
    %c0_13 = arith.constant 0 : index
    %c0_14 = arith.constant 0 : index
    %25 = vector.load %arg3[%c0_12, %c0_13, %c0_14] : memref<1x1x8xf32, #tpu.memory_space<vmem>>, vector<1x1x8xf32>
    %26 = vector.shape_cast %25 : vector<1x1x8xf32> to vector<1x8xf32>
    %27 = arith.truncf %22 : vector<1x32xf32> to vector<1x32xbf16>
    %c0_15 = arith.constant 0 : index
    %c0_16 = arith.constant 0 : index
    %c0_17 = arith.constant 0 : index
    %28 = vector.load %arg6[%c0_15, %c0_16, %c0_17] : memref<2x32x32xbf16, #tpu.memory_space<vmem>>, vector<1x32x32xbf16>
    %29 = vector.shape_cast %28 : vector<1x32x32xbf16> to vector<32x32xbf16>
    %cst_18 = arith.constant dense<0.000000e+00> : vector<1x32xf32>
    %30 = tpu.matmul %27, %29, %cst_18 {dimension_numbers = #tpu.dot_dimension_numbers<[1], [0], [0], [1], [0, 0, 1, 1], [], []>} : vector<1x32xbf16>, vector<32x32xbf16>, vector<1x32xf32> -> vector<1x32xf32>
    %31 = arith.truncf %30 : vector<1x32xf32> to vector<1x32xbf16>
    %c0_19 = arith.constant 0 : index
    %c0_20 = arith.constant 0 : index
    %c0_21 = arith.constant 0 : index
    %32 = vector.load %arg7[%c0_19, %c0_20, %c0_21] : memref<2x32x32xbf16, #tpu.memory_space<vmem>>, vector<1x32x32xbf16>
    %33 = vector.shape_cast %32 : vector<1x32x32xbf16> to vector<32x32xbf16>
    %cst_22 = arith.constant dense<0.000000e+00> : vector<1x32xf32>
    %34 = tpu.matmul %31, %33, %cst_22 {dimension_numbers = #tpu.dot_dimension_numbers<[1], [0], [0], [1], [0, 0, 1, 1], [], []>} : vector<1x32xbf16>, vector<32x32xbf16>, vector<1x32xf32> -> vector<1x32xf32>
    %35 = arith.addf %34, %22 : vector<1x32xf32>
    %c0_23 = arith.constant 0 : index
    %c0_24 = arith.constant 0 : index
    %c0_25 = arith.constant 0 : index
    %36 = vector.load %arg8[%c0_23, %c0_24, %c0_25] : memref<2x1x32xf32, #tpu.memory_space<vmem>>, vector<1x1x32xf32>
    %37 = vector.shape_cast %36 : vector<1x1x32xf32> to vector<1x32xf32>
    %c0_26 = arith.constant 0 : index
    %c0_27 = arith.constant 0 : index
    %c0_28 = arith.constant 0 : index
    %38 = vector.load %arg9[%c0_26, %c0_27, %c0_28] : memref<2x1x32xf32, #tpu.memory_space<vmem>>, vector<1x1x32xf32>
    %39 = vector.shape_cast %38 : vector<1x1x32xf32> to vector<1x32xf32>
    %cst_29 = arith.constant dense<0.000000e+00> : vector<1xf32>
    %40 = vector.multi_reduction <add>, %35, %cst_29 [1] : vector<1x32xf32> to vector<1xf32>
    %41 = vector.shape_cast %40 : vector<1xf32> to vector<1x1xf32>
    %cst_30 = arith.constant 3.200000e+01 : f32
    %42 = vector.broadcast %cst_30 : f32 to vector<1x1xf32>
    %43 = arith.divf %41, %42 : vector<1x1xf32>
    %44 = vector.broadcast %43 : vector<1x1xf32> to vector<1x32xf32>
    %45 = arith.subf %35, %44 : vector<1x32xf32>
    %46 = arith.mulf %45, %45 : vector<1x32xf32>
    %cst_31 = arith.constant dense<0.000000e+00> : vector<1xf32>
    %47 = vector.multi_reduction <add>, %46, %cst_31 [1] : vector<1x32xf32> to vector<1xf32>
    %48 = vector.shape_cast %47 : vector<1xf32> to vector<1x1xf32>
    %cst_32 = arith.constant 3.200000e+01 : f32
    %49 = vector.broadcast %cst_32 : f32 to vector<1x1xf32>
    %50 = arith.divf %48, %49 : vector<1x1xf32>
    %51 = vector.broadcast %43 : vector<1x1xf32> to vector<1x32xf32>
    %52 = arith.subf %35, %51 : vector<1x32xf32>
    %cst_33 = arith.constant 9.99999997E-7 : f32
    %53 = vector.broadcast %cst_33 : f32 to vector<1x1xf32>
    %54 = arith.addf %50, %53 : vector<1x1xf32>
    %55 = math.rsqrt %54 : vector<1x1xf32>
    %56 = vector.broadcast %55 : vector<1x1xf32> to vector<1x32xf32>
    %57 = arith.mulf %52, %56 : vector<1x32xf32>
    %58 = arith.mulf %57, %37 : vector<1x32xf32>
    %59 = arith.addf %58, %39 : vector<1x32xf32>
    %60 = arith.truncf %59 : vector<1x32xf32> to vector<1x32xbf16>
    %cst_34 = arith.constant 0.000000e+00 : f32
    %61 = vector.broadcast %cst_34 : f32 to vector<1x32xf32>
    %c0_35 = arith.constant 0 : index
    %c0_36 = arith.constant 0 : index
    %c0_37 = arith.constant 0 : index
    %c0_38 = arith.constant 0 : index
    %62 = vector.load %arg10[%c0_35, %c0_36, %c0_37, %c0_38] : memref<2x4x32x8xbf16, #tpu.memory_space<vmem>>, vector<1x1x32x8xbf16>
    %63 = vector.shape_cast %62 : vector<1x1x32x8xbf16> to vector<32x8xbf16>
    %cst_39 = arith.constant dense<0.000000e+00> : vector<1x8xf32>
    %64 = tpu.matmul %60, %63, %cst_39 {dimension_numbers = #tpu.dot_dimension_numbers<[1], [0], [0], [1], [0, 0, 1, 1], [], []>} : vector<1x32xbf16>, vector<32x8xbf16>, vector<1x8xf32> -> vector<1x8xf32>
    %c0_40 = arith.constant 0 : index
    %c0_41 = arith.constant 0 : index
    %c0_42 = arith.constant 0 : index
    %c0_43 = arith.constant 0 : index
    %65 = vector.load %arg11[%c0_40, %c0_41, %c0_42, %c0_43] : memref<2x4x32x8xbf16, #tpu.memory_space<vmem>>, vector<1x1x32x8xbf16>
    %66 = vector.shape_cast %65 : vector<1x1x32x8xbf16> to vector<32x8xbf16>
    %cst_44 = arith.constant dense<0.000000e+00> : vector<8x8xf32>
    %67 = tpu.matmul %24, %66, %cst_44 {dimension_numbers = #tpu.dot_dimension_numbers<[1], [0], [0], [1], [0, 0, 1, 1], [], []>} : vector<8x32xbf16>, vector<32x8xbf16>, vector<8x8xf32> -> vector<8x8xf32>
    %c0_45 = arith.constant 0 : index
    %c0_46 = arith.constant 0 : index
    %c0_47 = arith.constant 0 : index
    %c0_48 = arith.constant 0 : index
    %68 = vector.load %arg12[%c0_45, %c0_46, %c0_47, %c0_48] : memref<2x4x32x8xbf16, #tpu.memory_space<vmem>>, vector<1x1x32x8xbf16>
    %69 = vector.shape_cast %68 : vector<1x1x32x8xbf16> to vector<32x8xbf16>
    %cst_49 = arith.constant dense<0.000000e+00> : vector<8x8xf32>
    %70 = tpu.matmul %24, %69, %cst_49 {dimension_numbers = #tpu.dot_dimension_numbers<[1], [0], [0], [1], [0, 0, 1, 1], [], []>} : vector<8x32xbf16>, vector<32x8xbf16>, vector<8x8xf32> -> vector<8x8xf32>
    %71 = arith.truncf %64 : vector<1x8xf32> to vector<1x8xbf16>
    %72 = arith.truncf %67 : vector<8x8xf32> to vector<8x8xbf16>
    "tpu.trace_start"() <{level = 10 : i32, message = "qd,kd->qk"}> : () -> ()
    %cst_50 = arith.constant dense<0.000000e+00> : vector<1x8xf32>
    %73 = tpu.matmul %71, %72, %cst_50 {dimension_numbers = #tpu.dot_dimension_numbers<[1], [1], [0], [0], [0, 0, 1, 0], [], []>} : vector<1x8xbf16>, vector<8x8xbf16>, vector<1x8xf32> -> vector<1x8xf32>
    "tpu.trace_stop"() : () -> ()
    %74 = arith.addf %73, %26 : vector<1x8xf32>
    %cst_51 = arith.constant dense<0xFF800000> : vector<1xf32>
    %75 = vector.multi_reduction <maximumf>, %74, %cst_51 [1] : vector<1x8xf32> to vector<1xf32>
    %76 = vector.shape_cast %75 : vector<1xf32> to vector<1x1xf32>
    %77 = vector.broadcast %76 : vector<1x1xf32> to vector<1x8xf32>
    %78 = arith.subf %74, %77 : vector<1x8xf32>
    %79 = math.exp %78 : vector<1x8xf32>
    %cst_52 = arith.constant dense<0.000000e+00> : vector<1xf32>
    %80 = vector.multi_reduction <add>, %79, %cst_52 [1] : vector<1x8xf32> to vector<1xf32>
    %81 = vector.shape_cast %80 : vector<1xf32> to vector<1x1xf32>
    %82 = tpu.reciprocal %81 {approx = true} : vector<1x1xf32> -> vector<1x1xf32>
    %83 = vector.broadcast %82 : vector<1x1xf32> to vector<1x8xf32>
    %84 = arith.mulf %79, %83 : vector<1x8xf32>
    %85 = arith.truncf %84 : vector<1x8xf32> to vector<1x8xbf16>
    %86 = arith.truncf %70 : vector<8x8xf32> to vector<8x8xbf16>
    %cst_53 = arith.constant dense<0.000000e+00> : vector<1x8xf32>
    %87 = tpu.matmul %85, %86, %cst_53 {dimension_numbers = #tpu.dot_dimension_numbers<[1], [0], [0], [1], [0, 0, 1, 1], [], []>} : vector<1x8xbf16>, vector<8x8xbf16>, vector<1x8xf32> -> vector<1x8xf32>
    %88 = arith.truncf %87 : vector<1x8xf32> to vector<1x8xbf16>
    %c0_54 = arith.constant 0 : index
    %c0_55 = arith.constant 0 : index
    %c0_56 = arith.constant 0 : index
    %c0_57 = arith.constant 0 : index
    %89 = vector.load %arg13[%c0_54, %c0_55, %c0_56, %c0_57] : memref<2x4x8x32xbf16, #tpu.memory_space<vmem>>, vector<1x1x8x32xbf16>
    %90 = vector.shape_cast %89 : vector<1x1x8x32xbf16> to vector<8x32xbf16>
    %cst_58 = arith.constant dense<0.000000e+00> : vector<1x32xf32>
    %91 = tpu.matmul %88, %90, %cst_58 {dimension_numbers = #tpu.dot_dimension_numbers<[1], [0], [0], [1], [0, 0, 1, 1], [], []>} : vector<1x8xbf16>, vector<8x32xbf16>, vector<1x32xf32> -> vector<1x32xf32>
    %92 = arith.addf %61, %91 : vector<1x32xf32>
    %c0_59 = arith.constant 0 : index
    %c1 = arith.constant 1 : index
    %c0_60 = arith.constant 0 : index
    %c0_61 = arith.constant 0 : index
    %93 = vector.load %arg10[%c0_59, %c1, %c0_60, %c0_61] : memref<2x4x32x8xbf16, #tpu.memory_space<vmem>>, vector<1x1x32x8xbf16>
    %94 = vector.shape_cast %93 : vector<1x1x32x8xbf16> to vector<32x8xbf16>
    %cst_62 = arith.constant dense<0.000000e+00> : vector<1x8xf32>
    %95 = tpu.matmul %60, %94, %cst_62 {dimension_numbers = #tpu.dot_dimension_numbers<[1], [0], [0], [1], [0, 0, 1, 1], [], []>} : vector<1x32xbf16>, vector<32x8xbf16>, vector<1x8xf32> -> vector<1x8xf32>
    %c0_63 = arith.constant 0 : index
    %c1_64 = arith.constant 1 : index
    %c0_65 = arith.constant 0 : index
    %c0_66 = arith.constant 0 : index
    %96 = vector.load %arg11[%c0_63, %c1_64, %c0_65, %c0_66] : memref<2x4x32x8xbf16, #tpu.memory_space<vmem>>, vector<1x1x32x8xbf16>
    %97 = vector.shape_cast %96 : vector<1x1x32x8xbf16> to vector<32x8xbf16>
    %cst_67 = arith.constant dense<0.000000e+00> : vector<8x8xf32>
    %98 = tpu.matmul %24, %97, %cst_67 {dimension_numbers = #tpu.dot_dimension_numbers<[1], [0], [0], [1], [0, 0, 1, 1], [], []>} : vector<8x32xbf16>, vector<32x8xbf16>, vector<8x8xf32> -> vector<8x8xf32>
    %c0_68 = arith.constant 0 : index
    %c1_69 = arith.constant 1 : index
    %c0_70 = arith.constant 0 : index
    %c0_71 = arith.constant 0 : index
    %99 = vector.load %arg12[%c0_68, %c1_69, %c0_70, %c0_71] : memref<2x4x32x8xbf16, #tpu.memory_space<vmem>>, vector<1x1x32x8xbf16>
    %100 = vector.shape_cast %99 : vector<1x1x32x8xbf16> to vector<32x8xbf16>
    %cst_72 = arith.constant dense<0.000000e+00> : vector<8x8xf32>
    %101 = tpu.matmul %24, %100, %cst_72 {dimension_numbers = #tpu.dot_dimension_numbers<[1], [0], [0], [1], [0, 0, 1, 1], [], []>} : vector<8x32xbf16>, vector<32x8xbf16>, vector<8x8xf32> -> vector<8x8xf32>
    %102 = arith.truncf %95 : vector<1x8xf32> to vector<1x8xbf16>
    %103 = arith.truncf %98 : vector<8x8xf32> to vector<8x8xbf16>
    "tpu.trace_start"() <{level = 10 : i32, message = "qd,kd->qk"}> : () -> ()
    %cst_73 = arith.constant dense<0.000000e+00> : vector<1x8xf32>
    %104 = tpu.matmul %102, %103, %cst_73 {dimension_numbers = #tpu.dot_dimension_numbers<[1], [1], [0], [0], [0, 0, 1, 0], [], []>} : vector<1x8xbf16>, vector<8x8xbf16>, vector<1x8xf32> -> vector<1x8xf32>
    "tpu.trace_stop"() : () -> ()
    %105 = arith.addf %104, %26 : vector<1x8xf32>
    %cst_74 = arith.constant dense<0xFF800000> : vector<1xf32>
    %106 = vector.multi_reduction <maximumf>, %105, %cst_74 [1] : vector<1x8xf32> to vector<1xf32>
    %107 = vector.shape_cast %106 : vector<1xf32> to vector<1x1xf32>
    %108 = vector.broadcast %107 : vector<1x1xf32> to vector<1x8xf32>
    %109 = arith.subf %105, %108 : vector<1x8xf32>
    %110 = math.exp %109 : vector<1x8xf32>
    %cst_75 = arith.constant dense<0.000000e+00> : vector<1xf32>
    %111 = vector.multi_reduction <add>, %110, %cst_75 [1] : vector<1x8xf32> to vector<1xf32>
    %112 = vector.shape_cast %111 : vector<1xf32> to vector<1x1xf32>
    %113 = tpu.reciprocal %112 {approx = true} : vector<1x1xf32> -> vector<1x1xf32>
    %114 = vector.broadcast %113 : vector<1x1xf32> to vector<1x8xf32>
    %115 = arith.mulf %110, %114 : vector<1x8xf32>
    %116 = arith.truncf %115 : vector<1x8xf32> to vector<1x8xbf16>
    %117 = arith.truncf %101 : vector<8x8xf32> to vector<8x8xbf16>
    %cst_76 = arith.constant dense<0.000000e+00> : vector<1x8xf32>
    %118 = tpu.matmul %116, %117, %cst_76 {dimension_numbers = #tpu.dot_dimension_numbers<[1], [0], [0], [1], [0, 0, 1, 1], [], []>} : vector<1x8xbf16>, vector<8x8xbf16>, vector<1x8xf32> -> vector<1x8xf32>
    %119 = arith.truncf %118 : vector<1x8xf32> to vector<1x8xbf16>
    %c0_77 = arith.constant 0 : index
    %c1_78 = arith.constant 1 : index
    %c0_79 = arith.constant 0 : index
    %c0_80 = arith.constant 0 : index
    %120 = vector.load %arg13[%c0_77, %c1_78, %c0_79, %c0_80] : memref<2x4x8x32xbf16, #tpu.memory_space<vmem>>, vector<1x1x8x32xbf16>
    %121 = vector.shape_cast %120 : vector<1x1x8x32xbf16> to vector<8x32xbf16>
    %cst_81 = arith.constant dense<0.000000e+00> : vector<1x32xf32>
    %122 = tpu.matmul %119, %121, %cst_81 {dimension_numbers = #tpu.dot_dimension_numbers<[1], [0], [0], [1], [0, 0, 1, 1], [], []>} : vector<1x8xbf16>, vector<8x32xbf16>, vector<1x32xf32> -> vector<1x32xf32>
    %123 = arith.addf %92, %122 : vector<1x32xf32>
    %c0_82 = arith.constant 0 : index
    %c2 = arith.constant 2 : index
    %c0_83 = arith.constant 0 : index
    %c0_84 = arith.constant 0 : index
    %124 = vector.load %arg10[%c0_82, %c2, %c0_83, %c0_84] : memref<2x4x32x8xbf16, #tpu.memory_space<vmem>>, vector<1x1x32x8xbf16>
    %125 = vector.shape_cast %124 : vector<1x1x32x8xbf16> to vector<32x8xbf16>
    %cst_85 = arith.constant dense<0.000000e+00> : vector<1x8xf32>
    %126 = tpu.matmul %60, %125, %cst_85 {dimension_numbers = #tpu.dot_dimension_numbers<[1], [0], [0], [1], [0, 0, 1, 1], [], []>} : vector<1x32xbf16>, vector<32x8xbf16>, vector<1x8xf32> -> vector<1x8xf32>
    %c0_86 = arith.constant 0 : index
    %c2_87 = arith.constant 2 : index
    %c0_88 = arith.constant 0 : index
    %c0_89 = arith.constant 0 : index
    %127 = vector.load %arg11[%c0_86, %c2_87, %c0_88, %c0_89] : memref<2x4x32x8xbf16, #tpu.memory_space<vmem>>, vector<1x1x32x8xbf16>
    %128 = vector.shape_cast %127 : vector<1x1x32x8xbf16> to vector<32x8xbf16>
    %cst_90 = arith.constant dense<0.000000e+00> : vector<8x8xf32>
    %129 = tpu.matmul %24, %128, %cst_90 {dimension_numbers = #tpu.dot_dimension_numbers<[1], [0], [0], [1], [0, 0, 1, 1], [], []>} : vector<8x32xbf16>, vector<32x8xbf16>, vector<8x8xf32> -> vector<8x8xf32>
    %c0_91 = arith.constant 0 : index
    %c2_92 = arith.constant 2 : index
    %c0_93 = arith.constant 0 : index
    %c0_94 = arith.constant 0 : index
    %130 = vector.load %arg12[%c0_91, %c2_92, %c0_93, %c0_94] : memref<2x4x32x8xbf16, #tpu.memory_space<vmem>>, vector<1x1x32x8xbf16>
    %131 = vector.shape_cast %130 : vector<1x1x32x8xbf16> to vector<32x8xbf16>
    %cst_95 = arith.constant dense<0.000000e+00> : vector<8x8xf32>
    %132 = tpu.matmul %24, %131, %cst_95 {dimension_numbers = #tpu.dot_dimension_numbers<[1], [0], [0], [1], [0, 0, 1, 1], [], []>} : vector<8x32xbf16>, vector<32x8xbf16>, vector<8x8xf32> -> vector<8x8xf32>
    %133 = arith.truncf %126 : vector<1x8xf32> to vector<1x8xbf16>
    %134 = arith.truncf %129 : vector<8x8xf32> to vector<8x8xbf16>
    "tpu.trace_start"() <{level = 10 : i32, message = "qd,kd->qk"}> : () -> ()
    %cst_96 = arith.constant dense<0.000000e+00> : vector<1x8xf32>
    %135 = tpu.matmul %133, %134, %cst_96 {dimension_numbers = #tpu.dot_dimension_numbers<[1], [1], [0], [0], [0, 0, 1, 0], [], []>} : vector<1x8xbf16>, vector<8x8xbf16>, vector<1x8xf32> -> vector<1x8xf32>
    "tpu.trace_stop"() : () -> ()
    %136 = arith.addf %135, %26 : vector<1x8xf32>
    %cst_97 = arith.constant dense<0xFF800000> : vector<1xf32>
    %137 = vector.multi_reduction <maximumf>, %136, %cst_97 [1] : vector<1x8xf32> to vector<1xf32>
    %138 = vector.shape_cast %137 : vector<1xf32> to vector<1x1xf32>
    %139 = vector.broadcast %138 : vector<1x1xf32> to vector<1x8xf32>
    %140 = arith.subf %136, %139 : vector<1x8xf32>
    %141 = math.exp %140 : vector<1x8xf32>
    %cst_98 = arith.constant dense<0.000000e+00> : vector<1xf32>
    %142 = vector.multi_reduction <add>, %141, %cst_98 [1] : vector<1x8xf32> to vector<1xf32>
    %143 = vector.shape_cast %142 : vector<1xf32> to vector<1x1xf32>
    %144 = tpu.reciprocal %143 {approx = true} : vector<1x1xf32> -> vector<1x1xf32>
    %145 = vector.broadcast %144 : vector<1x1xf32> to vector<1x8xf32>
    %146 = arith.mulf %141, %145 : vector<1x8xf32>
    %147 = arith.truncf %146 : vector<1x8xf32> to vector<1x8xbf16>
    %148 = arith.truncf %132 : vector<8x8xf32> to vector<8x8xbf16>
    %cst_99 = arith.constant dense<0.000000e+00> : vector<1x8xf32>
    %149 = tpu.matmul %147, %148, %cst_99 {dimension_numbers = #tpu.dot_dimension_numbers<[1], [0], [0], [1], [0, 0, 1, 1], [], []>} : vector<1x8xbf16>, vector<8x8xbf16>, vector<1x8xf32> -> vector<1x8xf32>
    %150 = arith.truncf %149 : vector<1x8xf32> to vector<1x8xbf16>
    %c0_100 = arith.constant 0 : index
    %c2_101 = arith.constant 2 : index
    %c0_102 = arith.constant 0 : index
    %c0_103 = arith.constant 0 : index
    %151 = vector.load %arg13[%c0_100, %c2_101, %c0_102, %c0_103] : memref<2x4x8x32xbf16, #tpu.memory_space<vmem>>, vector<1x1x8x32xbf16>
    %152 = vector.shape_cast %151 : vector<1x1x8x32xbf16> to vector<8x32xbf16>
    %cst_104 = arith.constant dense<0.000000e+00> : vector<1x32xf32>
    %153 = tpu.matmul %150, %152, %cst_104 {dimension_numbers = #tpu.dot_dimension_numbers<[1], [0], [0], [1], [0, 0, 1, 1], [], []>} : vector<1x8xbf16>, vector<8x32xbf16>, vector<1x32xf32> -> vector<1x32xf32>
    %154 = arith.addf %123, %153 : vector<1x32xf32>
    %c0_105 = arith.constant 0 : index
    %c3 = arith.constant 3 : index
    %c0_106 = arith.constant 0 : index
    %c0_107 = arith.constant 0 : index
    %155 = vector.load %arg10[%c0_105, %c3, %c0_106, %c0_107] : memref<2x4x32x8xbf16, #tpu.memory_space<vmem>>, vector<1x1x32x8xbf16>
    %156 = vector.shape_cast %155 : vector<1x1x32x8xbf16> to vector<32x8xbf16>
    %cst_108 = arith.constant dense<0.000000e+00> : vector<1x8xf32>
    %157 = tpu.matmul %60, %156, %cst_108 {dimension_numbers = #tpu.dot_dimension_numbers<[1], [0], [0], [1], [0, 0, 1, 1], [], []>} : vector<1x32xbf16>, vector<32x8xbf16>, vector<1x8xf32> -> vector<1x8xf32>
    %c0_109 = arith.constant 0 : index
    %c3_110 = arith.constant 3 : index
    %c0_111 = arith.constant 0 : index
    %c0_112 = arith.constant 0 : index
    %158 = vector.load %arg11[%c0_109, %c3_110, %c0_111, %c0_112] : memref<2x4x32x8xbf16, #tpu.memory_space<vmem>>, vector<1x1x32x8xbf16>
    %159 = vector.shape_cast %158 : vector<1x1x32x8xbf16> to vector<32x8xbf16>
    %cst_113 = arith.constant dense<0.000000e+00> : vector<8x8xf32>
    %160 = tpu.matmul %24, %159, %cst_113 {dimension_numbers = #tpu.dot_dimension_numbers<[1], [0], [0], [1], [0, 0, 1, 1], [], []>} : vector<8x32xbf16>, vector<32x8xbf16>, vector<8x8xf32> -> vector<8x8xf32>
    %c0_114 = arith.constant 0 : index
    %c3_115 = arith.constant 3 : index
    %c0_116 = arith.constant 0 : index
    %c0_117 = arith.constant 0 : index
    %161 = vector.load %arg12[%c0_114, %c3_115, %c0_116, %c0_117] : memref<2x4x32x8xbf16, #tpu.memory_space<vmem>>, vector<1x1x32x8xbf16>
    %162 = vector.shape_cast %161 : vector<1x1x32x8xbf16> to vector<32x8xbf16>
    %cst_118 = arith.constant dense<0.000000e+00> : vector<8x8xf32>
    %163 = tpu.matmul %24, %162, %cst_118 {dimension_numbers = #tpu.dot_dimension_numbers<[1], [0], [0], [1], [0, 0, 1, 1], [], []>} : vector<8x32xbf16>, vector<32x8xbf16>, vector<8x8xf32> -> vector<8x8xf32>
    %164 = arith.truncf %157 : vector<1x8xf32> to vector<1x8xbf16>
    %165 = arith.truncf %160 : vector<8x8xf32> to vector<8x8xbf16>
    "tpu.trace_start"() <{level = 10 : i32, message = "qd,kd->qk"}> : () -> ()
    %cst_119 = arith.constant dense<0.000000e+00> : vector<1x8xf32>
    %166 = tpu.matmul %164, %165, %cst_119 {dimension_numbers = #tpu.dot_dimension_numbers<[1], [1], [0], [0], [0, 0, 1, 0], [], []>} : vector<1x8xbf16>, vector<8x8xbf16>, vector<1x8xf32> -> vector<1x8xf32>
    "tpu.trace_stop"() : () -> ()
    %167 = arith.addf %166, %26 : vector<1x8xf32>
    %cst_120 = arith.constant dense<0xFF800000> : vector<1xf32>
    %168 = vector.multi_reduction <maximumf>, %167, %cst_120 [1] : vector<1x8xf32> to vector<1xf32>
    %169 = vector.shape_cast %168 : vector<1xf32> to vector<1x1xf32>
    %170 = vector.broadcast %169 : vector<1x1xf32> to vector<1x8xf32>
    %171 = arith.subf %167, %170 : vector<1x8xf32>
    %172 = math.exp %171 : vector<1x8xf32>
    %cst_121 = arith.constant dense<0.000000e+00> : vector<1xf32>
    %173 = vector.multi_reduction <add>, %172, %cst_121 [1] : vector<1x8xf32> to vector<1xf32>
    %174 = vector.shape_cast %173 : vector<1xf32> to vector<1x1xf32>
    %175 = tpu.reciprocal %174 {approx = true} : vector<1x1xf32> -> vector<1x1xf32>
    %176 = vector.broadcast %175 : vector<1x1xf32> to vector<1x8xf32>
    %177 = arith.mulf %172, %176 : vector<1x8xf32>
    %178 = arith.truncf %177 : vector<1x8xf32> to vector<1x8xbf16>
    %179 = arith.truncf %163 : vector<8x8xf32> to vector<8x8xbf16>
    %cst_122 = arith.constant dense<0.000000e+00> : vector<1x8xf32>
    %180 = tpu.matmul %178, %179, %cst_122 {dimension_numbers = #tpu.dot_dimension_numbers<[1], [0], [0], [1], [0, 0, 1, 1], [], []>} : vector<1x8xbf16>, vector<8x8xbf16>, vector<1x8xf32> -> vector<1x8xf32>
    %181 = arith.truncf %180 : vector<1x8xf32> to vector<1x8xbf16>
    %c0_123 = arith.constant 0 : index
    %c3_124 = arith.constant 3 : index
    %c0_125 = arith.constant 0 : index
    %c0_126 = arith.constant 0 : index
    %182 = vector.load %arg13[%c0_123, %c3_124, %c0_125, %c0_126] : memref<2x4x8x32xbf16, #tpu.memory_space<vmem>>, vector<1x1x8x32xbf16>
    %183 = vector.shape_cast %182 : vector<1x1x8x32xbf16> to vector<8x32xbf16>
    %cst_127 = arith.constant dense<0.000000e+00> : vector<1x32xf32>
    %184 = tpu.matmul %181, %183, %cst_127 {dimension_numbers = #tpu.dot_dimension_numbers<[1], [0], [0], [1], [0, 0, 1, 1], [], []>} : vector<1x8xbf16>, vector<8x32xbf16>, vector<1x32xf32> -> vector<1x32xf32>
    %185 = arith.addf %154, %184 : vector<1x32xf32>
    %186 = arith.addf %185, %59 : vector<1x32xf32>
    %c0_128 = arith.constant 0 : index
    %c0_129 = arith.constant 0 : index
    %c0_130 = arith.constant 0 : index
    %187 = vector.load %arg14[%c0_128, %c0_129, %c0_130] : memref<2x1x32xf32, #tpu.memory_space<vmem>>, vector<1x1x32xf32>
    %188 = vector.shape_cast %187 : vector<1x1x32xf32> to vector<1x32xf32>
    %c0_131 = arith.constant 0 : index
    %c0_132 = arith.constant 0 : index
    %c0_133 = arith.constant 0 : index
    %189 = vector.load %arg15[%c0_131, %c0_132, %c0_133] : memref<2x1x32xf32, #tpu.memory_space<vmem>>, vector<1x1x32xf32>
    %190 = vector.shape_cast %189 : vector<1x1x32xf32> to vector<1x32xf32>
    %cst_134 = arith.constant dense<0.000000e+00> : vector<1xf32>
    %191 = vector.multi_reduction <add>, %186, %cst_134 [1] : vector<1x32xf32> to vector<1xf32>
    %192 = vector.shape_cast %191 : vector<1xf32> to vector<1x1xf32>
    %cst_135 = arith.constant 3.200000e+01 : f32
    %193 = vector.broadcast %cst_135 : f32 to vector<1x1xf32>
    %194 = arith.divf %192, %193 : vector<1x1xf32>
    %195 = vector.broadcast %194 : vector<1x1xf32> to vector<1x32xf32>
    %196 = arith.subf %186, %195 : vector<1x32xf32>
    %197 = arith.mulf %196, %196 : vector<1x32xf32>
    %cst_136 = arith.constant dense<0.000000e+00> : vector<1xf32>
    %198 = vector.multi_reduction <add>, %197, %cst_136 [1] : vector<1x32xf32> to vector<1xf32>
    %199 = vector.shape_cast %198 : vector<1xf32> to vector<1x1xf32>
    %cst_137 = arith.constant 3.200000e+01 : f32
    %200 = vector.broadcast %cst_137 : f32 to vector<1x1xf32>
    %201 = arith.divf %199, %200 : vector<1x1xf32>
    %202 = vector.broadcast %194 : vector<1x1xf32> to vector<1x32xf32>
    %203 = arith.subf %186, %202 : vector<1x32xf32>
    %cst_138 = arith.constant 9.99999997E-7 : f32
    %204 = vector.broadcast %cst_138 : f32 to vector<1x1xf32>
    %205 = arith.addf %201, %204 : vector<1x1xf32>
    %206 = math.rsqrt %205 : vector<1x1xf32>
    %207 = vector.broadcast %206 : vector<1x1xf32> to vector<1x32xf32>
    %208 = arith.mulf %203, %207 : vector<1x32xf32>
    %209 = arith.mulf %208, %188 : vector<1x32xf32>
    %210 = arith.addf %209, %190 : vector<1x32xf32>
    %211 = arith.truncf %210 : vector<1x32xf32> to vector<1x32xbf16>
    %c0_139 = arith.constant 0 : index
    %c0_140 = arith.constant 0 : index
    %c0_141 = arith.constant 0 : index
    %212 = vector.load %arg16[%c0_139, %c0_140, %c0_141] : memref<2x32x64xbf16, #tpu.memory_space<vmem>>, vector<1x32x64xbf16>
    %213 = vector.shape_cast %212 : vector<1x32x64xbf16> to vector<32x64xbf16>
    %cst_142 = arith.constant dense<0.000000e+00> : vector<1x64xf32>
    %214 = tpu.matmul %211, %213, %cst_142 {dimension_numbers = #tpu.dot_dimension_numbers<[1], [0], [0], [1], [0, 0, 1, 1], [], []>} : vector<1x32xbf16>, vector<32x64xbf16>, vector<1x64xf32> -> vector<1x64xf32>
    %c0_143 = arith.constant 0 : index
    %c0_144 = arith.constant 0 : index
    %c0_145 = arith.constant 0 : index
    %215 = vector.load %arg17[%c0_143, %c0_144, %c0_145] : memref<2x1x64xf32, #tpu.memory_space<vmem>>, vector<1x1x64xf32>
    %216 = vector.shape_cast %215 : vector<1x1x64xf32> to vector<1x64xf32>
    %217 = arith.addf %214, %216 : vector<1x64xf32>
    %cst_146 = arith.constant 0.000000e+00 : f32
    %218 = vector.broadcast %cst_146 : f32 to vector<1x64xf32>
    %219 = arith.maximumf %217, %218 : vector<1x64xf32>
    %220 = arith.truncf %219 : vector<1x64xf32> to vector<1x64xbf16>
    %c0_147 = arith.constant 0 : index
    %c0_148 = arith.constant 0 : index
    %c0_149 = arith.constant 0 : index
    %221 = vector.load %arg18[%c0_147, %c0_148, %c0_149] : memref<2x64x32xbf16, #tpu.memory_space<vmem>>, vector<1x64x32xbf16>
    %222 = vector.shape_cast %221 : vector<1x64x32xbf16> to vector<64x32xbf16>
    %cst_150 = arith.constant dense<0.000000e+00> : vector<1x32xf32>
    %223 = tpu.matmul %220, %222, %cst_150 {dimension_numbers = #tpu.dot_dimension_numbers<[1], [0], [0], [1], [0, 0, 1, 1], [], []>} : vector<1x64xbf16>, vector<64x32xbf16>, vector<1x32xf32> -> vector<1x32xf32>
    %c0_151 = arith.constant 0 : index
    %c0_152 = arith.constant 0 : index
    %c0_153 = arith.constant 0 : index
    %224 = vector.load %arg19[%c0_151, %c0_152, %c0_153] : memref<2x1x32xf32, #tpu.memory_space<vmem>>, vector<1x1x32xf32>
    %225 = vector.shape_cast %224 : vector<1x1x32xf32> to vector<1x32xf32>
    %226 = arith.addf %223, %225 : vector<1x32xf32>
    %227 = arith.addf %226, %210 : vector<1x32xf32>
    %c0_154 = arith.constant 0 : index
    %c0_155 = arith.constant 0 : index
    %c0_156 = arith.constant 0 : index
    %228 = vector.load %arg20[%c0_154, %c0_155, %c0_156] : memref<2x1x32xf32, #tpu.memory_space<vmem>>, vector<1x1x32xf32>
    %229 = vector.shape_cast %228 : vector<1x1x32xf32> to vector<1x32xf32>
    %c0_157 = arith.constant 0 : index
    %c0_158 = arith.constant 0 : index
    %c0_159 = arith.constant 0 : index
    %230 = vector.load %arg21[%c0_157, %c0_158, %c0_159] : memref<2x1x32xf32, #tpu.memory_space<vmem>>, vector<1x1x32xf32>
    %231 = vector.shape_cast %230 : vector<1x1x32xf32> to vector<1x32xf32>
    %cst_160 = arith.constant dense<0.000000e+00> : vector<1xf32>
    %232 = vector.multi_reduction <add>, %227, %cst_160 [1] : vector<1x32xf32> to vector<1xf32>
    %233 = vector.shape_cast %232 : vector<1xf32> to vector<1x1xf32>
    %cst_161 = arith.constant 3.200000e+01 : f32
    %234 = vector.broadcast %cst_161 : f32 to vector<1x1xf32>
    %235 = arith.divf %233, %234 : vector<1x1xf32>
    %236 = vector.broadcast %235 : vector<1x1xf32> to vector<1x32xf32>
    %237 = arith.subf %227, %236 : vector<1x32xf32>
    %238 = arith.mulf %237, %237 : vector<1x32xf32>
    %cst_162 = arith.constant dense<0.000000e+00> : vector<1xf32>
    %239 = vector.multi_reduction <add>, %238, %cst_162 [1] : vector<1x32xf32> to vector<1xf32>
    %240 = vector.shape_cast %239 : vector<1xf32> to vector<1x1xf32>
    %cst_163 = arith.constant 3.200000e+01 : f32
    %241 = vector.broadcast %cst_163 : f32 to vector<1x1xf32>
    %242 = arith.divf %240, %241 : vector<1x1xf32>
    %243 = vector.broadcast %235 : vector<1x1xf32> to vector<1x32xf32>
    %244 = arith.subf %227, %243 : vector<1x32xf32>
    %cst_164 = arith.constant 9.99999997E-7 : f32
    %245 = vector.broadcast %cst_164 : f32 to vector<1x1xf32>
    %246 = arith.addf %242, %245 : vector<1x1xf32>
    %247 = math.rsqrt %246 : vector<1x1xf32>
    %248 = vector.broadcast %247 : vector<1x1xf32> to vector<1x32xf32>
    %249 = arith.mulf %244, %248 : vector<1x32xf32>
    %250 = arith.mulf %249, %229 : vector<1x32xf32>
    %251 = arith.addf %250, %231 : vector<1x32xf32>
    %252 = arith.truncf %251 : vector<1x32xf32> to vector<1x32xbf16>
    %c1_165 = arith.constant 1 : index
    %c0_166 = arith.constant 0 : index
    %c0_167 = arith.constant 0 : index
    %253 = vector.load %arg6[%c1_165, %c0_166, %c0_167] : memref<2x32x32xbf16, #tpu.memory_space<vmem>>, vector<1x32x32xbf16>
    %254 = vector.shape_cast %253 : vector<1x32x32xbf16> to vector<32x32xbf16>
    %cst_168 = arith.constant dense<0.000000e+00> : vector<1x32xf32>
    %255 = tpu.matmul %252, %254, %cst_168 {dimension_numbers = #tpu.dot_dimension_numbers<[1], [0], [0], [1], [0, 0, 1, 1], [], []>} : vector<1x32xbf16>, vector<32x32xbf16>, vector<1x32xf32> -> vector<1x32xf32>
    %256 = arith.truncf %255 : vector<1x32xf32> to vector<1x32xbf16>
    %c1_169 = arith.constant 1 : index
    %c0_170 = arith.constant 0 : index
    %c0_171 = arith.constant 0 : index
    %257 = vector.load %arg7[%c1_169, %c0_170, %c0_171] : memref<2x32x32xbf16, #tpu.memory_space<vmem>>, vector<1x32x32xbf16>
    %258 = vector.shape_cast %257 : vector<1x32x32xbf16> to vector<32x32xbf16>
    %cst_172 = arith.constant dense<0.000000e+00> : vector<1x32xf32>
    %259 = tpu.matmul %256, %258, %cst_172 {dimension_numbers = #tpu.dot_dimension_numbers<[1], [0], [0], [1], [0, 0, 1, 1], [], []>} : vector<1x32xbf16>, vector<32x32xbf16>, vector<1x32xf32> -> vector<1x32xf32>
    %260 = arith.addf %259, %251 : vector<1x32xf32>
    %c1_173 = arith.constant 1 : index
    %c0_174 = arith.constant 0 : index
    %c0_175 = arith.constant 0 : index
    %261 = vector.load %arg8[%c1_173, %c0_174, %c0_175] : memref<2x1x32xf32, #tpu.memory_space<vmem>>, vector<1x1x32xf32>
    %262 = vector.shape_cast %261 : vector<1x1x32xf32> to vector<1x32xf32>
    %c1_176 = arith.constant 1 : index
    %c0_177 = arith.constant 0 : index
    %c0_178 = arith.constant 0 : index
    %263 = vector.load %arg9[%c1_176, %c0_177, %c0_178] : memref<2x1x32xf32, #tpu.memory_space<vmem>>, vector<1x1x32xf32>
    %264 = vector.shape_cast %263 : vector<1x1x32xf32> to vector<1x32xf32>
    %cst_179 = arith.constant dense<0.000000e+00> : vector<1xf32>
    %265 = vector.multi_reduction <add>, %260, %cst_179 [1] : vector<1x32xf32> to vector<1xf32>
    %266 = vector.shape_cast %265 : vector<1xf32> to vector<1x1xf32>
    %cst_180 = arith.constant 3.200000e+01 : f32
    %267 = vector.broadcast %cst_180 : f32 to vector<1x1xf32>
    %268 = arith.divf %266, %267 : vector<1x1xf32>
    %269 = vector.broadcast %268 : vector<1x1xf32> to vector<1x32xf32>
    %270 = arith.subf %260, %269 : vector<1x32xf32>
    %271 = arith.mulf %270, %270 : vector<1x32xf32>
    %cst_181 = arith.constant dense<0.000000e+00> : vector<1xf32>
    %272 = vector.multi_reduction <add>, %271, %cst_181 [1] : vector<1x32xf32> to vector<1xf32>
    %273 = vector.shape_cast %272 : vector<1xf32> to vector<1x1xf32>
    %cst_182 = arith.constant 3.200000e+01 : f32
    %274 = vector.broadcast %cst_182 : f32 to vector<1x1xf32>
    %275 = arith.divf %273, %274 : vector<1x1xf32>
    %276 = vector.broadcast %268 : vector<1x1xf32> to vector<1x32xf32>
    %277 = arith.subf %260, %276 : vector<1x32xf32>
    %cst_183 = arith.constant 9.99999997E-7 : f32
    %278 = vector.broadcast %cst_183 : f32 to vector<1x1xf32>
    %279 = arith.addf %275, %278 : vector<1x1xf32>
    %280 = math.rsqrt %279 : vector<1x1xf32>
    %281 = vector.broadcast %280 : vector<1x1xf32> to vector<1x32xf32>
    %282 = arith.mulf %277, %281 : vector<1x32xf32>
    %283 = arith.mulf %282, %262 : vector<1x32xf32>
    %284 = arith.addf %283, %264 : vector<1x32xf32>
    %285 = arith.truncf %284 : vector<1x32xf32> to vector<1x32xbf16>
    %cst_184 = arith.constant 0.000000e+00 : f32
    %286 = vector.broadcast %cst_184 : f32 to vector<1x32xf32>
    %c1_185 = arith.constant 1 : index
    %c0_186 = arith.constant 0 : index
    %c0_187 = arith.constant 0 : index
    %c0_188 = arith.constant 0 : index
    %287 = vector.load %arg10[%c1_185, %c0_186, %c0_187, %c0_188] : memref<2x4x32x8xbf16, #tpu.memory_space<vmem>>, vector<1x1x32x8xbf16>
    %288 = vector.shape_cast %287 : vector<1x1x32x8xbf16> to vector<32x8xbf16>
    %cst_189 = arith.constant dense<0.000000e+00> : vector<1x8xf32>
    %289 = tpu.matmul %285, %288, %cst_189 {dimension_numbers = #tpu.dot_dimension_numbers<[1], [0], [0], [1], [0, 0, 1, 1], [], []>} : vector<1x32xbf16>, vector<32x8xbf16>, vector<1x8xf32> -> vector<1x8xf32>
    %c1_190 = arith.constant 1 : index
    %c0_191 = arith.constant 0 : index
    %c0_192 = arith.constant 0 : index
    %c0_193 = arith.constant 0 : index
    %290 = vector.load %arg11[%c1_190, %c0_191, %c0_192, %c0_193] : memref<2x4x32x8xbf16, #tpu.memory_space<vmem>>, vector<1x1x32x8xbf16>
    %291 = vector.shape_cast %290 : vector<1x1x32x8xbf16> to vector<32x8xbf16>
    %cst_194 = arith.constant dense<0.000000e+00> : vector<8x8xf32>
    %292 = tpu.matmul %24, %291, %cst_194 {dimension_numbers = #tpu.dot_dimension_numbers<[1], [0], [0], [1], [0, 0, 1, 1], [], []>} : vector<8x32xbf16>, vector<32x8xbf16>, vector<8x8xf32> -> vector<8x8xf32>
    %c1_195 = arith.constant 1 : index
    %c0_196 = arith.constant 0 : index
    %c0_197 = arith.constant 0 : index
    %c0_198 = arith.constant 0 : index
    %293 = vector.load %arg12[%c1_195, %c0_196, %c0_197, %c0_198] : memref<2x4x32x8xbf16, #tpu.memory_space<vmem>>, vector<1x1x32x8xbf16>
    %294 = vector.shape_cast %293 : vector<1x1x32x8xbf16> to vector<32x8xbf16>
    %cst_199 = arith.constant dense<0.000000e+00> : vector<8x8xf32>
    %295 = tpu.matmul %24, %294, %cst_199 {dimension_numbers = #tpu.dot_dimension_numbers<[1], [0], [0], [1], [0, 0, 1, 1], [], []>} : vector<8x32xbf16>, vector<32x8xbf16>, vector<8x8xf32> -> vector<8x8xf32>
    %296 = arith.truncf %289 : vector<1x8xf32> to vector<1x8xbf16>
    %297 = arith.truncf %292 : vector<8x8xf32> to vector<8x8xbf16>
    "tpu.trace_start"() <{level = 10 : i32, message = "qd,kd->qk"}> : () -> ()
    %cst_200 = arith.constant dense<0.000000e+00> : vector<1x8xf32>
    %298 = tpu.matmul %296, %297, %cst_200 {dimension_numbers = #tpu.dot_dimension_numbers<[1], [1], [0], [0], [0, 0, 1, 0], [], []>} : vector<1x8xbf16>, vector<8x8xbf16>, vector<1x8xf32> -> vector<1x8xf32>
    "tpu.trace_stop"() : () -> ()
    %299 = arith.addf %298, %26 : vector<1x8xf32>
    %cst_201 = arith.constant dense<0xFF800000> : vector<1xf32>
    %300 = vector.multi_reduction <maximumf>, %299, %cst_201 [1] : vector<1x8xf32> to vector<1xf32>
    %301 = vector.shape_cast %300 : vector<1xf32> to vector<1x1xf32>
    %302 = vector.broadcast %301 : vector<1x1xf32> to vector<1x8xf32>
    %303 = arith.subf %299, %302 : vector<1x8xf32>
    %304 = math.exp %303 : vector<1x8xf32>
    %cst_202 = arith.constant dense<0.000000e+00> : vector<1xf32>
    %305 = vector.multi_reduction <add>, %304, %cst_202 [1] : vector<1x8xf32> to vector<1xf32>
    %306 = vector.shape_cast %305 : vector<1xf32> to vector<1x1xf32>
    %307 = tpu.reciprocal %306 {approx = true} : vector<1x1xf32> -> vector<1x1xf32>
    %308 = vector.broadcast %307 : vector<1x1xf32> to vector<1x8xf32>
    %309 = arith.mulf %304, %308 : vector<1x8xf32>
    %310 = arith.truncf %309 : vector<1x8xf32> to vector<1x8xbf16>
    %311 = arith.truncf %295 : vector<8x8xf32> to vector<8x8xbf16>
    %cst_203 = arith.constant dense<0.000000e+00> : vector<1x8xf32>
    %312 = tpu.matmul %310, %311, %cst_203 {dimension_numbers = #tpu.dot_dimension_numbers<[1], [0], [0], [1], [0, 0, 1, 1], [], []>} : vector<1x8xbf16>, vector<8x8xbf16>, vector<1x8xf32> -> vector<1x8xf32>
    %313 = arith.truncf %312 : vector<1x8xf32> to vector<1x8xbf16>
    %c1_204 = arith.constant 1 : index
    %c0_205 = arith.constant 0 : index
    %c0_206 = arith.constant 0 : index
    %c0_207 = arith.constant 0 : index
    %314 = vector.load %arg13[%c1_204, %c0_205, %c0_206, %c0_207] : memref<2x4x8x32xbf16, #tpu.memory_space<vmem>>, vector<1x1x8x32xbf16>
    %315 = vector.shape_cast %314 : vector<1x1x8x32xbf16> to vector<8x32xbf16>
    %cst_208 = arith.constant dense<0.000000e+00> : vector<1x32xf32>
    %316 = tpu.matmul %313, %315, %cst_208 {dimension_numbers = #tpu.dot_dimension_numbers<[1], [0], [0], [1], [0, 0, 1, 1], [], []>} : vector<1x8xbf16>, vector<8x32xbf16>, vector<1x32xf32> -> vector<1x32xf32>
    %317 = arith.addf %286, %316 : vector<1x32xf32>
    %c1_209 = arith.constant 1 : index
    %c1_210 = arith.constant 1 : index
    %c0_211 = arith.constant 0 : index
    %c0_212 = arith.constant 0 : index
    %318 = vector.load %arg10[%c1_209, %c1_210, %c0_211, %c0_212] : memref<2x4x32x8xbf16, #tpu.memory_space<vmem>>, vector<1x1x32x8xbf16>
    %319 = vector.shape_cast %318 : vector<1x1x32x8xbf16> to vector<32x8xbf16>
    %cst_213 = arith.constant dense<0.000000e+00> : vector<1x8xf32>
    %320 = tpu.matmul %285, %319, %cst_213 {dimension_numbers = #tpu.dot_dimension_numbers<[1], [0], [0], [1], [0, 0, 1, 1], [], []>} : vector<1x32xbf16>, vector<32x8xbf16>, vector<1x8xf32> -> vector<1x8xf32>
    %c1_214 = arith.constant 1 : index
    %c1_215 = arith.constant 1 : index
    %c0_216 = arith.constant 0 : index
    %c0_217 = arith.constant 0 : index
    %321 = vector.load %arg11[%c1_214, %c1_215, %c0_216, %c0_217] : memref<2x4x32x8xbf16, #tpu.memory_space<vmem>>, vector<1x1x32x8xbf16>
    %322 = vector.shape_cast %321 : vector<1x1x32x8xbf16> to vector<32x8xbf16>
    %cst_218 = arith.constant dense<0.000000e+00> : vector<8x8xf32>
    %323 = tpu.matmul %24, %322, %cst_218 {dimension_numbers = #tpu.dot_dimension_numbers<[1], [0], [0], [1], [0, 0, 1, 1], [], []>} : vector<8x32xbf16>, vector<32x8xbf16>, vector<8x8xf32> -> vector<8x8xf32>
    %c1_219 = arith.constant 1 : index
    %c1_220 = arith.constant 1 : index
    %c0_221 = arith.constant 0 : index
    %c0_222 = arith.constant 0 : index
    %324 = vector.load %arg12[%c1_219, %c1_220, %c0_221, %c0_222] : memref<2x4x32x8xbf16, #tpu.memory_space<vmem>>, vector<1x1x32x8xbf16>
    %325 = vector.shape_cast %324 : vector<1x1x32x8xbf16> to vector<32x8xbf16>
    %cst_223 = arith.constant dense<0.000000e+00> : vector<8x8xf32>
    %326 = tpu.matmul %24, %325, %cst_223 {dimension_numbers = #tpu.dot_dimension_numbers<[1], [0], [0], [1], [0, 0, 1, 1], [], []>} : vector<8x32xbf16>, vector<32x8xbf16>, vector<8x8xf32> -> vector<8x8xf32>
    %327 = arith.truncf %320 : vector<1x8xf32> to vector<1x8xbf16>
    %328 = arith.truncf %323 : vector<8x8xf32> to vector<8x8xbf16>
    "tpu.trace_start"() <{level = 10 : i32, message = "qd,kd->qk"}> : () -> ()
    %cst_224 = arith.constant dense<0.000000e+00> : vector<1x8xf32>
    %329 = tpu.matmul %327, %328, %cst_224 {dimension_numbers = #tpu.dot_dimension_numbers<[1], [1], [0], [0], [0, 0, 1, 0], [], []>} : vector<1x8xbf16>, vector<8x8xbf16>, vector<1x8xf32> -> vector<1x8xf32>
    "tpu.trace_stop"() : () -> ()
    %330 = arith.addf %329, %26 : vector<1x8xf32>
    %cst_225 = arith.constant dense<0xFF800000> : vector<1xf32>
    %331 = vector.multi_reduction <maximumf>, %330, %cst_225 [1] : vector<1x8xf32> to vector<1xf32>
    %332 = vector.shape_cast %331 : vector<1xf32> to vector<1x1xf32>
    %333 = vector.broadcast %332 : vector<1x1xf32> to vector<1x8xf32>
    %334 = arith.subf %330, %333 : vector<1x8xf32>
    %335 = math.exp %334 : vector<1x8xf32>
    %cst_226 = arith.constant dense<0.000000e+00> : vector<1xf32>
    %336 = vector.multi_reduction <add>, %335, %cst_226 [1] : vector<1x8xf32> to vector<1xf32>
    %337 = vector.shape_cast %336 : vector<1xf32> to vector<1x1xf32>
    %338 = tpu.reciprocal %337 {approx = true} : vector<1x1xf32> -> vector<1x1xf32>
    %339 = vector.broadcast %338 : vector<1x1xf32> to vector<1x8xf32>
    %340 = arith.mulf %335, %339 : vector<1x8xf32>
    %341 = arith.truncf %340 : vector<1x8xf32> to vector<1x8xbf16>
    %342 = arith.truncf %326 : vector<8x8xf32> to vector<8x8xbf16>
    %cst_227 = arith.constant dense<0.000000e+00> : vector<1x8xf32>
    %343 = tpu.matmul %341, %342, %cst_227 {dimension_numbers = #tpu.dot_dimension_numbers<[1], [0], [0], [1], [0, 0, 1, 1], [], []>} : vector<1x8xbf16>, vector<8x8xbf16>, vector<1x8xf32> -> vector<1x8xf32>
    %344 = arith.truncf %343 : vector<1x8xf32> to vector<1x8xbf16>
    %c1_228 = arith.constant 1 : index
    %c1_229 = arith.constant 1 : index
    %c0_230 = arith.constant 0 : index
    %c0_231 = arith.constant 0 : index
    %345 = vector.load %arg13[%c1_228, %c1_229, %c0_230, %c0_231] : memref<2x4x8x32xbf16, #tpu.memory_space<vmem>>, vector<1x1x8x32xbf16>
    %346 = vector.shape_cast %345 : vector<1x1x8x32xbf16> to vector<8x32xbf16>
    %cst_232 = arith.constant dense<0.000000e+00> : vector<1x32xf32>
    %347 = tpu.matmul %344, %346, %cst_232 {dimension_numbers = #tpu.dot_dimension_numbers<[1], [0], [0], [1], [0, 0, 1, 1], [], []>} : vector<1x8xbf16>, vector<8x32xbf16>, vector<1x32xf32> -> vector<1x32xf32>
    %348 = arith.addf %317, %347 : vector<1x32xf32>
    %c1_233 = arith.constant 1 : index
    %c2_234 = arith.constant 2 : index
    %c0_235 = arith.constant 0 : index
    %c0_236 = arith.constant 0 : index
    %349 = vector.load %arg10[%c1_233, %c2_234, %c0_235, %c0_236] : memref<2x4x32x8xbf16, #tpu.memory_space<vmem>>, vector<1x1x32x8xbf16>
    %350 = vector.shape_cast %349 : vector<1x1x32x8xbf16> to vector<32x8xbf16>
    %cst_237 = arith.constant dense<0.000000e+00> : vector<1x8xf32>
    %351 = tpu.matmul %285, %350, %cst_237 {dimension_numbers = #tpu.dot_dimension_numbers<[1], [0], [0], [1], [0, 0, 1, 1], [], []>} : vector<1x32xbf16>, vector<32x8xbf16>, vector<1x8xf32> -> vector<1x8xf32>
    %c1_238 = arith.constant 1 : index
    %c2_239 = arith.constant 2 : index
    %c0_240 = arith.constant 0 : index
    %c0_241 = arith.constant 0 : index
    %352 = vector.load %arg11[%c1_238, %c2_239, %c0_240, %c0_241] : memref<2x4x32x8xbf16, #tpu.memory_space<vmem>>, vector<1x1x32x8xbf16>
    %353 = vector.shape_cast %352 : vector<1x1x32x8xbf16> to vector<32x8xbf16>
    %cst_242 = arith.constant dense<0.000000e+00> : vector<8x8xf32>
    %354 = tpu.matmul %24, %353, %cst_242 {dimension_numbers = #tpu.dot_dimension_numbers<[1], [0], [0], [1], [0, 0, 1, 1], [], []>} : vector<8x32xbf16>, vector<32x8xbf16>, vector<8x8xf32> -> vector<8x8xf32>
    %c1_243 = arith.constant 1 : index
    %c2_244 = arith.constant 2 : index
    %c0_245 = arith.constant 0 : index
    %c0_246 = arith.constant 0 : index
    %355 = vector.load %arg12[%c1_243, %c2_244, %c0_245, %c0_246] : memref<2x4x32x8xbf16, #tpu.memory_space<vmem>>, vector<1x1x32x8xbf16>
    %356 = vector.shape_cast %355 : vector<1x1x32x8xbf16> to vector<32x8xbf16>
    %cst_247 = arith.constant dense<0.000000e+00> : vector<8x8xf32>
    %357 = tpu.matmul %24, %356, %cst_247 {dimension_numbers = #tpu.dot_dimension_numbers<[1], [0], [0], [1], [0, 0, 1, 1], [], []>} : vector<8x32xbf16>, vector<32x8xbf16>, vector<8x8xf32> -> vector<8x8xf32>
    %358 = arith.truncf %351 : vector<1x8xf32> to vector<1x8xbf16>
    %359 = arith.truncf %354 : vector<8x8xf32> to vector<8x8xbf16>
    "tpu.trace_start"() <{level = 10 : i32, message = "qd,kd->qk"}> : () -> ()
    %cst_248 = arith.constant dense<0.000000e+00> : vector<1x8xf32>
    %360 = tpu.matmul %358, %359, %cst_248 {dimension_numbers = #tpu.dot_dimension_numbers<[1], [1], [0], [0], [0, 0, 1, 0], [], []>} : vector<1x8xbf16>, vector<8x8xbf16>, vector<1x8xf32> -> vector<1x8xf32>
    "tpu.trace_stop"() : () -> ()
    %361 = arith.addf %360, %26 : vector<1x8xf32>
    %cst_249 = arith.constant dense<0xFF800000> : vector<1xf32>
    %362 = vector.multi_reduction <maximumf>, %361, %cst_249 [1] : vector<1x8xf32> to vector<1xf32>
    %363 = vector.shape_cast %362 : vector<1xf32> to vector<1x1xf32>
    %364 = vector.broadcast %363 : vector<1x1xf32> to vector<1x8xf32>
    %365 = arith.subf %361, %364 : vector<1x8xf32>
    %366 = math.exp %365 : vector<1x8xf32>
    %cst_250 = arith.constant dense<0.000000e+00> : vector<1xf32>
    %367 = vector.multi_reduction <add>, %366, %cst_250 [1] : vector<1x8xf32> to vector<1xf32>
    %368 = vector.shape_cast %367 : vector<1xf32> to vector<1x1xf32>
    %369 = tpu.reciprocal %368 {approx = true} : vector<1x1xf32> -> vector<1x1xf32>
    %370 = vector.broadcast %369 : vector<1x1xf32> to vector<1x8xf32>
    %371 = arith.mulf %366, %370 : vector<1x8xf32>
    %372 = arith.truncf %371 : vector<1x8xf32> to vector<1x8xbf16>
    %373 = arith.truncf %357 : vector<8x8xf32> to vector<8x8xbf16>
    %cst_251 = arith.constant dense<0.000000e+00> : vector<1x8xf32>
    %374 = tpu.matmul %372, %373, %cst_251 {dimension_numbers = #tpu.dot_dimension_numbers<[1], [0], [0], [1], [0, 0, 1, 1], [], []>} : vector<1x8xbf16>, vector<8x8xbf16>, vector<1x8xf32> -> vector<1x8xf32>
    %375 = arith.truncf %374 : vector<1x8xf32> to vector<1x8xbf16>
    %c1_252 = arith.constant 1 : index
    %c2_253 = arith.constant 2 : index
    %c0_254 = arith.constant 0 : index
    %c0_255 = arith.constant 0 : index
    %376 = vector.load %arg13[%c1_252, %c2_253, %c0_254, %c0_255] : memref<2x4x8x32xbf16, #tpu.memory_space<vmem>>, vector<1x1x8x32xbf16>
    %377 = vector.shape_cast %376 : vector<1x1x8x32xbf16> to vector<8x32xbf16>
    %cst_256 = arith.constant dense<0.000000e+00> : vector<1x32xf32>
    %378 = tpu.matmul %375, %377, %cst_256 {dimension_numbers = #tpu.dot_dimension_numbers<[1], [0], [0], [1], [0, 0, 1, 1], [], []>} : vector<1x8xbf16>, vector<8x32xbf16>, vector<1x32xf32> -> vector<1x32xf32>
    %379 = arith.addf %348, %378 : vector<1x32xf32>
    %c1_257 = arith.constant 1 : index
    %c3_258 = arith.constant 3 : index
    %c0_259 = arith.constant 0 : index
    %c0_260 = arith.constant 0 : index
    %380 = vector.load %arg10[%c1_257, %c3_258, %c0_259, %c0_260] : memref<2x4x32x8xbf16, #tpu.memory_space<vmem>>, vector<1x1x32x8xbf16>
    %381 = vector.shape_cast %380 : vector<1x1x32x8xbf16> to vector<32x8xbf16>
    %cst_261 = arith.constant dense<0.000000e+00> : vector<1x8xf32>
    %382 = tpu.matmul %285, %381, %cst_261 {dimension_numbers = #tpu.dot_dimension_numbers<[1], [0], [0], [1], [0, 0, 1, 1], [], []>} : vector<1x32xbf16>, vector<32x8xbf16>, vector<1x8xf32> -> vector<1x8xf32>
    %c1_262 = arith.constant 1 : index
    %c3_263 = arith.constant 3 : index
    %c0_264 = arith.constant 0 : index
    %c0_265 = arith.constant 0 : index
    %383 = vector.load %arg11[%c1_262, %c3_263, %c0_264, %c0_265] : memref<2x4x32x8xbf16, #tpu.memory_space<vmem>>, vector<1x1x32x8xbf16>
    %384 = vector.shape_cast %383 : vector<1x1x32x8xbf16> to vector<32x8xbf16>
    %cst_266 = arith.constant dense<0.000000e+00> : vector<8x8xf32>
    %385 = tpu.matmul %24, %384, %cst_266 {dimension_numbers = #tpu.dot_dimension_numbers<[1], [0], [0], [1], [0, 0, 1, 1], [], []>} : vector<8x32xbf16>, vector<32x8xbf16>, vector<8x8xf32> -> vector<8x8xf32>
    %c1_267 = arith.constant 1 : index
    %c3_268 = arith.constant 3 : index
    %c0_269 = arith.constant 0 : index
    %c0_270 = arith.constant 0 : index
    %386 = vector.load %arg12[%c1_267, %c3_268, %c0_269, %c0_270] : memref<2x4x32x8xbf16, #tpu.memory_space<vmem>>, vector<1x1x32x8xbf16>
    %387 = vector.shape_cast %386 : vector<1x1x32x8xbf16> to vector<32x8xbf16>
    %cst_271 = arith.constant dense<0.000000e+00> : vector<8x8xf32>
    %388 = tpu.matmul %24, %387, %cst_271 {dimension_numbers = #tpu.dot_dimension_numbers<[1], [0], [0], [1], [0, 0, 1, 1], [], []>} : vector<8x32xbf16>, vector<32x8xbf16>, vector<8x8xf32> -> vector<8x8xf32>
    %389 = arith.truncf %382 : vector<1x8xf32> to vector<1x8xbf16>
    %390 = arith.truncf %385 : vector<8x8xf32> to vector<8x8xbf16>
    "tpu.trace_start"() <{level = 10 : i32, message = "qd,kd->qk"}> : () -> ()
    %cst_272 = arith.constant dense<0.000000e+00> : vector<1x8xf32>
    %391 = tpu.matmul %389, %390, %cst_272 {dimension_numbers = #tpu.dot_dimension_numbers<[1], [1], [0], [0], [0, 0, 1, 0], [], []>} : vector<1x8xbf16>, vector<8x8xbf16>, vector<1x8xf32> -> vector<1x8xf32>
    "tpu.trace_stop"() : () -> ()
    %392 = arith.addf %391, %26 : vector<1x8xf32>
    %cst_273 = arith.constant dense<0xFF800000> : vector<1xf32>
    %393 = vector.multi_reduction <maximumf>, %392, %cst_273 [1] : vector<1x8xf32> to vector<1xf32>
    %394 = vector.shape_cast %393 : vector<1xf32> to vector<1x1xf32>
    %395 = vector.broadcast %394 : vector<1x1xf32> to vector<1x8xf32>
    %396 = arith.subf %392, %395 : vector<1x8xf32>
    %397 = math.exp %396 : vector<1x8xf32>
    %cst_274 = arith.constant dense<0.000000e+00> : vector<1xf32>
    %398 = vector.multi_reduction <add>, %397, %cst_274 [1] : vector<1x8xf32> to vector<1xf32>
    %399 = vector.shape_cast %398 : vector<1xf32> to vector<1x1xf32>
    %400 = tpu.reciprocal %399 {approx = true} : vector<1x1xf32> -> vector<1x1xf32>
    %401 = vector.broadcast %400 : vector<1x1xf32> to vector<1x8xf32>
    %402 = arith.mulf %397, %401 : vector<1x8xf32>
    %403 = arith.truncf %402 : vector<1x8xf32> to vector<1x8xbf16>
    %404 = arith.truncf %388 : vector<8x8xf32> to vector<8x8xbf16>
    %cst_275 = arith.constant dense<0.000000e+00> : vector<1x8xf32>
    %405 = tpu.matmul %403, %404, %cst_275 {dimension_numbers = #tpu.dot_dimension_numbers<[1], [0], [0], [1], [0, 0, 1, 1], [], []>} : vector<1x8xbf16>, vector<8x8xbf16>, vector<1x8xf32> -> vector<1x8xf32>
    %406 = arith.truncf %405 : vector<1x8xf32> to vector<1x8xbf16>
    %c1_276 = arith.constant 1 : index
    %c3_277 = arith.constant 3 : index
    %c0_278 = arith.constant 0 : index
    %c0_279 = arith.constant 0 : index
    %407 = vector.load %arg13[%c1_276, %c3_277, %c0_278, %c0_279] : memref<2x4x8x32xbf16, #tpu.memory_space<vmem>>, vector<1x1x8x32xbf16>
    %408 = vector.shape_cast %407 : vector<1x1x8x32xbf16> to vector<8x32xbf16>
    %cst_280 = arith.constant dense<0.000000e+00> : vector<1x32xf32>
    %409 = tpu.matmul %406, %408, %cst_280 {dimension_numbers = #tpu.dot_dimension_numbers<[1], [0], [0], [1], [0, 0, 1, 1], [], []>} : vector<1x8xbf16>, vector<8x32xbf16>, vector<1x32xf32> -> vector<1x32xf32>
    %410 = arith.addf %379, %409 : vector<1x32xf32>
    %411 = arith.addf %410, %284 : vector<1x32xf32>
    %c1_281 = arith.constant 1 : index
    %c0_282 = arith.constant 0 : index
    %c0_283 = arith.constant 0 : index
    %412 = vector.load %arg14[%c1_281, %c0_282, %c0_283] : memref<2x1x32xf32, #tpu.memory_space<vmem>>, vector<1x1x32xf32>
    %413 = vector.shape_cast %412 : vector<1x1x32xf32> to vector<1x32xf32>
    %c1_284 = arith.constant 1 : index
    %c0_285 = arith.constant 0 : index
    %c0_286 = arith.constant 0 : index
    %414 = vector.load %arg15[%c1_284, %c0_285, %c0_286] : memref<2x1x32xf32, #tpu.memory_space<vmem>>, vector<1x1x32xf32>
    %415 = vector.shape_cast %414 : vector<1x1x32xf32> to vector<1x32xf32>
    %cst_287 = arith.constant dense<0.000000e+00> : vector<1xf32>
    %416 = vector.multi_reduction <add>, %411, %cst_287 [1] : vector<1x32xf32> to vector<1xf32>
    %417 = vector.shape_cast %416 : vector<1xf32> to vector<1x1xf32>
    %cst_288 = arith.constant 3.200000e+01 : f32
    %418 = vector.broadcast %cst_288 : f32 to vector<1x1xf32>
    %419 = arith.divf %417, %418 : vector<1x1xf32>
    %420 = vector.broadcast %419 : vector<1x1xf32> to vector<1x32xf32>
    %421 = arith.subf %411, %420 : vector<1x32xf32>
    %422 = arith.mulf %421, %421 : vector<1x32xf32>
    %cst_289 = arith.constant dense<0.000000e+00> : vector<1xf32>
    %423 = vector.multi_reduction <add>, %422, %cst_289 [1] : vector<1x32xf32> to vector<1xf32>
    %424 = vector.shape_cast %423 : vector<1xf32> to vector<1x1xf32>
    %cst_290 = arith.constant 3.200000e+01 : f32
    %425 = vector.broadcast %cst_290 : f32 to vector<1x1xf32>
    %426 = arith.divf %424, %425 : vector<1x1xf32>
    %427 = vector.broadcast %419 : vector<1x1xf32> to vector<1x32xf32>
    %428 = arith.subf %411, %427 : vector<1x32xf32>
    %cst_291 = arith.constant 9.99999997E-7 : f32
    %429 = vector.broadcast %cst_291 : f32 to vector<1x1xf32>
    %430 = arith.addf %426, %429 : vector<1x1xf32>
    %431 = math.rsqrt %430 : vector<1x1xf32>
    %432 = vector.broadcast %431 : vector<1x1xf32> to vector<1x32xf32>
    %433 = arith.mulf %428, %432 : vector<1x32xf32>
    %434 = arith.mulf %433, %413 : vector<1x32xf32>
    %435 = arith.addf %434, %415 : vector<1x32xf32>
    %436 = arith.truncf %435 : vector<1x32xf32> to vector<1x32xbf16>
    %c1_292 = arith.constant 1 : index
    %c0_293 = arith.constant 0 : index
    %c0_294 = arith.constant 0 : index
    %437 = vector.load %arg16[%c1_292, %c0_293, %c0_294] : memref<2x32x64xbf16, #tpu.memory_space<vmem>>, vector<1x32x64xbf16>
    %438 = vector.shape_cast %437 : vector<1x32x64xbf16> to vector<32x64xbf16>
    %cst_295 = arith.constant dense<0.000000e+00> : vector<1x64xf32>
    %439 = tpu.matmul %436, %438, %cst_295 {dimension_numbers = #tpu.dot_dimension_numbers<[1], [0], [0], [1], [0, 0, 1, 1], [], []>} : vector<1x32xbf16>, vector<32x64xbf16>, vector<1x64xf32> -> vector<1x64xf32>
    %c1_296 = arith.constant 1 : index
    %c0_297 = arith.constant 0 : index
    %c0_298 = arith.constant 0 : index
    %440 = vector.load %arg17[%c1_296, %c0_297, %c0_298] : memref<2x1x64xf32, #tpu.memory_space<vmem>>, vector<1x1x64xf32>
    %441 = vector.shape_cast %440 : vector<1x1x64xf32> to vector<1x64xf32>
    %442 = arith.addf %439, %441 : vector<1x64xf32>
    %cst_299 = arith.constant 0.000000e+00 : f32
    %443 = vector.broadcast %cst_299 : f32 to vector<1x64xf32>
    %444 = arith.maximumf %442, %443 : vector<1x64xf32>
    %445 = arith.truncf %444 : vector<1x64xf32> to vector<1x64xbf16>
    %c1_300 = arith.constant 1 : index
    %c0_301 = arith.constant 0 : index
    %c0_302 = arith.constant 0 : index
    %446 = vector.load %arg18[%c1_300, %c0_301, %c0_302] : memref<2x64x32xbf16, #tpu.memory_space<vmem>>, vector<1x64x32xbf16>
    %447 = vector.shape_cast %446 : vector<1x64x32xbf16> to vector<64x32xbf16>
    %cst_303 = arith.constant dense<0.000000e+00> : vector<1x32xf32>
    %448 = tpu.matmul %445, %447, %cst_303 {dimension_numbers = #tpu.dot_dimension_numbers<[1], [0], [0], [1], [0, 0, 1, 1], [], []>} : vector<1x64xbf16>, vector<64x32xbf16>, vector<1x32xf32> -> vector<1x32xf32>
    %c1_304 = arith.constant 1 : index
    %c0_305 = arith.constant 0 : index
    %c0_306 = arith.constant 0 : index
    %449 = vector.load %arg19[%c1_304, %c0_305, %c0_306] : memref<2x1x32xf32, #tpu.memory_space<vmem>>, vector<1x1x32xf32>
    %450 = vector.shape_cast %449 : vector<1x1x32xf32> to vector<1x32xf32>
    %451 = arith.addf %448, %450 : vector<1x32xf32>
    %452 = arith.addf %451, %435 : vector<1x32xf32>
    %c1_307 = arith.constant 1 : index
    %c0_308 = arith.constant 0 : index
    %c0_309 = arith.constant 0 : index
    %453 = vector.load %arg20[%c1_307, %c0_308, %c0_309] : memref<2x1x32xf32, #tpu.memory_space<vmem>>, vector<1x1x32xf32>
    %454 = vector.shape_cast %453 : vector<1x1x32xf32> to vector<1x32xf32>
    %c1_310 = arith.constant 1 : index
    %c0_311 = arith.constant 0 : index
    %c0_312 = arith.constant 0 : index
    %455 = vector.load %arg21[%c1_310, %c0_311, %c0_312] : memref<2x1x32xf32, #tpu.memory_space<vmem>>, vector<1x1x32xf32>
    %456 = vector.shape_cast %455 : vector<1x1x32xf32> to vector<1x32xf32>
    %cst_313 = arith.constant dense<0.000000e+00> : vector<1xf32>
    %457 = vector.multi_reduction <add>, %452, %cst_313 [1] : vector<1x32xf32> to vector<1xf32>
    %458 = vector.shape_cast %457 : vector<1xf32> to vector<1x1xf32>
    %cst_314 = arith.constant 3.200000e+01 : f32
    %459 = vector.broadcast %cst_314 : f32 to vector<1x1xf32>
    %460 = arith.divf %458, %459 : vector<1x1xf32>
    %461 = vector.broadcast %460 : vector<1x1xf32> to vector<1x32xf32>
    %462 = arith.subf %452, %461 : vector<1x32xf32>
    %463 = arith.mulf %462, %462 : vector<1x32xf32>
    %cst_315 = arith.constant dense<0.000000e+00> : vector<1xf32>
    %464 = vector.multi_reduction <add>, %463, %cst_315 [1] : vector<1x32xf32> to vector<1xf32>
    %465 = vector.shape_cast %464 : vector<1xf32> to vector<1x1xf32>
    %cst_316 = arith.constant 3.200000e+01 : f32
    %466 = vector.broadcast %cst_316 : f32 to vector<1x1xf32>
    %467 = arith.divf %465, %466 : vector<1x1xf32>
    %468 = vector.broadcast %460 : vector<1x1xf32> to vector<1x32xf32>
    %469 = arith.subf %452, %468 : vector<1x32xf32>
    %cst_317 = arith.constant 9.99999997E-7 : f32
    %470 = vector.broadcast %cst_317 : f32 to vector<1x1xf32>
    %471 = arith.addf %467, %470 : vector<1x1xf32>
    %472 = math.rsqrt %471 : vector<1x1xf32>
    %473 = vector.broadcast %472 : vector<1x1xf32> to vector<1x32xf32>
    %474 = arith.mulf %469, %473 : vector<1x32xf32>
    %475 = arith.mulf %474, %454 : vector<1x32xf32>
    %476 = arith.addf %475, %456 : vector<1x32xf32>
    %477 = arith.truncf %476 : vector<1x32xf32> to vector<1x32xbf16>
    %c0_318 = arith.constant 0 : index
    %c0_319 = arith.constant 0 : index
    %478 = vector.load %arg22[%c0_318, %c0_319] : memref<32x5xbf16, #tpu.memory_space<vmem>>, vector<32x5xbf16>
    %cst_320 = arith.constant dense<0.000000e+00> : vector<1x5xf32>
    %479 = tpu.matmul %477, %478, %cst_320 {dimension_numbers = #tpu.dot_dimension_numbers<[1], [0], [0], [1], [0, 0, 1, 1], [], []>} : vector<1x32xbf16>, vector<32x5xbf16>, vector<1x5xf32> -> vector<1x5xf32>
    %c0_321 = arith.constant 0 : index
    %c0_322 = arith.constant 0 : index
    %c0_323 = arith.constant 0 : index
    %480 = vector.load %arg23[%c0_321, %c0_322, %c0_323] : memref<1x1x5xf32, #tpu.memory_space<vmem>>, vector<1x1x5xf32>
    %481 = vector.shape_cast %480 : vector<1x1x5xf32> to vector<1x5xf32>
    %482 = vector.shape_cast %479 : vector<1x5xf32> to vector<1x1x5xf32>
    tpu.vector_store %arg23[%c0_321, %c0_322, %c0_323], %482 {strides = array<i32>} : memref<1x1x5xf32, #tpu.memory_space<vmem>>, vector<1x1x5xf32>,
    return
  }
  func.func @transform_0(%arg0: i32) -> (i32, i32) {
    %c0_i32 = arith.constant 0 : i32
    %c0_i32_0 = arith.constant 0 : i32
    %c0_i32_1 = arith.constant 0 : i32
    return %c0_i32, %c0_i32_0 : i32, i32
  }
  func.func @transform_1(%arg0: i32) -> (i32, i32, i32) {
    %c0_i32 = arith.constant 0 : i32
    %c0_i32_0 = arith.constant 0 : i32
    %c0_i32_1 = arith.constant 0 : i32
    return %arg0, %c0_i32, %c0_i32_0 : i32, i32, i32
  }
  func.func @transform_2(%arg0: i32) -> (i32, i32, i32) {
    %c0_i32 = arith.constant 0 : i32
    %c0_i32_0 = arith.constant 0 : i32
    %c0_i32_1 = arith.constant 0 : i32
    return %arg0, %c0_i32, %c0_i32_0 : i32, i32, i32
  }
  func.func @transform_3(%arg0: i32) -> (i32, i32) {
    %c0_i32 = arith.constant 0 : i32
    %c0_i32_0 = arith.constant 0 : i32
    %c0_i32_1 = arith.constant 0 : i32
    return %c0_i32, %c0_i32_0 : i32, i32
  }
  func.func @transform_4(%arg0: i32) -> (i32, i32) {
    %c0_i32 = arith.constant 0 : i32
    %c0_i32_0 = arith.constant 0 : i32
    %c0_i32_1 = arith.constant 0 : i32
    return %c0_i32, %c0_i32_0 : i32, i32
  }
  func.func @transform_5(%arg0: i32) -> (i32, i32, i32) {
    %c0_i32 = arith.constant 0 : i32
    %c0_i32_0 = arith.constant 0 : i32
    %c0_i32_1 = arith.constant 0 : i32
    %c0_i32_2 = arith.constant 0 : i32
    return %c0_i32, %c0_i32_0, %c0_i32_1 : i32, i32, i32
  }
  func.func @transform_6(%arg0: i32) -> (i32, i32, i32) {
    %c0_i32 = arith.constant 0 : i32
    %c0_i32_0 = arith.constant 0 : i32
    %c0_i32_1 = arith.constant 0 : i32
    %c0_i32_2 = arith.constant 0 : i32
    return %c0_i32, %c0_i32_0, %c0_i32_1 : i32, i32, i32
  }
  func.func @transform_7(%arg0: i32) -> (i32, i32, i32) {
    %c0_i32 = arith.constant 0 : i32
    %c0_i32_0 = arith.constant 0 : i32
    %c0_i32_1 = arith.constant 0 : i32
    %c0_i32_2 = arith.constant 0 : i32
    return %c0_i32, %c0_i32_0, %c0_i32_1 : i32, i32, i32
  }
  func.func @transform_8(%arg0: i32) -> (i32, i32, i32) {
    %c0_i32 = arith.constant 0 : i32
    %c0_i32_0 = arith.constant 0 : i32
    %c0_i32_1 = arith.constant 0 : i32
    %c0_i32_2 = arith.constant 0 : i32
    return %c0_i32, %c0_i32_0, %c0_i32_1 : i32, i32, i32
  }
  func.func @transform_9(%arg0: i32) -> (i32, i32, i32, i32) {
    %c0_i32 = arith.constant 0 : i32
    %c0_i32_0 = arith.constant 0 : i32
    %c0_i32_1 = arith.constant 0 : i32
    %c0_i32_2 = arith.constant 0 : i32
    %c0_i32_3 = arith.constant 0 : i32
    return %c0_i32, %c0_i32_0, %c0_i32_1, %c0_i32_2 : i32, i32, i32, i32
  }
  func.func @transform_10(%arg0: i32) -> (i32, i32, i32, i32) {
    %c0_i32 = arith.constant 0 : i32
    %c0_i32_0 = arith.constant 0 : i32
    %c0_i32_1 = arith.constant 0 : i32
    %c0_i32_2 = arith.constant 0 : i32
    %c0_i32_3 = arith.constant 0 : i32
    return %c0_i32, %c0_i32_0, %c0_i32_1, %c0_i32_2 : i32, i32, i32, i32
  }
  func.func @transform_11(%arg0: i32) -> (i32, i32, i32, i32) {
    %c0_i32 = arith.constant 0 : i32
    %c0_i32_0 = arith.constant 0 : i32
    %c0_i32_1 = arith.constant 0 : i32
    %c0_i32_2 = arith.constant 0 : i32
    %c0_i32_3 = arith.constant 0 : i32
    return %c0_i32, %c0_i32_0, %c0_i32_1, %c0_i32_2 : i32, i32, i32, i32
  }
  func.func @transform_12(%arg0: i32) -> (i32, i32, i32, i32) {
    %c0_i32 = arith.constant 0 : i32
    %c0_i32_0 = arith.constant 0 : i32
    %c0_i32_1 = arith.constant 0 : i32
    %c0_i32_2 = arith.constant 0 : i32
    %c0_i32_3 = arith.constant 0 : i32
    return %c0_i32, %c0_i32_0, %c0_i32_1, %c0_i32_2 : i32, i32, i32, i32
  }
  func.func @transform_13(%arg0: i32) -> (i32, i32, i32) {
    %c0_i32 = arith.constant 0 : i32
    %c0_i32_0 = arith.constant 0 : i32
    %c0_i32_1 = arith.constant 0 : i32
    %c0_i32_2 = arith.constant 0 : i32
    return %c0_i32, %c0_i32_0, %c0_i32_1 : i32, i32, i32
  }
  func.func @transform_14(%arg0: i32) -> (i32, i32, i32) {
    %c0_i32 = arith.constant 0 : i32
    %c0_i32_0 = arith.constant 0 : i32
    %c0_i32_1 = arith.constant 0 : i32
    %c0_i32_2 = arith.constant 0 : i32
    return %c0_i32, %c0_i32_0, %c0_i32_1 : i32, i32, i32
  }
  func.func @transform_15(%arg0: i32) -> (i32, i32, i32) {
    %c0_i32 = arith.constant 0 : i32
    %c0_i32_0 = arith.constant 0 : i32
    %c0_i32_1 = arith.constant 0 : i32
    %c0_i32_2 = arith.constant 0 : i32
    return %c0_i32, %c0_i32_0, %c0_i32_1 : i32, i32, i32
  }
  func.func @transform_16(%arg0: i32) -> (i32, i32, i32) {
    %c0_i32 = arith.constant 0 : i32
    %c0_i32_0 = arith.constant 0 : i32
    %c0_i32_1 = arith.constant 0 : i32
    %c0_i32_2 = arith.constant 0 : i32
    return %c0_i32, %c0_i32_0, %c0_i32_1 : i32, i32, i32
  }
  func.func @transform_17(%arg0: i32) -> (i32, i32, i32) {
    %c0_i32 = arith.constant 0 : i32
    %c0_i32_0 = arith.constant 0 : i32
    %c0_i32_1 = arith.constant 0 : i32
    %c0_i32_2 = arith.constant 0 : i32
    return %c0_i32, %c0_i32_0, %c0_i32_1 : i32, i32, i32
  }
  func.func @transform_18(%arg0: i32) -> (i32, i32, i32) {
    %c0_i32 = arith.constant 0 : i32
    %c0_i32_0 = arith.constant 0 : i32
    %c0_i32_1 = arith.constant 0 : i32
    %c0_i32_2 = arith.constant 0 : i32
    return %c0_i32, %c0_i32_0, %c0_i32_1 : i32, i32, i32
  }
  func.func @transform_19(%arg0: i32) -> (i32, i32, i32) {
    %c0_i32 = arith.constant 0 : i32
    %c0_i32_0 = arith.constant 0 : i32
    %c0_i32_1 = arith.constant 0 : i32
    %c0_i32_2 = arith.constant 0 : i32
    return %c0_i32, %c0_i32_0, %c0_i32_1 : i32, i32, i32
  }
  func.func @transform_20(%arg0: i32) -> (i32, i32, i32) {
    %c0_i32 = arith.constant 0 : i32
    %c0_i32_0 = arith.constant 0 : i32
    %c0_i32_1 = arith.constant 0 : i32
    %c0_i32_2 = arith.constant 0 : i32
    return %c0_i32, %c0_i32_0, %c0_i32_1 : i32, i32, i32
  }
  func.func @transform_21(%arg0: i32) -> (i32, i32) {
    %c0_i32 = arith.constant 0 : i32
    %c0_i32_0 = arith.constant 0 : i32
    %c0_i32_1 = arith.constant 0 : i32
    return %c0_i32, %c0_i32_0 : i32, i32
  }
  func.func @transform_22(%arg0: i32) -> (i32, i32, i32) {
    %c0_i32 = arith.constant 0 : i32
    %c0_i32_0 = arith.constant 0 : i32
    %c0_i32_1 = arith.constant 0 : i32
    return %arg0, %c0_i32, %c0_i32_0 : i32, i32, i32
  }
}

</mosaic_0001>

<bundles_post_ra>
// kernel: classification_transformer_forward.6
= control target key start
LH: loop header
LB: loop body
LE: loop exit
PB: predicated region body
PF: predicated region fallthrough
CT: control target
= control target key end

     0   :  { %s350_s15 = smov 0   ;;  %s382_s0 = inlined_call_operand.vmem [shape: f32[2,8,32], index: 0, kind: input, shape index: {}]   ;;  %s383_s1 = inlined_call_operand.vmem [shape: f32[8,32], index: 1, kind: input, shape index: {}]   ;;  %s384_s2 = inlined_call_operand.vmem [shape: f32[1,32], index: 2, kind: input, shape index: {}]   ;;  %s385_s3 = inlined_call_operand.vmem [shape: f32[1,32], index: 3, kind: input, shape index: {}]   ;;  %s386_s4 = inlined_call_operand.vmem [shape: bf16[2,8,32], index: 4, kind: output, shape index: {}]  }
   0x1 LB: > { %s292_s16 = sadd.s32 4294967295, %s322_s15   ;;  %p296_p0 = scmp.ge.s32.totalorder %s322_s15, 1  ;;  %s322_s15 = sphi %s350_s15, %s14_s15  }
   0x2   : > { %p161_p1 = scmp.lt.s32.totalorder %s322_s15, 3 }
   0x4   : > { %p162_p2 = pnand %p296_p0, %p161_p1 }
   0x5   : > { %p185_p3 = scmp.lt.s32.totalorder (!%p162_p2), %s292_s16, 1 }
   0x6   : > { %165 = sbr.rel (%p162_p2) target bundleno = 288 (0x120), region = 36 }
   0xb   : > { %s388_s16 = smov (!%p185_p3, %s292_s16), 1  ;;  %v194_v0 = vld [vmem:[%s383_s1] sm:$0xff]  ;;  %vm198_vm0 = vcmask 261120   ;;  %v324_v4 = vmov 32.0   ;;  %vm237_vm5 = vcmask 257024  }
   0xc   : > { %s297_s17 = sshll.u32 %s388_s16, 3  ;;  %312 = vrcp.f32 %v324_v4  ;;  %v310_v25 = vld [vmem:[%s384_s2] ss:$0 sm:$0xff]  ;;  %s298_s27 = sshll.u32 %s388_s16, 2 }
   0xd   : > { %s188_s22 = scalar_lea.vmem %s382_s0, %s297_s17  ;;  %v311_v27 = vld [vmem:[%s385_s3] ss:$0 sm:$0xff]  ;;  %s192_s30 = scalar_lea.vmem %s386_s4, %s298_s27 }
   0xe   : > { %v193_v1 = vld [vmem:[%s188_s22] sm:$0xff] }
   0xf   : > { %v195_v2 = vadd.f32 %v194_v0, %v193_v1 }
  0x11   : > { %v199_v3 = vsel %vm198_vm0, %v195_v2, 0.0 }
  0x12   : > { %200 = vadd.xlane.f32.xlu0 %v199_v3  ;;  %v313_v5 = vpop.eup %312 }
  0x13   : > { %v203_v6 = vmul.f32 32.0, %v313_v5  ;;  %vm207_vm1 = vweird.f32 %v313_v5 }
  0x15   : > { %v204_v7 = vsub.f32 1.0, %v203_v6 }
  0x17   : > { %v205_v8 = vmul.f32 %v313_v5, %v204_v7 }
  0x19   : > { %v206_v9 = vadd.f32 %v313_v5, %v205_v8 }
  0x1b   : > { %v208_v10 = vsel %vm207_vm1, %v313_v5, %v206_v9 }
  0x85   : > { %v201_v11 = vpop.xlane.xlu0 %200 }
  0x86   : > { %v209_v12 = vmul.f32 %v208_v10, %v201_v11 }
  0x88   : > { %v210_v13 = vsub.f32 %v195_v2, %v209_v12 }
  0x8a   : > { %v211_v14 = vmul.f32 %v210_v13, %v210_v13 }
  0x8c   : > { %v212_v15 = vsel %vm198_vm0, %v211_v14, 0.0 }
  0x8d   : > { %213 = vadd.xlane.f32.xlu0 %v212_v15 }
 0x100   : > { %v214_v16 = vpop.xlane.xlu0 %213 }
 0x101   : > { %v215_v17 = vmul.f32 %v214_v16, %v208_v10 }
 0x103   : > { %v216_v18 = vadd.f32 1e-06, %v215_v17 }
 0x105   : > { %314 = vrsqrt.f32 %v216_v18  ;;  %vm223_vm3 = vweird.f32 %v216_v18 }
 0x10b   : > { %v315_v19 = vpop.eup %314 }
 0x10c   : > { %v218_v20 = vmul.f32 %v315_v19, %v216_v18  ;;  %vm224_vm2 = vweird.f32 %v315_v19 }
 0x10d   : > { %vm225_vm4 = vmor %vm223_vm3, %vm224_vm2 }
 0x10e   : > { %v219_v21 = vmul.f32 %v315_v19, %v218_v20 }
 0x110   : > { %v220_v22 = vmul.f32 0.5, %v219_v21 }
 0x112   : > { %v221_v23 = vsub.f32 1.5, %v220_v22 }
 0x114   : > { %v222_v24 = vmul.f32 %v315_v19, %v221_v23 }
 0x116   : > { %v226_v26 = vsel %vm225_vm4, %v315_v19, %v222_v24 }
 0x117   : > { %v227_v28 = vmul.f32 %v226_v26, %v210_v13 }
 0x119   : > { %v231_v29 = vmul.f32 %v310_v25, %v227_v28 }
 0x11b   : > { %v235_v30 = vadd.f32 %v311_v27, %v231_v29 }
 0x11d   : > { %v236_v31 = vpack.c.bf16 %v235_v30, %v235_v30 }
 0x11f   : > { %238 = vst.msk [vmem:[%s192_s30] sm:$0xf] %vm237_vm5, %v236_v31 }
 0x120 PF: > { %s14_s15 = sadd.s32 1, %s322_s15  }
 0x121   : > { %p11_p4 = scmp.ge.s32.totalorder %s14_s15, 4  }
 0x123   :  { %13 = sbr.rel (!%p11_p4) target bundleno = 1 (0x1), region = 66 }

// kernel: classification_transformer_forward.8
= control target key start
LH: loop header
LB: loop body
LE: loop exit
PB: predicated region body
PF: predicated region fallthrough
CT: control target
= control target key end

     0   :  { %s572_s24 = smov 0   ;;  %s629_s0 = inlined_call_operand.vmem [shape: bf16[16,32], index: 0, kind: input, shape index: {}]   ;;  %s630_s1 = inlined_call_operand.vmem [shape: bf16[32,64], index: 1, kind: input, shape index: {}]   ;;  %s631_s2 = inlined_call_operand.vmem [shape: f32[1,64], index: 2, kind: input, shape index: {}]   ;;  %s632_s3 = inlined_call_operand.vmem [shape: bf16[64,32], index: 3, kind: input, shape index: {}]   ;;  %s633_s4 = inlined_call_operand.vmem [shape: f32[1,32], index: 4, kind: input, shape index: {}]   ;;  %s634_s5 = inlined_call_operand.vmem [shape: f32[1,32], index: 5, kind: input, shape index: {}]   ;;  %s635_s6 = inlined_call_operand.vmem [shape: f32[1,32], index: 6, kind: input, shape index: {}]   ;;  %s636_s7 = inlined_call_operand.vmem [shape: bf16[16,32], index: 7, kind: output, shape index: {}]  }
   0x1 LB: > { %s465_s25 = sadd.s32 4294967295, %s529_s24   ;;  %p469_p0 = scmp.ge.s32.totalorder %s529_s24, 1  ;;  %s529_s24 = sphi %s572_s24, %s17_s24  }
   0x2   : > { %p236_p1 = scmp.lt.s32.totalorder %s529_s24, 3 }
   0x4   : > { %p237_p2 = pnand %p469_p0, %p236_p1 }
   0x5   : > { %p266_p3 = scmp.lt.s32.totalorder (!%p237_p2), %s465_s25, 1 }
   0x6   : > { %240 = sbr.rel (%p237_p2) target bundleno = 552 (0x228), region = 48 }
   0xb   : > { %v501_v0 = vld [vmem:[%s630_s1 + $0x8] sm:$0xff]  ;;  %v505_v1 = vld [vmem:[%s632_s3 + $0x18] sm:$0xff]  ;;  %v500_v2 = vld [vmem:[%s630_s1] sm:$0xff]  ;;  %s638_s25 = smov (!%p266_p3, %s465_s25), 1  ;;  %vm297_vm0 = vcmask 261120   ;;  %vm352_vm1 = vcmask 523264  }
   0xc   : > { %307 = vmatpush.bf16.msra.mxu0 %v501_v0  ;;  %360 = vmatpush.bf16.msra.mxu1 %v505_v1  ;;  %v504_v3 = vld [vmem:[%s632_s3 + $0x10] sm:$0xff]  ;;  %s470_s11 = sshll.u32 %s638_s25, 2  ;;  %v503_v5 = vld [vmem:[%s632_s3 + $0x8] sm:$0xff]  ;;  %v502_v6 = vld [vmem:[%s632_s3] sm:$0xff]  ;;  %v531_v20 = vmov 32.0   ;;  %vm410_vm6 = vcmask 257024  }
   0xd   : > { %s269_s14 = scalar_lea.vmem %s629_s0, %s470_s11  ;;  %v515_v7 = vld [vmem:[%s631_s2] ss:$0 sm:$0xff]  ;;  %519 = vrcp.f32 %v531_v20  ;;  %s273_s8 = scalar_lea.vmem %s636_s7, %s470_s11 }
   0xe   : > { %v275_v4 = vld [vmem:[%s269_s14] sm:$0xf] }
   0xf   : > { %v516_v13 = vld [vmem:[%s633_s4] ss:$0 sm:$0xff]  ;;  %v276_v14 = vunpack.c.l.bf16 %v275_v4 }
  0x10   : > { %308 = vmatpush.bf16.msra.mxu0 %v500_v2  ;;  %361 = vmatpush.bf16.msra.mxu1 %v504_v3  ;;  %v517_v41 = vld [vmem:[%s634_s5] ss:$0 sm:$0xff] }
  0x11   : > { %v518_v43 = vld [vmem:[%s635_s6] ss:$0 sm:$0xff] }
  0x13   : > { %480 = vmatmul.msk.bf16.vlgmr.msra.gmra.mxu0 %vm297_vm0, %v275_v4  ;;  %v520_v21 = vpop.eup %519 }
  0x14   : > { %362 = vmatpush.bf16.msra.mxu1 %v503_v5  ;;  %v376_v22 = vmul.f32 32.0, %v520_v21  ;;  %vm380_vm2 = vweird.f32 %v520_v21 }
  0x16   : > { %v377_v23 = vsub.f32 1.0, %v376_v22 }
  0x18   : > { %363 = vmatpush.bf16.msra.mxu1 %v502_v6  ;;  %v378_v24 = vmul.f32 %v520_v21, %v377_v23 }
  0x1a   : > { %v379_v25 = vadd.f32 %v520_v21, %v378_v24 }
  0x1c   : > { %v381_v26 = vsel %vm380_vm2, %v520_v21, %v379_v25 }
  0x90   : > { %v310_v8 = vpop.f32.mrf.mxu0 }
  0x91   : > { %v311_v9 = vadd.f32 %v515_v7, %v310_v8 }
  0x93   : > { %v314_v10 = vmax.f32 %v311_v9, 0.0 }
  0x95   : > { %v315_v11 = vpack.c.bf16 %v314_v10, %v314_v10 }
  0x97   : > { %497 = vmatmul.msk.bf16.vlgmr.msra.gmra.mxu1 %vm352_vm1, %v315_v11 }
  0x98   : > { %v312_v12 = vpop.f32.mrf.mxu0 }
 0x114   : > { %v365_v15 = vpop.f32.mrf.mxu1 }
 0x115   : > { %v366_v16 = vadd.f32 %v516_v13, %v365_v15 }
 0x117   : > { %v369_v17 = vadd.f32 %v366_v16, %v276_v14 }
 0x119   : > { %v372_v18 = vsel %vm297_vm0, %v369_v17, 0.0 }
 0x11a   : > { %373 = vadd.xlane.f32.xlu0 %v372_v18 }
 0x11c   : > { %v367_v19 = vpop.f32.mrf.mxu1 }
 0x18d   : > { %v374_v27 = vpop.xlane.xlu0 %373 }
 0x18e   : > { %v382_v28 = vmul.f32 %v381_v26, %v374_v27 }
 0x190   : > { %v383_v29 = vsub.f32 %v369_v17, %v382_v28 }
 0x192   : > { %v384_v30 = vmul.f32 %v383_v29, %v383_v29 }
 0x194   : > { %v385_v31 = vsel %vm297_vm0, %v384_v30, 0.0 }
 0x195   : > { %386 = vadd.xlane.f32.xlu0 %v385_v31 }
 0x208   : > { %v387_v32 = vpop.xlane.xlu0 %386 }
 0x209   : > { %v388_v33 = vmul.f32 %v387_v32, %v381_v26 }
 0x20b   : > { %v389_v34 = vadd.f32 1e-06, %v388_v33 }
 0x20d   : > { %521 = vrsqrt.f32 %v389_v34  ;;  %vm396_vm4 = vweird.f32 %v389_v34 }
 0x213   : > { %v522_v35 = vpop.eup %521 }
 0x214   : > { %v391_v36 = vmul.f32 %v522_v35, %v389_v34  ;;  %vm397_vm3 = vweird.f32 %v522_v35 }
 0x215   : > { %vm398_vm5 = vmor %vm396_vm4, %vm397_vm3 }
 0x216   : > { %v392_v37 = vmul.f32 %v522_v35, %v391_v36 }
 0x218   : > { %v393_v38 = vmul.f32 0.5, %v392_v37 }
 0x21a   : > { %v394_v39 = vsub.f32 1.5, %v393_v38 }
 0x21c   : > { %v395_v40 = vmul.f32 %v522_v35, %v394_v39 }
 0x21e   : > { %v399_v42 = vsel %vm398_vm5, %v522_v35, %v395_v40 }
 0x21f   : > { %v400_v44 = vmul.f32 %v399_v42, %v383_v29 }
 0x221   : > { %v404_v45 = vmul.f32 %v517_v41, %v400_v44 }
 0x223   : > { %v408_v46 = vadd.f32 %v518_v43, %v404_v45 }
 0x225   : > { %v409_v47 = vpack.c.bf16 %v408_v46, %v408_v46 }
 0x227   : > { %411 = vst.msk [vmem:[%s273_s8] sm:$0xf] %vm410_vm6, %v409_v47 }
 0x228 PF: > { %s17_s24 = sadd.s32 1, %s529_s24  }
 0x229   : > { %p14_p4 = scmp.ge.s32.totalorder %s17_s24, 4  }
 0x22b   :  { %16 = sbr.rel (!%p14_p4) target bundleno = 1 (0x1), region = 78 }

// kernel: classification_transformer_forward.7
= control target key start
LH: loop header
LB: loop body
LE: loop exit
PB: predicated region body
PF: predicated region fallthrough
CT: control target
= control target key end

     0   :  { %s1369_s27 = smov 0   ;;  %s1557_s0 = inlined_call_operand.vmem [shape: bf16[2,8,32], index: 0, kind: input, shape index: {}]   ;;  %s1558_s1 = inlined_call_operand.vmem [shape: f32[2,1,8], index: 1, kind: input, shape index: {}]   ;;  %s1559_s2 = inlined_call_operand.vmem [shape: bf16[4,32,8], index: 2, kind: input, shape index: {}]   ;;  %s1560_s3 = inlined_call_operand.vmem [shape: bf16[4,32,8], index: 3, kind: input, shape index: {}]   ;;  %s1561_s4 = inlined_call_operand.vmem [shape: bf16[4,32,8], index: 4, kind: input, shape index: {}]   ;;  %s1562_s5 = inlined_call_operand.vmem [shape: bf16[4,8,32], index: 5, kind: input, shape index: {}]   ;;  %s1563_s6 = inlined_call_operand.vmem [shape: f32[1,32], index: 6, kind: input, shape index: {}]   ;;  %s1564_s7 = inlined_call_operand.vmem [shape: f32[1,32], index: 7, kind: input, shape index: {}]   ;;  %s1565_s8 = inlined_call_operand.vmem [shape: bf16[2,8,32], index: 8, kind: output, shape index: {}]  }
   0x1 LB: > { %s1091_s28 = sadd.s32 4294967295, %s1321_s27   ;;  %p1095_p0 = scmp.ge.s32.totalorder %s1321_s27, 1  ;;  %s1321_s27 = sphi %s1369_s27, %s18_s27  }
   0x2   : > { %p269_p1 = scmp.lt.s32.totalorder %s1321_s27, 3 }
   0x4   : > { %p270_p2 = pnand %p1095_p0, %p269_p1 }
   0x5   : > { %p304_p3 = scmp.lt.s32.totalorder (!%p270_p2), %s1091_s28, 1 }
   0x6   : > { %273 = sbr.rel (%p270_p2) target bundleno = 2557 (0x9fd), region = 52 }
   0xb   : > { %v1260_v0 = vld [vmem:[%s1559_s2 + $0x8] sm:$0xff]  ;;  %v1259_v2 = vld [vmem:[%s1559_s2] sm:$0xff]  ;;  %s1567_s28 = smov (!%p304_p3, %s1091_s28), 1  ;;  %vm335_vm0 = vcmask 261120   ;;  %vm415_vm1 = vcmask 64512   ;;  %v1268_v14 = vld [vmem:[%s1560_s3 + $0x18] sm:$0xff] }
   0xc   : > { %v1262_v1 = vld [vmem:[%s1560_s3 + $0x8] sm:$0xff]  ;;  %345 = vmatpush.bf16.msra.mxu0 %v1260_v0  ;;  %v1261_v3 = vld [vmem:[%s1560_s3] sm:$0xff]  ;;  %s1096_s15 = sshll.u32 %s1567_s28, 2  ;;  %s310_s21 = scalar_lea.vmem %s1558_s1, %s1567_s28  ;;  %v1267_v20 = vld [vmem:[%s1560_s3 + $0x10] sm:$0xff]  ;;  %vm451_vm2 = vcmask 1043456   ;;  %vm1027_vm7 = vcmask 257024  }
   0xd   : > { %374 = vmatpush.bf16.msra.mxu1 %v1262_v1  ;;  %s307_s18 = scalar_lea.vmem %s1557_s0, %s1096_s15  ;;  %v1264_v12 = vld [vmem:[%s1561_s4 + $0x8] sm:$0xff]  ;;  %v1263_v13 = vld [vmem:[%s1561_s4] sm:$0xff]  ;;  %v1266_v21 = vld [vmem:[%s1559_s2 + $0x18] sm:$0xff]  ;;  %s314_s19 = scalar_lea.vmem %s1565_s8, %s1096_s15 }
   0xe   : > { %v1397_v4 = vld [vmem:[%s307_s18] sm:$0xf]  ;;  %403 = vmatpush.bf16.msra.mxu2 %v1264_v12  ;;  %v1265_v22 = vld [vmem:[%s1559_s2 + $0x10] sm:$0xff]  ;;  %v1270_v38 = vld [vmem:[%s1561_s4 + $0x18] sm:$0xff] }
   0xf   : > { %v1420_v15 = vld [vmem:[%s310_s21] ss:$0 sm:$0xff]  ;;  %v1269_v39 = vld [vmem:[%s1561_s4 + $0x10] sm:$0xff]  ;;  %v1274_v1 = vld [vmem:[%s1560_s3 + $0x28] sm:$0xff] }
  0x10   : > { %346 = vmatpush.bf16.msra.mxu0 %v1259_v2  ;;  %v469_v45 = vld [vmem:[%s1562_s5] sm:$0xf] }
  0x11   : > { %375 = vmatpush.bf16.msra.mxu1 %v1261_v3  ;;  %v639_v46 = vsel %vm451_vm2, %v469_v45, 0  ;;  %v1273_v2 = vld [vmem:[%s1560_s3 + $0x20] sm:$0xff]  ;;  %v1272_v3 = vld [vmem:[%s1559_s2 + $0x28] sm:$0xff] }
  0x12   : > { %404 = vmatpush.bf16.msra.mxu2 %v1263_v13 }
  0x13   : > { %1106 = vmatmul.msk.bf16.vlgmr.msra.gmra.mxu0 %vm335_vm0, %v1397_v4 }
  0x14   : > { %1115 = vmatmul.msk.bf16.vlgmr.msra.gmra.mxu1 %vm335_vm0, %v1397_v4 }
  0x15   : > { %1124 = vmatmul.msk.bf16.vlgmr.msra.gmra.mxu2 %vm335_vm0, %v1397_v4  ;;  %493 = vmatpush.bf16.msrb.mxu1 %v1266_v21 }
  0x16   : > { %523 = vmatpush.bf16.msrb.mxu2 %v1268_v14 }
  0x19   : > { %494 = vmatpush.bf16.msrb.mxu1 %v1265_v22 }
  0x1a   : > { %524 = vmatpush.bf16.msrb.mxu2 %v1267_v20 }
  0x24   : > { %1139 = vmatmul.msk.bf16.vlgmr.msrb.gmra.mxu1 %vm335_vm0, %v1397_v4 }
  0x25   : > { %1152 = vmatmul.msk.bf16.vlgmr.msrb.gmra.mxu2 %vm335_vm0, %v1397_v4 }
  0x90   : > { %v348_v5 = vpop.f32.mrf.mxu0 }
  0x91   : > { %v377_v6 = vpop.f32.mrf.mxu1  ;;  %v410_v9 = vpack.c.bf16 %v348_v5, %v348_v5  ;;  %v1271_v5 = vld [vmem:[%s1559_s2 + $0x20] sm:$0xff] }
  0x92   : > { %v411_v7 = vpack.c.bf16 %v377_v6, %v377_v6 }
  0x94   : > { %v420_v8 = vsel %vm415_vm1, %v411_v7, 0 }
  0x95   : > { %429 = vmatpush.bf16.xpose.msra.mxu3 %v420_v8 }
  0x98   : > { %v350_v10 = vpop.f32.mrf.mxu0  ;;  %v406_v23 = vpop.f32.mrf.mxu2 }
  0x99   : > { %v379_v11 = vpop.f32.mrf.mxu1  ;;  %v447_v30 = vpack.c.bf16 %v406_v23, %v406_v23  ;;  %v1168_v10 = vld [vmem:[%s1562_s5 + $0x4] sm:$0xf] }
  0x9a   : > { %v620_v11 = vsel %vm451_vm2, %v1168_v10, 0 }
  0x9b   : > { %v453_v31 = vsel %vm451_vm2, %v447_v30, 0  ;;  %629 = vmatpush.bf16.msra.mxu2 %v620_v11 }
  0x9c   : > { %1125 = vmatmul.msk.bf16.vlgmr.msra.gmra.mxu3 %vm415_vm1, %v410_v9  ;;  %462 = vmatpush.bf16.msrb.mxu0 %v453_v31  ;;  %v1280_v31 = vld [vmem:[%s1560_s3 + $0x38] sm:$0xff] }
  0x9d   : > { %553 = vmatpush.bf16.msrb.mxu3 %v1270_v38 }
  0xa0   : > { %v408_v27 = vpop.f32.mrf.mxu2 }
  0xa1   : > { %v496_v35 = vpop.f32.mrf.mxu1  ;;  %554 = vmatpush.bf16.msrb.mxu3 %v1269_v39 }
  0xa2   : > { %v560_v44 = vpack.c.bf16 %v496_v35, %v496_v35 }
  0xa5   : > { %648 = vmatpush.bf16.msra.mxu3 %v639_v46 }
  0xa8   : > { %v526_v32 = vpop.f32.mrf.mxu2 }
  0xa9   : > { %v561_v33 = vpack.c.bf16 %v526_v32, %v526_v32  ;;  %v498_v37 = vpop.f32.mrf.mxu1 }
  0xab   : > { %v566_v34 = vsel %vm415_vm1, %v561_v33, 0 }
  0xac   : > { %575 = vmatpush.bf16.xpose.msra.mxu0 %v566_v34  ;;  %1165 = vmatmul.msk.bf16.vlgmr.msrb.gmra.mxu3 %vm335_vm0, %v1397_v4 }
  0xb0   : > { %v528_v36 = vpop.f32.mrf.mxu2 }
 0x11f   : > { %v431_v16 = vpop.f32.mrf.mxu3 }
 0x120   : > { %v432_v17 = vadd.f32 %v1420_v15, %v431_v16 }
 0x122   : > { %v435_v18 = vsel %vm415_vm1, %v432_v17, -inf }
 0x123   : > { %436 = vmax.xlane.f32.xlu0 %v435_v18 }
 0x127   : > { %v433_v19 = vpop.f32.mrf.mxu3 }
 0x12f   : > { %v556_v47 = vpop.f32.mrf.mxu3 }
 0x130   : > { %v593_v49 = vpack.c.bf16 %v556_v47, %v556_v47 }
 0x132   : > { %v598_v51 = vsel %vm451_vm2, %v593_v49, 0 }
 0x133   : > { %607 = vmatpush.bf16.msra.mxu1 %v598_v51 }
 0x137   : > { %v558_v52 = vpop.f32.mrf.mxu3  ;;  %707 = vmatpush.bf16.msrb.mxu1 %v1274_v1 }
 0x13b   : > { %708 = vmatpush.bf16.msrb.mxu1 %v1273_v2 }
 0x196   : > { %v437_v24 = vpop.xlane.xlu0 %436 }
 0x197   : > { %v438_v25 = vsub.f32 %v432_v17, %v437_v24  ;;  %v1276_v24 = vld [vmem:[%s1561_s4 + $0x28] sm:$0xff] }
 0x198   : > { %737 = vmatpush.bf16.msrb.mxu2 %v1276_v24 }
 0x199   : > { %v439_v26 = vmul.f32 1.442695, %v438_v25  ;;  %v1275_v25 = vld [vmem:[%s1561_s4 + $0x20] sm:$0xff] }
 0x19b   : > { %1295 = vpow2.f32 %v439_v26 }
 0x19c   : > { %738 = vmatpush.bf16.msrb.mxu2 %v1275_v25  ;;  %v317_v25 = vunpack.c.l.bf16 %v1397_v4 }
 0x1a1   : > { %v1296_v28 = vpop.eup %1295 }
 0x1a2   : > { %v441_v29 = vsel %vm415_vm1, %v1296_v28, 0.0 }
 0x1a3   : > { %442 = vadd.xlane.f32.xlu0 %v441_v29 }
 0x216   : > { %v443_v40 = vpop.xlane.xlu0 %442 }
 0x217   : > { %1297 = vrcp.f32 %v443_v40 }
 0x21d   : > { %v1298_v41 = vpop.eup %1297 }
 0x21e   : > { %v445_v42 = vmul.f32 %v1298_v41, %v1296_v28  ;;  %v1279_v41 = vld [vmem:[%s1560_s3 + $0x30] sm:$0xff] }
 0x220   : > { %v446_v43 = vpack.c.bf16 %v445_v42, %v445_v42  ;;  %v1278_v42 = vld [vmem:[%s1559_s2 + $0x38] sm:$0xff] }
 0x222   : > { %1126 = vmatmul.msk.bf16.vlgmr.msrb.gmra.mxu0 %vm415_vm1, %v446_v43  ;;  %v1277_v43 = vld [vmem:[%s1559_s2 + $0x30] sm:$0xff] }
 0x223   : > { %677 = vmatpush.bf16.msrb.mxu0 %v1272_v3 }
 0x227   : > { %678 = vmatpush.bf16.msrb.mxu0 %v1271_v5 }
 0x232   : > { %1166 = vmatmul.msk.bf16.vlgmr.msra.gmra.mxu0 %vm415_vm1, %v560_v44  ;;  %v1212_v44 = vld [vmem:[%s1562_s5 + $0x8] sm:$0xf] }
 0x233   : > { %v804_v45 = vsel %vm451_vm2, %v1212_v44, 0 }
 0x242   : > { %1183 = vmatmul.msk.bf16.vlgmr.msrb.gmra.mxu0 %vm335_vm0, %v1397_v4 }
 0x29f   : > { %v464_v48 = vpop.f32.mrf.mxu0 }
 0x2a0   : > { %v468_v50 = vpack.c.bf16 %v464_v48, %v464_v48 }
 0x2a2   : > { %1170 = vmatmul.msk.bf16.vlgmr.msra.gmra.mxu3 %vm415_vm1, %v468_v50 }
 0x2a7   : > { %v466_v53 = vpop.f32.mrf.mxu0 }
 0x2af   : > { %v577_v54 = vpop.f32.mrf.mxu0 }
 0x2b0   : > { %v578_v55 = vadd.f32 %v1420_v15, %v577_v54 }
 0x2b2   : > { %v581_v56 = vsel %vm415_vm1, %v578_v55, -inf }
 0x2b3   : > { %582 = vmax.xlane.f32.xlu1 %v581_v56 }
 0x2b7   : > { %v579_v57 = vpop.f32.mrf.mxu0 }
 0x2bf   : > { %v680_v12 = vpop.f32.mrf.mxu0 }
 0x2c0   : > { %v744_v21 = vpack.c.bf16 %v680_v12, %v680_v12 }
 0x2c7   : > { %v682_v13 = vpop.f32.mrf.mxu0 }
 0x325   : > { %v1458_v58 = vpop.f32.mrf.mxu3 }
 0x326   : > { %v583_v59 = vpop.xlane.xlu1 %582 }
 0x327   : > { %v584_v60 = vsub.f32 %v578_v55, %v583_v59 }
 0x329   : > { %v585_v61 = vmul.f32 1.442695, %v584_v60 }
 0x32b   : > { %1299 = vpow2.f32 %v585_v61  ;;  %v1282_v61 = vld [vmem:[%s1561_s4 + $0x38] sm:$0xff] }
 0x32d   : > { %v652_v62 = vpop.f32.mrf.mxu3 }
 0x32e   : > { %v1281_v62 = vld [vmem:[%s1561_s4 + $0x30] sm:$0xff] }
 0x331   : > { %v1300_v63 = vpop.eup %1299 }
 0x332   : > { %v587_v0 = vsel %vm415_vm1, %v1300_v63, 0.0 }
 0x333   : > { %588 = vadd.xlane.f32.xlu1 %v587_v0 }
 0x3a6   : > { %v589_v6 = vpop.xlane.xlu1 %588 }
 0x3a7   : > { %1301 = vrcp.f32 %v589_v6 }
 0x3ad   : > { %v1302_v7 = vpop.eup %1301 }
 0x3ae   : > { %v591_v8 = vmul.f32 %v1302_v7, %v1300_v63 }
 0x3b0   : > { %v592_v9 = vpack.c.bf16 %v591_v8, %v591_v8 }
 0x3b2   : > { %1167 = vmatmul.msk.bf16.vlgmr.msra.gmra.mxu1 %vm415_vm1, %v592_v9 }
 0x3b3   : > { %813 = vmatpush.bf16.msra.mxu1 %v804_v45 }
 0x3c2   : > { %1196 = vmatmul.msk.bf16.vlgmr.msrb.gmra.mxu1 %vm335_vm0, %v1397_v4 }
 0x42f   : > { %v609_v14 = vpop.f32.mrf.mxu1 }
 0x430   : > { %v613_v16 = vpack.c.bf16 %v609_v14, %v609_v14 }
 0x432   : > { %1169 = vmatmul.msk.bf16.vlgmr.msra.gmra.mxu2 %vm415_vm1, %v613_v16 }
 0x433   : > { %843 = vmatpush.bf16.msra.mxu2 %v1278_v42 }
 0x437   : > { %v611_v17 = vpop.f32.mrf.mxu1  ;;  %844 = vmatpush.bf16.msra.mxu2 %v1277_v43 }
 0x43f   : > { %v710_v18 = vpop.f32.mrf.mxu1 }
 0x440   : > { %v745_v19 = vpack.c.bf16 %v710_v18, %v710_v18 }
 0x442   : > { %v750_v20 = vsel %vm415_vm1, %v745_v19, 0  ;;  %1209 = vmatmul.msk.bf16.vlgmr.msrb.gmra.mxu2 %vm335_vm0, %v1397_v4 }
 0x443   : > { %759 = vmatpush.bf16.xpose.msrb.mxu3 %v750_v20 }
 0x447   : > { %v712_v22 = vpop.f32.mrf.mxu1 }
 0x44a   : > { %1210 = vmatmul.msk.bf16.vlgmr.msrb.gmra.mxu3 %vm415_vm1, %v744_v21 }
 0x44b   : > { %873 = vmatpush.bf16.msra.mxu3 %v1280_v31  ;;  %v1323_v31 = vmov 32.0  }
 0x44f   : > { %874 = vmatpush.bf16.msra.mxu3 %v1279_v41 }
 0x452   : > { %1226 = vmatmul.msk.bf16.vlgmr.msra.gmra.mxu2 %vm335_vm0, %v1397_v4 }
 0x45a   : > { %1239 = vmatmul.msk.bf16.vlgmr.msra.gmra.mxu3 %vm335_vm0, %v1397_v4 }
 0x4b5   : > { %v631_v23 = vpop.f32.mrf.mxu2 }
 0x4b6   : > { %v651_v63 = vadd.f32 %v1458_v58, %v631_v23 }
 0x4bd   : > { %v633_v26 = vpop.f32.mrf.mxu2 }
 0x4c5   : > { %v740_v32 = vpop.f32.mrf.mxu2 }
 0x4c6   : > { %v777_v33 = vpack.c.bf16 %v740_v32, %v740_v32 }
 0x4c8   : > { %v782_v35 = vsel %vm451_vm2, %v777_v33, 0 }
 0x4c9   : > { %791 = vmatpush.bf16.msra.mxu0 %v782_v35 }
 0x4cd   : > { %v761_v27 = vpop.f32.mrf.mxu3  ;;  %v742_v38 = vpop.f32.mrf.mxu2  ;;  %903 = vmatpush.bf16.msrb.mxu0 %v1282_v61 }
 0x4ce   : > { %v762_v28 = vadd.f32 %v1420_v15, %v761_v27 }
 0x4d0   : > { %v765_v29 = vsel %vm415_vm1, %v762_v28, -inf }
 0x4d1   : > { %766 = vmax.xlane.f32.xlu2 %v765_v29  ;;  %904 = vmatpush.bf16.msrb.mxu0 %v1281_v62 }
 0x4d5   : > { %v763_v30 = vpop.f32.mrf.mxu3  ;;  %v846_v54 = vpop.f32.mrf.mxu2 }
 0x4d6   : > { %v910_v60 = vpack.c.bf16 %v846_v54, %v846_v54 }
 0x4dd   : > { %v876_v50 = vpop.f32.mrf.mxu3  ;;  %v848_v55 = vpop.f32.mrf.mxu2 }
 0x4de   : > { %v911_v51 = vpack.c.bf16 %v876_v50, %v876_v50 }
 0x4e0   : > { %v916_v52 = vsel %vm415_vm1, %v911_v51, 0  ;;  %v1293_v51 = vld [vmem:[%s1563_s6] ss:$0 sm:$0xff] }
 0x4e1   : > { %925 = vmatpush.bf16.xpose.msrb.mxu1 %v916_v52 }
 0x4e5   : > { %v878_v53 = vpop.f32.mrf.mxu3 }
 0x4e6   : > { %v1294_v53 = vld [vmem:[%s1564_s7] ss:$0 sm:$0xff] }
 0x544   : > { %v767_v34 = vpop.xlane.xlu2 %766 }
 0x545   : > { %v768_v36 = vsub.f32 %v762_v28, %v767_v34 }
 0x547   : > { %v769_v37 = vmul.f32 1.442695, %v768_v36 }
 0x549   : > { %1303 = vpow2.f32 %v769_v37 }
 0x54f   : > { %v1304_v39 = vpop.eup %1303 }
 0x550   : > { %v771_v40 = vsel %vm415_vm1, %v1304_v39, 0.0 }
 0x551   : > { %772 = vadd.xlane.f32.xlu2 %v771_v40 }
 0x5c4   : > { %v773_v46 = vpop.xlane.xlu2 %772 }
 0x5c5   : > { %1305 = vrcp.f32 %v773_v46 }
 0x5cb   : > { %v1306_v47 = vpop.eup %1305 }
 0x5cc   : > { %v775_v48 = vmul.f32 %v1306_v47, %v1304_v39 }
 0x5ce   : > { %v776_v49 = vpack.c.bf16 %v775_v48, %v775_v48 }
 0x5d0   : > { %1211 = vmatmul.msk.bf16.vlgmr.msra.gmra.mxu0 %vm415_vm1, %v776_v49 }
 0x5e0   : > { %1252 = vmatmul.msk.bf16.vlgmr.msrb.gmra.mxu0 %vm335_vm0, %v1397_v4 }
 0x64d   : > { %v793_v56 = vpop.f32.mrf.mxu0 }
 0x64e   : > { %v797_v57 = vpack.c.bf16 %v793_v56, %v793_v56 }
 0x650   : > { %1213 = vmatmul.msk.bf16.vlgmr.msra.gmra.mxu1 %vm415_vm1, %v797_v57 }
 0x655   : > { %v795_v59 = vpop.f32.mrf.mxu0 }
 0x65d   : > { %v906_v8 = vpop.f32.mrf.mxu0 }
 0x65e   : > { %v943_v9 = vpack.c.bf16 %v906_v8, %v906_v8 }
 0x660   : > { %1253 = vmatmul.msk.bf16.vlgmr.msrb.gmra.mxu1 %vm415_vm1, %v910_v60  ;;  %v948_v10 = vsel %vm451_vm2, %v943_v9, 0 }
 0x661   : > { %957 = vmatpush.bf16.msrb.mxu2 %v948_v10 }
 0x665   : > { %v908_v11 = vpop.f32.mrf.mxu0 }
 0x6cd   : > { %v815_v0 = vpop.f32.mrf.mxu1 }
 0x6ce   : > { %v819_v1 = vadd.f32 %v815_v0, %v651_v63 }
 0x6d5   : > { %v817_v2 = vpop.f32.mrf.mxu1 }
 0x6dd   : > { %v927_v3 = vpop.f32.mrf.mxu1 }
 0x6de   : > { %v928_v5 = vadd.f32 %v1420_v15, %v927_v3  ;;  %v1255_v15 = vld [vmem:[%s1562_s5 + $0xc] sm:$0xf] }
 0x6df   : > { %v970_v17 = vsel %vm451_vm2, %v1255_v15, 0 }
 0x6e0   : > { %v931_v6 = vsel %vm415_vm1, %v928_v5, -inf  ;;  %979 = vmatpush.bf16.msrb.mxu3 %v970_v17 }
 0x6e1   : > { %932 = vmax.xlane.f32.xlu0 %v931_v6 }
 0x6e5   : > { %v929_v7 = vpop.f32.mrf.mxu1 }
 0x754   : > { %v933_v58 = vpop.xlane.xlu0 %932 }
 0x755   : > { %v934_v12 = vsub.f32 %v928_v5, %v933_v58 }
 0x757   : > { %v935_v13 = vmul.f32 1.442695, %v934_v12 }
 0x759   : > { %1307 = vpow2.f32 %v935_v13 }
 0x75f   : > { %v1308_v14 = vpop.eup %1307 }
 0x760   : > { %v937_v16 = vsel %vm415_vm1, %v1308_v14, 0.0 }
 0x761   : > { %938 = vadd.xlane.f32.xlu1 %v937_v16 }
 0x7d4   : > { %v939_v18 = vpop.xlane.xlu1 %938 }
 0x7d5   : > { %1309 = vrcp.f32 %v939_v18 }
 0x7d6   : > { %1311 = vrcp.f32 %v1323_v31 }
 0x7db   : > { %v1310_v19 = vpop.eup %1309 }
 0x7dc   : > { %v941_v20 = vmul.f32 %v1310_v19, %v1308_v14  ;;  %v1312_v32 = vpop.eup %1311 }
 0x7dd   : > { %v993_v33 = vmul.f32 32.0, %v1312_v32  ;;  %vm997_vm3 = vweird.f32 %v1312_v32 }
 0x7de   : > { %v942_v21 = vpack.c.bf16 %v941_v20, %v941_v20 }
 0x7df   : > { %v994_v34 = vsub.f32 1.0, %v993_v33 }
 0x7e0   : > { %1254 = vmatmul.msk.bf16.vlgmr.msrb.gmra.mxu2 %vm415_vm1, %v942_v21 }
 0x7e1   : > { %v995_v35 = vmul.f32 %v1312_v32, %v994_v34 }
 0x7e3   : > { %v996_v36 = vadd.f32 %v1312_v32, %v995_v35 }
 0x7e5   : > { %v998_v37 = vsel %vm997_vm3, %v1312_v32, %v996_v36 }
 0x863   : > { %v959_v22 = vpop.f32.mrf.mxu2 }
 0x864   : > { %v963_v23 = vpack.c.bf16 %v959_v22, %v959_v22 }
 0x866   : > { %1256 = vmatmul.msk.bf16.vlgmr.msrb.gmra.mxu3 %vm415_vm1, %v963_v23 }
 0x86b   : > { %v961_v24 = vpop.f32.mrf.mxu2 }
 0x8e9   : > { %v981_v26 = vpop.f32.mrf.mxu3 }
 0x8ea   : > { %v985_v27 = vadd.f32 %v981_v26, %v819_v1 }
 0x8ec   : > { %v986_v28 = vadd.f32 %v985_v27, %v317_v25 }
 0x8ee   : > { %v989_v29 = vsel %vm335_vm0, %v986_v28, 0.0 }
 0x8ef   : > { %990 = vadd.xlane.f32.xlu2 %v989_v29 }
 0x8f1   : > { %v983_v30 = vpop.f32.mrf.mxu3 }
 0x962   : > { %v991_v38 = vpop.xlane.xlu2 %990 }
 0x963   : > { %v999_v39 = vmul.f32 %v998_v37, %v991_v38 }
 0x965   : > { %v1000_v40 = vsub.f32 %v986_v28, %v999_v39 }
 0x967   : > { %v1001_v4 = vmul.f32 %v1000_v40, %v1000_v40 }
 0x969   : > { %v1002_v41 = vsel %vm335_vm0, %v1001_v4, 0.0 }
 0x96a   : > { %1003 = vadd.xlane.f32.xlu0 %v1002_v41 }
 0x9dd   : > { %v1004_v42 = vpop.xlane.xlu0 %1003 }
 0x9de   : > { %v1005_v43 = vmul.f32 %v1004_v42, %v998_v37 }
 0x9e0   : > { %v1006_v44 = vadd.f32 1e-06, %v1005_v43 }
 0x9e2   : > { %1313 = vrsqrt.f32 %v1006_v44  ;;  %vm1013_vm5 = vweird.f32 %v1006_v44 }
 0x9e8   : > { %v1314_v45 = vpop.eup %1313 }
 0x9e9   : > { %v1008_v46 = vmul.f32 %v1314_v45, %v1006_v44  ;;  %vm1014_vm4 = vweird.f32 %v1314_v45 }
 0x9ea   : > { %vm1015_vm6 = vmor %vm1013_vm5, %vm1014_vm4 }
 0x9eb   : > { %v1009_v47 = vmul.f32 %v1314_v45, %v1008_v46 }
 0x9ed   : > { %v1010_v48 = vmul.f32 0.5, %v1009_v47 }
 0x9ef   : > { %v1011_v49 = vsub.f32 1.5, %v1010_v48 }
 0x9f1   : > { %v1012_v50 = vmul.f32 %v1314_v45, %v1011_v49 }
 0x9f3   : > { %v1016_v52 = vsel %vm1015_vm6, %v1314_v45, %v1012_v50 }
 0x9f4   : > { %v1017_v54 = vmul.f32 %v1016_v52, %v1000_v40 }
 0x9f6   : > { %v1021_v55 = vmul.f32 %v1293_v51, %v1017_v54 }
 0x9f8   : > { %v1025_v56 = vadd.f32 %v1294_v53, %v1021_v55 }
 0x9fa   : > { %v1026_v57 = vpack.c.bf16 %v1025_v56, %v1025_v56 }
 0x9fc   : > { %1028 = vst.msk [vmem:[%s314_s19] sm:$0xf] %vm1027_vm7, %v1026_v57 }
 0x9fd PF: > { %s18_s27 = sadd.s32 1, %s1321_s27  }
 0x9fe   : > { %p15_p4 = scmp.ge.s32.totalorder %s18_s27, 4  }
 0xa00   :  { %17 = sbr.rel (!%p15_p4) target bundleno = 1 (0x1), region = 97 }

// kernel: classification_transformer_forward.11
= control target key start
LH: loop header
LB: loop body
LE: loop exit
PB: predicated region body
PF: predicated region fallthrough
CT: control target
= control target key end

     0   :  { %s4026_s0 = inlined_call_operand.vmem [shape: f32[1,32], index: 0, kind: input, shape index: {}]   ;;  %s4027_s1 = inlined_call_operand.vmem [shape: bf16[2,8,32], index: 1, kind: input, shape index: {}]   ;;  %s4028_s2 = inlined_call_operand.vmem [shape: f32[2,1,8], index: 2, kind: input, shape index: {}]   ;;  %s4029_s3 = inlined_call_operand.vmem [shape: f32[1,32], index: 3, kind: input, shape index: {}]   ;;  %s4030_s4 = inlined_call_operand.vmem [shape: f32[1,32], index: 4, kind: input, shape index: {}]   ;;  %s4031_s5 = inlined_call_operand.vmem [shape: bf16[2,32,32], index: 5, kind: input, shape index: {}]   ;;  %s4032_s6 = inlined_call_operand.vmem [shape: bf16[2,32,32], index: 6, kind: input, shape index: {}]   ;;  %s4033_s7 = inlined_call_operand.vmem [shape: f32[2,1,32], index: 7, kind: input, shape index: {}]   ;;  %s4034_s8 = inlined_call_operand.vmem [shape: f32[2,1,32], index: 8, kind: input, shape index: {}]   ;;  %s4035_s9 = inlined_call_operand.vmem [shape: bf16[2,4,32,8], index: 9, kind: input, shape index: {}]   ;;  %s4036_s10 = inlined_call_operand.vmem [shape: bf16[2,4,32,8], index: 10, kind: input, shape index: {}]   ;;  %s4037_s11 = inlined_call_operand.vmem [shape: bf16[2,4,32,8], index: 11, kind: input, shape index: {}]   ;;  %s4038_s12 = inlined_call_operand.vmem [shape: bf16[2,4,8,32], index: 12, kind: input, shape index: {}]   ;;  %s4039_s13 = inlined_call_operand.vmem [shape: f32[2,1,32], index: 13, kind: input, shape index: {}]   ;;  %s4040_s14 = inlined_call_operand.vmem [shape: f32[2,1,32], index: 14, kind: input, shape index: {}]   ;;  %s4041_s15 = inlined_call_operand.vmem [shape: bf16[2,32,64], index: 15, kind: input, shape index: {}]   ;;  %s4042_s16 = inlined_call_operand.vmem [shape: f32[2,1,64], index: 16, kind: input, shape index: {}]   ;;  %s4043_s17 = inlined_call_operand.vmem [shape: bf16[2,64,32], index: 17, kind: input, shape index: {}]   ;;  %s4044_s18 = inlined_call_operand.vmem [shape: f32[2,1,32], index: 18, kind: input, shape index: {}]   ;;  %s4045_s19 = inlined_call_operand.vmem [shape: f32[2,1,32], index: 19, kind: input, shape index: {}]   ;;  %s4046_s20 = inlined_call_operand.vmem [shape: f32[2,1,32], index: 20, kind: input, shape index: {}]   ;;  %s4047_s21 = inlined_call_operand.vmem [shape: bf16[32,5], index: 21, kind: input, shape index: {}]   ;;  %s4048_s22 = inlined_call_operand.hbm [shape: f32[2,1,5], index: 22, kind: output, shape index: {}]  }
   0x1   :  { %4061 = sst [smem:[#allocation12_spill]] %s4026_s0 }
   0x2   :  { %4062 = sst [smem:[#allocation13_spill]] %s4027_s1 }
   0x3   :  { %4063 = sst [smem:[#allocation14_spill]] %s4028_s2 }
   0x4   :  { %4064 = sst [smem:[#allocation15_spill]] %s4029_s3 }
   0x5   :  { %4065 = sst [smem:[#allocation16_spill]] %s4030_s4 }
   0x6   :  { %4066 = sst [smem:[#allocation17_spill]] %s4031_s5 }
   0x7   :  { %4067 = sst [smem:[#allocation18_spill]] %s4032_s6 }
   0x8   :  { %4068 = sst [smem:[#allocation19_spill]] %s4033_s7 }
   0x9   :  { %4069 = sst [smem:[#allocation20_spill]] %s4034_s8 }
   0xa   :  { %4070 = sst [smem:[#allocation21_spill]] %s4048_s22 }
   0xb   :  { %27 = vsyncpa [#allocation3], 0 }
   0xc   :  { %29 = vsyncpa [#allocation3 + $0x1], 0  ;;  %s3455_s3 = smov 0   ;;  %s3457_s28 = smov 0  }
   0xd   :  { %s3459_s29 = smov 0   ;;  %s3461_s30 = smov 0  }
   0xe LB: > { %4071 = sst [smem:[#allocation5_spill]] %s3325_s3  ;;  %s3476_s4 = sadd.s32 4294967295, %s3337_s30   ;;  %s3337_s30 = sphi %s3461_s30, %s4095_s30   ;;  %s3333_s29 = sphi %s3459_s29, %s4097_s29   ;;  %s3329_s28 = sphi %s3457_s28, %s4099_s28   ;;  %s3325_s3 = sphi %s3455_s3, %s4098_s3  }
   0xf   : > { %4072 = sst [smem:[#allocation6_spill]] %s3333_s29  ;;  %s2652_s0 = sadd.s32 4294967294, %s3337_s30  }
  0x10   : > { %4073 = sst [smem:[#allocation7_spill]] %s3337_s30  ;;  %s3480_s23 = sadd.s32 1, %s3337_s30  }
  0x11   : > { %4074 = sst [smem:[#allocation8_spill]] %s3480_s23  ;;  %s514_s1 = sadd.s32 1, %s3333_s29 }
  0x12   : > { %s511_s5 = ssub.s32 %s3337_s30, %s3480_s23  ;;  %p524_p0 = scmp.ne.s32.totalorder %s3333_s29, %s3329_s28 }
  0x13   : > { %p512_p1 = scmp.eq.s32.totalorder %s511_s5, 0  ;;  %p525_p2 = scmp.eq.s32.totalorder %s3476_s4, 1 }
  0x14   : > { %p530_p3 = scmp.ne.s32.totalorder %s3329_s28, %s3325_s3  ;;  %p531_p4 = scmp.eq.s32.totalorder %s2652_s0, 1 }
  0x15   : > { %s3491_s24 = scalar_select %p512_p1, %s3333_s29, %s514_s1  }
  0x16   : > { %p3493_p5 = por %p525_p2, %p524_p0  ;;  %p3497_p6 = por %p531_p4, %p530_p3 }
  0x17   : > { %4075 = sst [smem:[#allocation9_spill]] %s3491_s24  ;;  %p2655_p7 = scmp.ge.s32.totalorder %s3337_s30, 1 }
  0x18   : > { %s4076_s6 = scalar_select %p3493_p5, 1, 0 }
  0x19   : > { %s4078_s25 = scalar_select %p3497_p6, 1, 0 }
  0x1a   : > { %4077 = sst [smem:[#allocation10_spill]] %s4076_s6  ;;  %p622_p8 = scmp.lt.s32.totalorder %s3337_s30, 3 }
  0x1b   : > { %4079 = sst [smem:[#allocation11_spill]] %s4078_s25 }
  0x1c   : > { %p623_p9 = pnand %p2655_p7, %p622_p8 }
  0x1d   : > { %s4080_s27 = sld [smem:[#allocation12_spill]] (!%p623_p9)  ;;  %p685_p10 = scmp.lt.s32.totalorder (!%p623_p9), %s3476_s4, 1 }
  0x1e   : > { %626 = sbr.rel (%p623_p9) target bundleno = 7648 (0x1de0), region = 108  ;;  %s4081_s5 = sld [smem:[#allocation17_spill]] (!%p623_p9) }
  0x1f   : > { %s4082_s29 = sld [smem:[#allocation18_spill]] (!%p623_p9) }
  0x20   : > { %s4084_s24 = sld [smem:[#allocation15_spill]] (!%p623_p9) }
  0x21   : > { %s4085_s2 = sld [smem:[#allocation16_spill]] (!%p623_p9) }
  0x22   : > { %s4086_s3 = sld [smem:[#allocation13_spill]] (!%p623_p9) }
  0x23   : > { %v693_v0 = vld [vmem:[%s4080_s27] sm:$0x1]  ;;  %vm696_vm0 = vcmask 253952   ;;  %v3339_v2 = vmov 32.0   ;;  %vm747_vm5 = vcmask 261120   ;;  %s3537_s25 = scalar_select %p685_p10, %s3476_s4, 1 }
  0x24   : > { %v697_v1 = vsel %vm696_vm0, %v693_v0, 0.0  ;;  %3225 = vrcp.f32 %v3339_v2  ;;  %v3116_v14 = vld [vmem:[%s4081_s5 + $0x8] sm:$0xff]  ;;  %v3115_v15 = vld [vmem:[%s4081_s5] sm:$0xff]  ;;  %v3126_v50 = vld [vmem:[%s4035_s9 + $0x18] sm:$0xff]  ;;  %s4087_s7 = sld [smem:[#allocation19_spill]]  ;;  %vm919_vm9 = vcmask 64512  }
  0x25   : > { %698 = vadd.xlane.f32.xlu0 %v697_v1  ;;  %757 = vmatpush.bf16.msra.mxu0 %v3116_v14  ;;  %s4083_s23 = smov %s4082_s29  ;;  %v3118_v16 = vld [vmem:[%s4082_s29 + $0x8] sm:$0xff]  ;;  %v3121_v47 = vld [vmem:[%s4036_s10] sm:$0xff]  ;;  %v3125_v52 = vld [vmem:[%s4035_s9 + $0x10] sm:$0xff]  ;;  %s4088_s8 = sld [smem:[#allocation20_spill]]  ;;  %vm939_vm10 = vcmask 57344   ;;  %vm956_vm11 = vcmask 1043456  }
  0x26   : > { %790 = vmatpush.bf16.msra.mxu1 %v3118_v16  ;;  %v694_v27 = vld [vmem:[%s4084_s24] sm:$0x1]  ;;  %v3122_v46 = vld [vmem:[%s4036_s10 + $0x8] sm:$0xff]  ;;  %s2656_s24 = sshll.u32 %s3537_s25, 2  ;;  %s4089_s22 = sld [smem:[#allocation14_spill]]  ;;  %vm1587_vm15 = vcmask 523264  }
  0x27   : > { %v695_v29 = vld [vmem:[%s4085_s2] sm:$0x1]  ;;  %881 = vmatpush.bf16.msra.mxu3 %v3122_v46  ;;  %v3120_v49 = vld [vmem:[%s4035_s9 + $0x8] sm:$0xff]  ;;  %s683_s29 = sand.u32 1, %s3329_s28  }
  0x28   : > { %v3117_v33 = vld [vmem:[%s4083_s23] sm:$0xff]  ;;  %s3549_s30 = scalar_lea.vmem %s4086_s3, %s2656_s24  ;;  %849 = vmatpush.bf16.msra.mxu2 %v3120_v49  ;;  %s4091_s24 = sld [smem:[#allocation21_spill]] }
  0x29   : > { %758 = vmatpush.bf16.msra.mxu0 %v3115_v15  ;;  %v3552_v48 = vld [vmem:[%s3549_s30] sm:$0xf]  ;;  %v3124_v15 = vld [vmem:[%s4037_s11 + $0x8] sm:$0xff]  ;;  %s2576_s27 = scalar_lea.sflag [#allocation3], %s683_s29 }
  0x2a   : > { %v3226_v3 = vpop.eup %3225  ;;  %791 = vmatpush.bf16.msra.mxu1 %v3117_v33  ;;  %v3119_v51 = vld [vmem:[%s4035_s9] sm:$0xff] }
  0x2b   : > { %v701_v4 = vmul.f32 32.0, %v3226_v3  ;;  %vm705_vm1 = vweird.f32 %v3226_v3  ;;  %882 = vmatpush.bf16.msra.mxu3 %v3121_v47  ;;  %v797_v63 = vld [vmem:[%s4087_s7] sm:$0x1] }
  0x2c   : > { %850 = vmatpush.bf16.msra.mxu2 %v3119_v51  ;;  %v798_v1 = vld [vmem:[%s4088_s8] sm:$0x1]  ;;  %s3599_s6 = scalar_lea.vmem %s4089_s22, %s3537_s25 }
  0x2d   : > { %v702_v5 = vsub.f32 1.0, %v701_v4  ;;  %910 = vmatpush.bf16.msrb.mxu0 %v3124_v15  ;;  %v3123_v16 = vld [vmem:[%s4037_s11] sm:$0xff] }
  0x2e   : > { %2692 = vmatmul.msk.bf16.vlgmr.msra.gmra.mxu3 %vm747_vm5, %v3552_v48  ;;  %v974_v46 = vld [vmem:[%s4038_s12] sm:$0xf]  ;;  %s2584_s26 = scalar_lea.hbm %s4091_s24, %s3476_s4  ;;  %s3295_s4 = scalar_lea.hbm %s4091_s24, 2 }
  0x2f   : > { %v703_v6 = vmul.f32 %v3226_v3, %v702_v5  ;;  %998 = vmatpush.bf16.msrb.mxu3 %v3126_v50  ;;  %v1144_v47 = vsel %vm956_vm11, %v974_v46, 0  ;;  %v3139_v46 = vld [vmem:[%s4036_s10 + $0x30] sm:$0xff]  ;;  %s2588_s2 = sshll.u32 %s2584_s26, 4  ;;  %s2589_s2 = int_to_ptr.hbm [resolvable:$true] %s2588_s2 }
  0x30   : > { %s3289_s0 = sshra.s32 %s2589_s2, 4  ;;  %s3290_s0 = int_to_ptr.hbm [resolvable:$true] %s3289_s0 }
  0x31   : > { %v704_v7 = vadd.f32 %v3226_v3, %v703_v6  ;;  %911 = vmatpush.bf16.msrb.mxu0 %v3123_v16  ;;  %v3136_v16 = vld [vmem:[%s4037_s11 + $0x28] sm:$0xff]  ;;  %s3291_s1 = scalar_lea.hbm %s3290_s0, 1  ;;  %p3296_p0 = scmp.lt.s32.totalorder %s3290_s0, %s4091_s24 }
  0x32   : > { %p3292_p11 = scmp.ne.s32.totalorder %s3290_s0, %s3291_s1  ;;  %p3297_p1 = scmp.lt.s32.totalorder %s3295_s4, %s3291_s1 }
  0x33   : > { %v3507_v8 = vsel %vm705_vm1, %v3226_v3, %v704_v7  ;;  %999 = vmatpush.bf16.msrb.mxu3 %v3125_v52 }
  0x34   : > { %p3293_p12 = pnand %p3292_p11, %p3493_p5  ;;  %p3298_p2 = por %p3297_p1, %p3296_p0 }
  0x36   : > { %p3294_p13 = pneg %p3293_p12 }
  0x38   : > { %p3299_p3 = pnand %p3298_p2, %p3294_p13 }
  0x98   : > { %v699_v9 = vpop.xlane.xlu0 %698 }
  0x99   : > { %v707_v10 = vmul.f32 %v3507_v8, %v699_v9 }
  0x9b   : > { %v708_v11 = vsub.f32 %v693_v0, %v707_v10 }
  0x9d   : > { %v709_v12 = vmul.f32 %v708_v11, %v708_v11 }
  0x9f   : > { %v710_v13 = vsel %vm696_vm0, %v709_v12, 0.0 }
  0xa0   : > { %711 = vadd.xlane.f32.xlu0 %v710_v13 }
  0xb1   : > { %v884_v5 = vpop.f32.mrf.mxu3 }
  0xb2   : > { %v918_v6 = vpack.c.bf16 %v884_v5, %v884_v5 }
  0xb4   : > { %v924_v7 = vsel %vm919_vm9, %v918_v6, 0 }
  0xb5   : > { %933 = vmatpush.bf16.xpose.msrb.mxu1 %v924_v7  ;;  %v3134_v7 = vld [vmem:[%s4036_s10 + $0x28] sm:$0xff] }
  0xb9   : > { %v886_v9 = vpop.f32.mrf.mxu3 }
  0xba   : > { %v3133_v9 = vld [vmem:[%s4036_s10 + $0x20] sm:$0xff] }
 0x113   : > { %v712_v17 = vpop.xlane.xlu0 %711 }
 0x114   : > { %v713_v18 = vmul.f32 %v712_v17, %v3507_v8  ;;  %v3602_v17 = vld [vmem:[%s3599_s6] sm:$0x1] }
 0x116   : > { %v714_v19 = vadd.f32 1e-06, %v713_v18 }
 0x118   : > { %3227 = vrsqrt.f32 %v714_v19  ;;  %vm721_vm3 = vweird.f32 %v714_v19 }
 0x11e   : > { %v3228_v20 = vpop.eup %3227 }
 0x11f   : > { %v716_v21 = vmul.f32 %v3228_v20, %v714_v19  ;;  %vm722_vm2 = vweird.f32 %v3228_v20 }
 0x120   : > { %vm723_vm4 = vmor %vm721_vm3, %vm722_vm2 }
 0x121   : > { %v717_v22 = vmul.f32 %v3228_v20, %v716_v21 }
 0x123   : > { %v718_v23 = vmul.f32 0.5, %v717_v22  ;;  %v3128_v22 = vld [vmem:[%s4036_s10 + $0x18] sm:$0xff] }
 0x125   : > { %v719_v24 = vsub.f32 1.5, %v718_v23  ;;  %v3127_v23 = vld [vmem:[%s4036_s10 + $0x10] sm:$0xff] }
 0x127   : > { %v720_v25 = vmul.f32 %v3228_v20, %v719_v24 }
 0x129   : > { %v724_v26 = vsel %vm723_vm4, %v3228_v20, %v720_v25 }
 0x12a   : > { %v725_v28 = vmul.f32 %v724_v26, %v708_v11 }
 0x12c   : > { %v726_v30 = vmul.f32 %v725_v28, %v694_v27 }
 0x12e   : > { %v727_v31 = vadd.f32 %v726_v30, %v695_v29 }
 0x130   : > { %v730_v32 = vpack.c.bf16 %v727_v31, %v727_v31 }
 0x132   : > { %2665 = vmatmul.msk.bf16.vlgmr.msra.gmra.mxu0 %vm747_vm5, %v730_v32 }
 0x133   : > { %1028 = vmatpush.bf16.msra.mxu0 %v3128_v22  ;;  %v3137_v22 = vld [vmem:[%s4035_s9 + $0x30] sm:$0xff] }
 0x137   : > { %1029 = vmatpush.bf16.msra.mxu0 %v3127_v23 }
 0x142   : > { %2701 = vmatmul.msk.bf16.vlgmr.msrb.gmra.mxu0 %vm747_vm5, %v3552_v48 }
 0x152   : > { %2729 = vmatmul.msk.bf16.vlgmr.msra.gmra.mxu0 %vm747_vm5, %v3552_v48 }
 0x1af   : > { %v760_v34 = vpop.f32.mrf.mxu0 }
 0x1b0   : > { %v764_v35 = vpack.c.bf16 %v760_v34, %v760_v34 }
 0x1b2   : > { %2674 = vmatmul.msk.bf16.vlgmr.msra.gmra.mxu1 %vm747_vm5, %v764_v35 }
 0x1b7   : > { %v762_v36 = vpop.f32.mrf.mxu0 }
 0x1bf   : > { %v913_v24 = vpop.f32.mrf.mxu0 }
 0x1c7   : > { %v915_v25 = vpop.f32.mrf.mxu0 }
 0x1cf   : > { %v1031_v33 = vpop.f32.mrf.mxu0 }
 0x1d0   : > { %v1066_v34 = vpack.c.bf16 %v1031_v33, %v1031_v33 }
 0x1d2   : > { %v1071_v35 = vsel %vm919_vm9, %v1066_v34, 0 }
 0x1d7   : > { %v1033_v36 = vpop.f32.mrf.mxu0 }
 0x22f   : > { %v793_v37 = vpop.f32.mrf.mxu1 }
 0x230   : > { %v794_v38 = vadd.f32 %v793_v37, %v727_v31  ;;  %v952_v31 = vpack.c.bf16 %v913_v24, %v913_v24 }
 0x232   : > { %v799_v39 = vsel %vm696_vm0, %v794_v38, 0.0  ;;  %v958_v32 = vsel %vm956_vm11, %v952_v31, 0 }
 0x233   : > { %800 = vadd.xlane.f32.xlu1 %v799_v39  ;;  %967 = vmatpush.bf16.msrb.mxu2 %v958_v32 }
 0x237   : > { %v795_v40 = vpop.f32.mrf.mxu1 }
 0x238   : > { %v3132_v40 = vld [vmem:[%s4035_s9 + $0x28] sm:$0xff] }
 0x2a6   : > { %v801_v41 = vpop.xlane.xlu1 %800 }
 0x2a7   : > { %v802_v42 = vmul.f32 %v801_v41, %v3507_v8 }
 0x2a9   : > { %v803_v43 = vsub.f32 %v794_v38, %v802_v42  ;;  %v3130_v42 = vld [vmem:[%s4037_s11 + $0x18] sm:$0xff] }
 0x2aa   : > { %1058 = vmatpush.bf16.msra.mxu1 %v3130_v42 }
 0x2ab   : > { %v804_v44 = vmul.f32 %v803_v43, %v803_v43 }
 0x2ad   : > { %v805_v45 = vsel %vm696_vm0, %v804_v44, 0.0  ;;  %v3129_v44 = vld [vmem:[%s4037_s11 + $0x10] sm:$0xff] }
 0x2ae   : > { %806 = vadd.xlane.f32.xlu1 %v805_v45  ;;  %1059 = vmatpush.bf16.msra.mxu1 %v3129_v44 }
 0x321   : > { %v807_v53 = vpop.xlane.xlu1 %806 }
 0x322   : > { %v808_v54 = vmul.f32 %v807_v53, %v3507_v8 }
 0x324   : > { %v809_v55 = vadd.f32 1e-06, %v808_v54 }
 0x326   : > { %3229 = vrsqrt.f32 %v809_v55  ;;  %vm816_vm7 = vweird.f32 %v809_v55 }
 0x32c   : > { %v3230_v56 = vpop.eup %3229 }
 0x32d   : > { %v811_v57 = vmul.f32 %v3230_v56, %v809_v55  ;;  %vm817_vm6 = vweird.f32 %v3230_v56 }
 0x32e   : > { %vm818_vm8 = vmor %vm816_vm7, %vm817_vm6 }
 0x32f   : > { %v812_v58 = vmul.f32 %v3230_v56, %v811_v57 }
 0x331   : > { %v813_v59 = vmul.f32 0.5, %v812_v58 }
 0x333   : > { %v814_v60 = vsub.f32 1.5, %v813_v59 }
 0x335   : > { %v815_v61 = vmul.f32 %v3230_v56, %v814_v60 }
 0x337   : > { %v819_v62 = vsel %vm818_vm8, %v3230_v56, %v815_v61 }
 0x338   : > { %v820_v0 = vmul.f32 %v819_v62, %v803_v43  ;;  %v3131_v43 = vld [vmem:[%s4035_s9 + $0x20] sm:$0xff] }
 0x33a   : > { %v821_v2 = vmul.f32 %v820_v0, %v797_v63 }
 0x33c   : > { %v3575_v3 = vadd.f32 %v821_v2, %v798_v1 }
 0x33e   : > { %v3579_v4 = vpack.c.bf16 %v3575_v3, %v3575_v3 }
 0x340   : > { %2683 = vmatmul.msk.bf16.vlgmr.msra.gmra.mxu2 %vm747_vm5, %v3579_v4  ;;  %2716 = vmatmul.msk.bf16.vlgmr.msrb.gmra.mxu3 %vm747_vm5, %v3579_v4 }
 0x341   : > { %1080 = vmatpush.bf16.xpose.msra.mxu2 %v1071_v35 }
 0x3c3   : > { %v852_v10 = vpop.f32.mrf.mxu2  ;;  %v1001_v11 = vpop.f32.mrf.mxu3 }
 0x3c4   : > { %v917_v12 = vpack.c.bf16 %v852_v10, %v852_v10  ;;  %v1065_v45 = vpack.c.bf16 %v1001_v11, %v1001_v11 }
 0x3c6   : > { %2702 = vmatmul.msk.bf16.vlgmr.msrb.gmra.mxu1 %vm919_vm9, %v917_v12 }
 0x3c7   : > { %1153 = vmatpush.bf16.msrb.mxu1 %v1144_v47  ;;  %v2789_v47 = vld [vmem:[%s4038_s12 + $0x8] sm:$0xf] }
 0x3cb   : > { %v854_v13 = vpop.f32.mrf.mxu2  ;;  %v1003_v14 = vpop.f32.mrf.mxu3 }
 0x3cc   : > { %v2745_v14 = vld [vmem:[%s4038_s12 + $0x4] sm:$0xf] }
 0x3cd   : > { %v1125_v15 = vsel %vm956_vm11, %v2745_v14, 0 }
 0x3ce   : > { %1134 = vmatpush.bf16.msrb.mxu0 %v1125_v15 }
 0x3d2   : > { %1242 = vmatpush.bf16.msra.mxu0 %v3136_v16 }
 0x3d6   : > { %2742 = vmatmul.msk.bf16.vlgmr.msra.gmra.mxu1 %vm747_vm5, %v3552_v48 }
 0x443   : > { %v935_v18 = vpop.f32.mrf.mxu1 }
 0x444   : > { %v936_v19 = vadd.f32 %v935_v18, %v3602_v17  ;;  %v3135_v18 = vld [vmem:[%s4037_s11 + $0x20] sm:$0xff] }
 0x445   : > { %1243 = vmatpush.bf16.msra.mxu0 %v3135_v18 }
 0x446   : > { %v940_v20 = vsel %vm939_vm10, %v936_v19, -inf }
 0x447   : > { %941 = vmax.xlane.f32.xlu2 %v940_v20  ;;  %v3138_v20 = vld [vmem:[%s4035_s9 + $0x38] sm:$0xff] }
 0x44b   : > { %v937_v21 = vpop.f32.mrf.mxu1 }
 0x453   : > { %v1061_v52 = vpop.f32.mrf.mxu1 }
 0x454   : > { %v1098_v53 = vpack.c.bf16 %v1061_v52, %v1061_v52 }
 0x456   : > { %v1103_v54 = vsel %vm956_vm11, %v1098_v53, 0 }
 0x457   : > { %1112 = vmatpush.bf16.msra.mxu3 %v1103_v54 }
 0x45b   : > { %v1063_v56 = vpop.f32.mrf.mxu1  ;;  %1212 = vmatpush.bf16.msrb.mxu3 %v3134_v7 }
 0x45f   : > { %1213 = vmatpush.bf16.msrb.mxu3 %v3133_v9 }
 0x4ba   : > { %v942_v26 = vpop.xlane.xlu2 %941 }
 0x4bb   : > { %v943_v27 = vsub.f32 %v936_v19, %v942_v26 }
 0x4bd   : > { %v944_v28 = vmul.f32 1.442695, %v943_v27 }
 0x4bf   : > { %3231 = vpow2.f32 %v944_v28 }
 0x4c5   : > { %v3232_v29 = vpop.eup %3231 }
 0x4c6   : > { %v946_v30 = vsel %vm939_vm10, %v3232_v29, 0.0 }
 0x4c7   : > { %947 = vadd.xlane.f32.xlu2 %v946_v30 }
 0x53a   : > { %v948_v37 = vpop.xlane.xlu2 %947 }
 0x53b   : > { %3233 = vrcp.f32 %v948_v37 }
 0x541   : > { %v3234_v38 = vpop.eup %3233 }
 0x542   : > { %v950_v39 = vmul.f32 %v3234_v38, %v3232_v29 }
 0x544   : > { %v951_v41 = vpack.c.bf16 %v950_v39, %v950_v39 }
 0x546   : > { %2703 = vmatmul.msk.bf16.vlgmr.msrb.gmra.mxu2 %vm919_vm9, %v951_v41 }
 0x547   : > { %1182 = vmatpush.bf16.msrb.mxu2 %v3132_v40 }
 0x54b   : > { %1183 = vmatpush.bf16.msrb.mxu2 %v3131_v43 }
 0x556   : > { %2743 = vmatmul.msk.bf16.vlgmr.msra.gmra.mxu2 %vm919_vm9, %v1065_v45  ;;  %v3140_v45 = vld [vmem:[%s4036_s10 + $0x38] sm:$0xff] }
 0x566   : > { %2760 = vmatmul.msk.bf16.vlgmr.msrb.gmra.mxu2 %vm747_vm5, %v3579_v4 }
 0x5c9   : > { %v969_v49 = vpop.f32.mrf.mxu2 }
 0x5ca   : > { %v973_v50 = vpack.c.bf16 %v969_v49, %v969_v49  ;;  %v1309_v49 = vsel %vm956_vm11, %v2789_v47, 0 }
 0x5cc   : > { %2747 = vmatmul.msk.bf16.vlgmr.msrb.gmra.mxu1 %vm919_vm9, %v973_v50 }
 0x5d1   : > { %v971_v51 = vpop.f32.mrf.mxu2 }
 0x5d9   : > { %v1082_v55 = vpop.f32.mrf.mxu2 }
 0x5da   : > { %v1083_v57 = vadd.f32 %v1082_v55, %v3602_v17 }
 0x5dc   : > { %v1086_v58 = vsel %vm939_vm10, %v1083_v57, -inf }
 0x5dd   : > { %1087 = vmax.xlane.f32.xlu0 %v1086_v58 }
 0x5e1   : > { %v1084_v59 = vpop.f32.mrf.mxu2 }
 0x5e9   : > { %v1185_v60 = vpop.f32.mrf.mxu2 }
 0x5ea   : > { %v1249_v28 = vpack.c.bf16 %v1185_v60, %v1185_v60 }
 0x5f1   : > { %v1187_v61 = vpop.f32.mrf.mxu2 }
 0x649   : > { %v3643_v62 = vpop.f32.mrf.mxu1 }
 0x650   : > { %v1088_v63 = vpop.xlane.xlu0 %1087 }
 0x651   : > { %v1089_v0 = vsub.f32 %v1083_v57, %v1088_v63  ;;  %v1157_v1 = vpop.f32.mrf.mxu1  ;;  %v3142_v63 = vld [vmem:[%s4037_s11 + $0x38] sm:$0xff] }
 0x653   : > { %v1090_v2 = vmul.f32 1.442695, %v1089_v0  ;;  %v3141_v0 = vld [vmem:[%s4037_s11 + $0x30] sm:$0xff] }
 0x655   : > { %3235 = vpow2.f32 %v1090_v2 }
 0x65b   : > { %v3236_v5 = vpop.eup %3235 }
 0x65c   : > { %v1092_v6 = vsel %vm939_vm10, %v3236_v5, 0.0 }
 0x65d   : > { %1093 = vadd.xlane.f32.xlu1 %v1092_v6 }
 0x6d0   : > { %v1094_v10 = vpop.xlane.xlu1 %1093 }
 0x6d1   : > { %3237 = vrcp.f32 %v1094_v10 }
 0x6d7   : > { %v3238_v11 = vpop.eup %3237 }
 0x6d8   : > { %v1096_v12 = vmul.f32 %v3238_v11, %v3236_v5 }
 0x6da   : > { %v1097_v13 = vpack.c.bf16 %v1096_v12, %v1096_v12 }
 0x6dc   : > { %2744 = vmatmul.msk.bf16.vlgmr.msra.gmra.mxu3 %vm919_vm9, %v1097_v13 }
 0x6dd   : > { %1318 = vmatpush.bf16.msra.mxu3 %v1309_v49 }
 0x6ec   : > { %2773 = vmatmul.msk.bf16.vlgmr.msrb.gmra.mxu3 %vm747_vm5, %v3552_v48 }
 0x75f   : > { %v1114_v19 = vpop.f32.mrf.mxu3 }
 0x760   : > { %v1118_v21 = vpack.c.bf16 %v1114_v19, %v1114_v19 }
 0x762   : > { %2746 = vmatmul.msk.bf16.vlgmr.msrb.gmra.mxu0 %vm919_vm9, %v1118_v21  ;;  %v2832_v21 = vld [vmem:[%s4038_s12 + $0xc] sm:$0xf] }
 0x763   : > { %1348 = vmatpush.bf16.msrb.mxu0 %v3138_v20 }
 0x767   : > { %v1116_v23 = vpop.f32.mrf.mxu3  ;;  %1349 = vmatpush.bf16.msrb.mxu0 %v3137_v22  ;;  %v1475_v22 = vsel %vm956_vm11, %v2832_v21, 0 }
 0x76f   : > { %v1215_v24 = vpop.f32.mrf.mxu3 }
 0x770   : > { %v1250_v25 = vpack.c.bf16 %v1215_v24, %v1215_v24 }
 0x772   : > { %v1255_v26 = vsel %vm919_vm9, %v1250_v25, 0  ;;  %2786 = vmatmul.msk.bf16.vlgmr.msra.gmra.mxu0 %vm747_vm5, %v3552_v48 }
 0x773   : > { %1264 = vmatpush.bf16.xpose.msra.mxu1 %v1255_v26 }
 0x777   : > { %v1217_v27 = vpop.f32.mrf.mxu3 }
 0x77a   : > { %2787 = vmatmul.msk.bf16.vlgmr.msra.gmra.mxu1 %vm919_vm9, %v1249_v28 }
 0x77b   : > { %1378 = vmatpush.bf16.msrb.mxu1 %v3140_v45 }
 0x77f   : > { %1379 = vmatpush.bf16.msrb.mxu1 %v3139_v46 }
 0x782   : > { %2803 = vmatmul.msk.bf16.vlgmr.msrb.gmra.mxu0 %vm747_vm5, %v3579_v4 }
 0x783   : > { %1484 = vmatpush.bf16.msra.mxu1 %v1475_v22 }
 0x78a   : > { %2816 = vmatmul.msk.bf16.vlgmr.msrb.gmra.mxu1 %vm747_vm5, %v3552_v48 }
 0x7df   : > { %v1136_v29 = vpop.f32.mrf.mxu0 }
 0x7e0   : > { %v1156_v1 = vadd.f32 %v3643_v62, %v1136_v29 }
 0x7e7   : > { %v1138_v30 = vpop.f32.mrf.mxu0 }
 0x7ef   : > { %v1245_v31 = vpop.f32.mrf.mxu0 }
 0x7f0   : > { %v1282_v32 = vpack.c.bf16 %v1245_v31, %v1245_v31 }
 0x7f2   : > { %v1287_v33 = vsel %vm956_vm11, %v1282_v32, 0 }
 0x7f3   : > { %1296 = vmatpush.bf16.msra.mxu2 %v1287_v33 }
 0x7f7   : > { %v1247_v34 = vpop.f32.mrf.mxu0  ;;  %v1266_v35 = vpop.f32.mrf.mxu1  ;;  %1408 = vmatpush.bf16.msrb.mxu2 %v3142_v63 }
 0x7f8   : > { %v1267_v36 = vadd.f32 %v1266_v35, %v3602_v17 }
 0x7fa   : > { %v1270_v37 = vsel %vm939_vm10, %v1267_v36, -inf }
 0x7fb   : > { %1271 = vmax.xlane.f32.xlu2 %v1270_v37  ;;  %1409 = vmatpush.bf16.msrb.mxu2 %v3141_v0 }
 0x7ff   : > { %v1268_v38 = vpop.f32.mrf.mxu1  ;;  %v1351_v39 = vpop.f32.mrf.mxu0 }
 0x800   : > { %v1415_v61 = vpack.c.bf16 %v1351_v39, %v1351_v39 }
 0x807   : > { %v1353_v40 = vpop.f32.mrf.mxu0  ;;  %v1381_v54 = vpop.f32.mrf.mxu1 }
 0x808   : > { %v1416_v55 = vpack.c.bf16 %v1381_v54, %v1381_v54  ;;  %v3144_v40 = vld [vmem:[%s4041_s15 + $0x8] sm:$0xff] }
 0x80a   : > { %v1421_v56 = vsel %vm919_vm9, %v1416_v55, 0  ;;  %v1493_v55 = vld [vmem:[%s4040_s14] sm:$0x1] }
 0x80b   : > { %1430 = vmatpush.bf16.xpose.msrb.mxu3 %v1421_v56 }
 0x80f   : > { %v1383_v57 = vpop.f32.mrf.mxu1 }
 0x86e   : > { %v1272_v41 = vpop.xlane.xlu2 %1271 }
 0x86f   : > { %v1273_v42 = vsub.f32 %v1267_v36, %v1272_v41  ;;  %v3148_v41 = vld [vmem:[%s4043_s17 + $0x18] sm:$0xff] }
 0x871   : > { %v1274_v4 = vmul.f32 1.442695, %v1273_v42 }
 0x873   : > { %3239 = vpow2.f32 %v1274_v4 }
 0x879   : > { %v3240_v43 = vpop.eup %3239 }
 0x87a   : > { %v1276_v44 = vsel %vm939_vm10, %v3240_v43, 0.0 }
 0x87b   : > { %1277 = vadd.xlane.f32.xlu0 %v1276_v44 }
 0x8ee   : > { %v1278_v50 = vpop.xlane.xlu0 %1277 }
 0x8ef   : > { %3241 = vrcp.f32 %v1278_v50 }
 0x8f5   : > { %v3242_v51 = vpop.eup %3241 }
 0x8f6   : > { %v1280_v52 = vmul.f32 %v3242_v51, %v3240_v43  ;;  %v3147_v43 = vld [vmem:[%s4043_s17 + $0x10] sm:$0xff] }
 0x8f8   : > { %v1281_v53 = vpack.c.bf16 %v1280_v52, %v1280_v52  ;;  %v1492_v52 = vld [vmem:[%s4039_s13] sm:$0x1] }
 0x8fa   : > { %2788 = vmatmul.msk.bf16.vlgmr.msra.gmra.mxu2 %vm919_vm9, %v1281_v53 }
 0x8fb   : > { %1545 = vmatpush.bf16.msra.mxu2 %v3144_v40 }
 0x90a   : > { %2829 = vmatmul.msk.bf16.vlgmr.msrb.gmra.mxu2 %vm747_vm5, %v3552_v48 }
 0x97d   : > { %v1298_v58 = vpop.f32.mrf.mxu2 }
 0x97e   : > { %v1302_v59 = vpack.c.bf16 %v1298_v58, %v1298_v58 }
 0x980   : > { %2790 = vmatmul.msk.bf16.vlgmr.msra.gmra.mxu3 %vm919_vm9, %v1302_v59  ;;  %v3146_v59 = vld [vmem:[%s4043_s17 + $0x8] sm:$0xff] }
 0x981   : > { %1595 = vmatpush.bf16.msra.mxu3 %v3148_v41 }
 0x985   : > { %v1300_v60 = vpop.f32.mrf.mxu2  ;;  %1596 = vmatpush.bf16.msra.mxu3 %v3147_v43 }
 0x986   : > { %v3145_v60 = vld [vmem:[%s4043_s17] sm:$0xff] }
 0x989   : > { %1597 = vmatpush.bf16.msra.mxu3 %v3146_v59 }
 0x98d   : > { %v1411_v12 = vpop.f32.mrf.mxu2  ;;  %1598 = vmatpush.bf16.msra.mxu3 %v3145_v60 }
 0x98e   : > { %v1448_v13 = vpack.c.bf16 %v1411_v12, %v1411_v12 }
 0x990   : > { %2830 = vmatmul.msk.bf16.vlgmr.msrb.gmra.mxu3 %vm919_vm9, %v1415_v61  ;;  %v1453_v15 = vsel %vm956_vm11, %v1448_v13, 0  ;;  %v1523_v61 = vld [vmem:[%s4042_s16] sm:$0x1] }
 0x991   : > { %1462 = vmatpush.bf16.msra.mxu0 %v1453_v15 }
 0x995   : > { %v1413_v18 = vpop.f32.mrf.mxu2 }
 0x996   : > { %v3150_v18 = vld [vmem:[%s4081_s5 + $0x18] sm:$0xff] }
 0x997   : > { %1658 = vmatpush.bf16.msrb.mxu0 %v3150_v18 }
 0xa03   : > { %v1320_v2 = vpop.f32.mrf.mxu3 }
 0xa04   : > { %v1324_v5 = vadd.f32 %v1320_v2, %v1156_v1 }
 0xa0b   : > { %v1322_v6 = vpop.f32.mrf.mxu3 }
 0xa0c   : > { %v1562_v6 = vld [vmem:[%s4044_s18] sm:$0x1] }
 0xa13   : > { %v1432_v7 = vpop.f32.mrf.mxu3 }
 0xa14   : > { %v1433_v9 = vadd.f32 %v1432_v7, %v3602_v17 }
 0xa16   : > { %v1436_v10 = vsel %vm939_vm10, %v1433_v9, -inf }
 0xa17   : > { %1437 = vmax.xlane.f32.xlu1 %v1436_v10 }
 0xa1b   : > { %v1434_v11 = vpop.f32.mrf.mxu3 }
 0xa8a   : > { %v1438_v14 = vpop.xlane.xlu1 %1437 }
 0xa8b   : > { %v1439_v16 = vsub.f32 %v1433_v9, %v1438_v14 }
 0xa8d   : > { %v1440_v62 = vmul.f32 1.442695, %v1439_v16 }
 0xa8f   : > { %3243 = vpow2.f32 %v1440_v62 }
 0xa95   : > { %v3244_v19 = vpop.eup %3243 }
 0xa96   : > { %v1442_v20 = vsel %vm939_vm10, %v3244_v19, 0.0 }
 0xa97   : > { %1443 = vadd.xlane.f32.xlu2 %v1442_v20  ;;  %v3152_v20 = vld [vmem:[%s4083_s23 + $0x18] sm:$0xff] }
 0xa98   : > { %1692 = vmatpush.bf16.msrb.mxu1 %v3152_v20  ;;  %v3158_v20 = vld [vmem:[%s4037_s11 + $0x48] sm:$0xff] }
 0xb0a   : > { %v1444_v23 = vpop.xlane.xlu2 %1443 }
 0xb0b   : > { %3245 = vrcp.f32 %v1444_v23 }
 0xb11   : > { %v3246_v24 = vpop.eup %3245 }
 0xb12   : > { %v1446_v25 = vmul.f32 %v3246_v24, %v3244_v19  ;;  %v3149_v19 = vld [vmem:[%s4081_s5 + $0x10] sm:$0xff] }
 0xb13   : > { %1659 = vmatpush.bf16.msrb.mxu0 %v3149_v19 }
 0xb14   : > { %v1447_v26 = vpack.c.bf16 %v1446_v25, %v1446_v25 }
 0xb16   : > { %2831 = vmatmul.msk.bf16.vlgmr.msra.gmra.mxu0 %vm919_vm9, %v1447_v26 }
 0xb17   : > { %1814 = vmatpush.bf16.msra.mxu0 %v3158_v20 }
 0xb93   : > { %v1464_v27 = vpop.f32.mrf.mxu0 }
 0xb94   : > { %v1468_v28 = vpack.c.bf16 %v1464_v27, %v1464_v27 }
 0xb96   : > { %2833 = vmatmul.msk.bf16.vlgmr.msra.gmra.mxu1 %vm919_vm9, %v1468_v28 }
 0xb9b   : > { %v1466_v29 = vpop.f32.mrf.mxu0 }
 0xc13   : > { %v1486_v30 = vpop.f32.mrf.mxu1 }
 0xc14   : > { %v1490_v31 = vadd.f32 %v1486_v30, %v1324_v5  ;;  %v1605_v30 = vld [vmem:[%s4045_s19] sm:$0x1] }
 0xc16   : > { %v1491_v32 = vadd.f32 %v1490_v31, %v3575_v3  ;;  %v3143_v3 = vld [vmem:[%s4041_s15] sm:$0xff] }
 0xc17   : > { %1546 = vmatpush.bf16.msra.mxu2 %v3143_v3 }
 0xc18   : > { %v1494_v33 = vsel %vm696_vm0, %v1491_v32, 0.0 }
 0xc19   : > { %1495 = vadd.xlane.f32.xlu0 %v1494_v33  ;;  %v1606_v33 = vld [vmem:[%s4046_s20] sm:$0x1] }
 0xc1b   : > { %v1488_v34 = vpop.f32.mrf.mxu1 }
 0xc8c   : > { %v1496_v35 = vpop.xlane.xlu0 %1495 }
 0xc8d   : > { %v1497_v36 = vmul.f32 %v1496_v35, %v3507_v8 }
 0xc8f   : > { %v1498_v37 = vsub.f32 %v1491_v32, %v1497_v36 }
 0xc91   : > { %v1499_v38 = vmul.f32 %v1498_v37, %v1498_v37 }
 0xc93   : > { %v1500_v39 = vsel %vm696_vm0, %v1499_v38, 0.0 }
 0xc94   : > { %1501 = vadd.xlane.f32.xlu1 %v1500_v39 }
 0xd07   : > { %v1502_v42 = vpop.xlane.xlu1 %1501 }
 0xd08   : > { %v1503_v4 = vmul.f32 %v1502_v42, %v3507_v8 }
 0xd0a   : > { %v1504_v44 = vadd.f32 1e-06, %v1503_v4 }
 0xd0c   : > { %3247 = vrsqrt.f32 %v1504_v44  ;;  %vm1511_vm13 = vweird.f32 %v1504_v44 }
 0xd12   : > { %v3248_v45 = vpop.eup %3247 }
 0xd13   : > { %v1506_v46 = vmul.f32 %v3248_v45, %v1504_v44  ;;  %vm1512_vm12 = vweird.f32 %v3248_v45 }
 0xd14   : > { %vm1513_vm14 = vmor %vm1511_vm13, %vm1512_vm12  ;;  %vm2573_vm13 = vcmask 32768  }
 0xd15   : > { %v1507_v47 = vmul.f32 %v3248_v45, %v1506_v46 }
 0xd17   : > { %v1508_v49 = vmul.f32 0.5, %v1507_v47 }
 0xd19   : > { %v1509_v50 = vsub.f32 1.5, %v1508_v49  ;;  %v3156_v49 = vld [vmem:[%s4036_s10 + $0x48] sm:$0xff] }
 0xd1a   : > { %1784 = vmatpush.bf16.msrb.mxu3 %v3156_v49  ;;  %v2929_v49 = vld [vmem:[%s4038_s12 + $0x10] sm:$0xf] }
 0xd1b   : > { %v1510_v51 = vmul.f32 %v3248_v45, %v1509_v50  ;;  %v3155_v50 = vld [vmem:[%s4036_s10 + $0x40] sm:$0xff] }
 0xd1d   : > { %v1514_v53 = vsel %vm1513_vm14, %v3248_v45, %v1510_v51  ;;  %v3154_v51 = vld [vmem:[%s4035_s9 + $0x48] sm:$0xff] }
 0xd1e   : > { %v1515_v54 = vmul.f32 %v1514_v53, %v1498_v37  ;;  %v3151_v37 = vld [vmem:[%s4083_s23 + $0x10] sm:$0xff]  ;;  %1785 = vmatpush.bf16.msrb.mxu3 %v3155_v50  ;;  %1754 = vmatpush.bf16.msrb.mxu2 %v3154_v51  ;;  %v3153_v53 = vld [vmem:[%s4035_s9 + $0x40] sm:$0xff]  ;;  %v2046_v50 = vsel %vm956_vm11, %v2929_v49, 0 }
 0xd1f   : > { %1693 = vmatpush.bf16.msrb.mxu1 %v3151_v37 }
 0xd20   : > { %v1516_v56 = vmul.f32 %v1515_v54, %v1492_v52  ;;  %v3160_v52 = vld [vmem:[%s4035_s9 + $0x58] sm:$0xff]  ;;  %v3159_v54 = vld [vmem:[%s4035_s9 + $0x50] sm:$0xff] }
 0xd22   : > { %v1517_v57 = vadd.f32 %v1516_v56, %v1493_v55  ;;  %1755 = vmatpush.bf16.msrb.mxu2 %v3153_v53 }
 0xd24   : > { %v1518_v58 = vpack.c.bf16 %v1517_v57, %v1517_v57 }
 0xd26   : > { %2842 = vmatmul.msk.bf16.vlgmr.msra.gmra.mxu2 %vm747_vm5, %v1518_v58 }
 0xda9   : > { %v1548_v63 = vpop.f32.mrf.mxu2 }
 0xdaa   : > { %v1549_v0 = vadd.f32 %v1548_v63, %v1523_v61 }
 0xdac   : > { %v1552_v1 = vmax.f32 %v1549_v0, 0.0 }
 0xdae   : > { %v1553_v2 = vpack.c.bf16 %v1552_v1, %v1552_v1  ;;  %v2886_v1 = vld [vmem:[%s4087_s7 + $0x1] sm:$0x1] }
 0xdb0   : > { %2859 = vmatmul.msk.bf16.vlgmr.msra.gmra.mxu3 %vm1587_vm15, %v1553_v2 }
 0xdb1   : > { %v1550_v5 = vpop.f32.mrf.mxu2  ;;  %1900 = vmatpush.bf16.msra.mxu3 %v3160_v52 }
 0xdb5   : > { %1901 = vmatpush.bf16.msra.mxu3 %v3159_v54 }
 0xdc0   : > { %2913 = vmatmul.msk.bf16.vlgmr.msrb.gmra.mxu3 %vm747_vm5, %v3552_v48 }
 0xe33   : > { %v1600_v7 = vpop.f32.mrf.mxu3 }
 0xe34   : > { %v1601_v9 = vadd.f32 %v1600_v7, %v1562_v6  ;;  %v2887_v6 = vld [vmem:[%s4088_s8 + $0x1] sm:$0x1] }
 0xe36   : > { %v1604_v10 = vadd.f32 %v1601_v9, %v1517_v57 }
 0xe38   : > { %v1607_v11 = vsel %vm696_vm0, %v1604_v10, 0.0 }
 0xe39   : > { %1608 = vadd.xlane.f32.xlu2 %v1607_v11 }
 0xe3b   : > { %v1602_v12 = vpop.f32.mrf.mxu3 }
 0xe43   : > { %v1787_v11 = vpop.f32.mrf.mxu3 }
 0xe44   : > { %v1822_v12 = vpack.c.bf16 %v1787_v11, %v1787_v11 }
 0xeac   : > { %v1609_v13 = vpop.xlane.xlu2 %1608 }
 0xead   : > { %v1610_v14 = vmul.f32 %v1609_v13, %v3507_v8  ;;  %v1827_v13 = vsel %vm919_vm9, %v1822_v12, 0 }
 0xeae   : > { %1836 = vmatpush.bf16.xpose.msra.mxu1 %v1827_v13  ;;  %v3168_v13 = vld [vmem:[%s4036_s10 + $0x68] sm:$0xff] }
 0xeaf   : > { %v1611_v15 = vsub.f32 %v1604_v10, %v1610_v14  ;;  %v1789_v14 = vpop.f32.mrf.mxu3 }
 0xeb0   : > { %v3167_v14 = vld [vmem:[%s4036_s10 + $0x60] sm:$0xff] }
 0xeb1   : > { %v1612_v16 = vmul.f32 %v1611_v15, %v1611_v15 }
 0xeb3   : > { %v1613_v62 = vsel %vm696_vm0, %v1612_v16, 0.0 }
 0xeb4   : > { %1614 = vadd.xlane.f32.xlu0 %v1613_v62 }
 0xf27   : > { %v1615_v21 = vpop.xlane.xlu0 %1614 }
 0xf28   : > { %v1616_v22 = vmul.f32 %v1615_v21, %v3507_v8  ;;  %v3157_v21 = vld [vmem:[%s4037_s11 + $0x40] sm:$0xff] }
 0xf29   : > { %1815 = vmatpush.bf16.msra.mxu0 %v3157_v21  ;;  %v3170_v21 = vld [vmem:[%s4037_s11 + $0x68] sm:$0xff] }
 0xf2a   : > { %v1617_v23 = vadd.f32 1e-06, %v1616_v22 }
 0xf2c   : > { %3249 = vrsqrt.f32 %v1617_v23  ;;  %vm1624_vm2 = vweird.f32 %v1617_v23 }
 0xf32   : > { %v3250_v24 = vpop.eup %3249 }
 0xf33   : > { %v1619_v25 = vmul.f32 %v3250_v24, %v1617_v23  ;;  %vm1625_vm1 = vweird.f32 %v3250_v24 }
 0xf34   : > { %vm1626_vm3 = vmor %vm1624_vm2, %vm1625_vm1 }
 0xf35   : > { %v1620_v26 = vmul.f32 %v3250_v24, %v1619_v25 }
 0xf37   : > { %v1621_v27 = vmul.f32 0.5, %v1620_v26  ;;  %v3162_v26 = vld [vmem:[%s4036_s10 + $0x58] sm:$0xff] }
 0xf39   : > { %v1622_v28 = vsub.f32 1.5, %v1621_v27  ;;  %v3161_v27 = vld [vmem:[%s4036_s10 + $0x50] sm:$0xff] }
 0xf3b   : > { %v1623_v29 = vmul.f32 %v3250_v24, %v1622_v28 }
 0xf3d   : > { %v1627_v31 = vsel %vm1626_vm3, %v3250_v24, %v1623_v29 }
 0xf3e   : > { %v1628_v32 = vmul.f32 %v1627_v31, %v1611_v15 }
 0xf40   : > { %v1629_v34 = vmul.f32 %v1628_v32, %v1605_v30 }
 0xf42   : > { %v1630_v35 = vadd.f32 %v1629_v34, %v1606_v33 }
 0xf44   : > { %v1631_v36 = vpack.c.bf16 %v1630_v35, %v1630_v35 }
 0xf46   : > { %2872 = vmatmul.msk.bf16.vlgmr.msrb.gmra.mxu0 %vm747_vm5, %v1631_v36 }
 0xf47   : > { %1930 = vmatpush.bf16.msrb.mxu0 %v3162_v26  ;;  %v3171_v26 = vld [vmem:[%s4035_s9 + $0x70] sm:$0xff] }
 0xf4b   : > { %1931 = vmatpush.bf16.msrb.mxu0 %v3161_v27 }
 0xf56   : > { %2926 = vmatmul.msk.bf16.vlgmr.msra.gmra.mxu0 %vm747_vm5, %v3552_v48 }
 0xf66   : > { %2955 = vmatmul.msk.bf16.vlgmr.msrb.gmra.mxu0 %vm747_vm5, %v3552_v48 }
 0xfc3   : > { %v1661_v38 = vpop.f32.mrf.mxu0 }
 0xfc4   : > { %v1665_v39 = vpack.c.bf16 %v1661_v38, %v1661_v38 }
 0xfc6   : > { %2885 = vmatmul.msk.bf16.vlgmr.msrb.gmra.mxu1 %vm747_vm5, %v1665_v39 }
 0xfcb   : > { %v1663_v40 = vpop.f32.mrf.mxu0 }
 0xfd3   : > { %v1817_v28 = vpop.f32.mrf.mxu0 }
 0xfd4   : > { %v1854_v29 = vpack.c.bf16 %v1817_v28, %v1817_v28 }
 0xfd6   : > { %v1859_v30 = vsel %vm956_vm11, %v1854_v29, 0 }
 0xfd7   : > { %1868 = vmatpush.bf16.msra.mxu2 %v1859_v30 }
 0xfdb   : > { %v1819_v31 = vpop.f32.mrf.mxu0 }
 0xfe3   : > { %v1933_v37 = vpop.f32.mrf.mxu0 }
 0xfe4   : > { %v1968_v38 = vpack.c.bf16 %v1933_v37, %v1933_v37 }
 0xfe6   : > { %v1973_v39 = vsel %vm919_vm9, %v1968_v38, 0 }
 0xfeb   : > { %v1935_v40 = vpop.f32.mrf.mxu0 }
0x1043   : > { %v1695_v3 = vpop.f32.mrf.mxu1 }
0x1044   : > { %v1696_v41 = vadd.f32 %v1695_v3, %v1630_v35 }
0x1046   : > { %v1703_v42 = vsel %vm696_vm0, %v1696_v41, 0.0 }
0x1047   : > { %1704 = vadd.xlane.f32.xlu1 %v1703_v42 }
0x104b   : > { %v1697_v4 = vpop.f32.mrf.mxu1 }
0x104c   : > { %v3166_v4 = vld [vmem:[%s4035_s9 + $0x68] sm:$0xff] }
0x10ba   : > { %v1705_v43 = vpop.xlane.xlu1 %1704 }
0x10bb   : > { %v1706_v44 = vmul.f32 %v1705_v43, %v3507_v8 }
0x10bd   : > { %v1707_v45 = vsub.f32 %v1696_v41, %v1706_v44  ;;  %v3164_v44 = vld [vmem:[%s4037_s11 + $0x58] sm:$0xff] }
0x10be   : > { %1960 = vmatpush.bf16.msrb.mxu1 %v3164_v44 }
0x10bf   : > { %v1708_v46 = vmul.f32 %v1707_v45, %v1707_v45 }
0x10c1   : > { %v1709_v47 = vsel %vm696_vm0, %v1708_v46, 0.0  ;;  %v3163_v46 = vld [vmem:[%s4037_s11 + $0x50] sm:$0xff] }
0x10c2   : > { %1710 = vadd.xlane.f32.xlu2 %v1709_v47  ;;  %1961 = vmatpush.bf16.msrb.mxu1 %v3163_v46  ;;  %v3174_v46 = vld [vmem:[%s4036_s10 + $0x78] sm:$0xff] }
0x1135   : > { %v1711_v55 = vpop.xlane.xlu2 %1710 }
0x1136   : > { %v1712_v56 = vmul.f32 %v1711_v55, %v3507_v8 }
0x1138   : > { %v1713_v57 = vadd.f32 1e-06, %v1712_v56 }
0x113a   : > { %3251 = vrsqrt.f32 %v1713_v57  ;;  %vm1720_vm6 = vweird.f32 %v1713_v57 }
0x1140   : > { %v3252_v58 = vpop.eup %3251 }
0x1141   : > { %v1715_v59 = vmul.f32 %v3252_v58, %v1713_v57  ;;  %vm1721_vm4 = vweird.f32 %v3252_v58 }
0x1142   : > { %vm1722_vm7 = vmor %vm1720_vm6, %vm1721_vm4 }
0x1143   : > { %v1716_v60 = vmul.f32 %v3252_v58, %v1715_v59 }
0x1145   : > { %v1717_v61 = vmul.f32 0.5, %v1716_v60 }
0x1147   : > { %v1718_v63 = vsub.f32 1.5, %v1717_v61 }
0x1149   : > { %v1719_v0 = vmul.f32 %v3252_v58, %v1718_v63 }
0x114b   : > { %v1723_v2 = vsel %vm1722_vm7, %v3252_v58, %v1719_v0 }
0x114c   : > { %v1724_v5 = vmul.f32 %v1723_v2, %v1707_v45  ;;  %v3165_v45 = vld [vmem:[%s4035_s9 + $0x60] sm:$0xff] }
0x114e   : > { %v1725_v7 = vmul.f32 %v2886_v1, %v1724_v5 }
0x1150   : > { %v3808_v9 = vadd.f32 %v2887_v6, %v1725_v7 }
0x1152   : > { %v3812_v10 = vpack.c.bf16 %v3808_v9, %v3808_v9 }
0x1154   : > { %2900 = vmatmul.msk.bf16.vlgmr.msrb.gmra.mxu2 %vm747_vm5, %v3812_v10  ;;  %2942 = vmatmul.msk.bf16.vlgmr.msra.gmra.mxu3 %vm747_vm5, %v3812_v10 }
0x1155   : > { %1982 = vmatpush.bf16.xpose.msrb.mxu2 %v1973_v39 }
0x11d7   : > { %v1757_v15 = vpop.f32.mrf.mxu2  ;;  %v1903_v16 = vpop.f32.mrf.mxu3 }
0x11d8   : > { %v1821_v62 = vpack.c.bf16 %v1757_v15, %v1757_v15  ;;  %v1967_v47 = vpack.c.bf16 %v1903_v16, %v1903_v16 }
0x11da   : > { %2927 = vmatmul.msk.bf16.vlgmr.msra.gmra.mxu1 %vm919_vm9, %v1821_v62 }
0x11db   : > { %2055 = vmatpush.bf16.msra.mxu1 %v2046_v50  ;;  %v3273_v50 = vld [vmem:[%s3549_s30] sm:$0xf] }
0x11df   : > { %v1759_v18 = vpop.f32.mrf.mxu2  ;;  %v1905_v19 = vpop.f32.mrf.mxu3 }
0x11e0   : > { %v2971_v19 = vld [vmem:[%s4038_s12 + $0x14] sm:$0xf] }
0x11e1   : > { %v2027_v20 = vsel %vm956_vm11, %v2971_v19, 0 }
0x11e2   : > { %2036 = vmatpush.bf16.msra.mxu0 %v2027_v20 }
0x11e6   : > { %2144 = vmatpush.bf16.msrb.mxu0 %v3170_v21 }
0x11ea   : > { %2968 = vmatmul.msk.bf16.vlgmr.msrb.gmra.mxu1 %vm747_vm5, %v3552_v48 }
0x1257   : > { %v1838_v22 = vpop.f32.mrf.mxu1 }
0x1258   : > { %v1839_v23 = vadd.f32 %v1838_v22, %v3602_v17  ;;  %v3169_v22 = vld [vmem:[%s4037_s11 + $0x60] sm:$0xff] }
0x1259   : > { %2145 = vmatpush.bf16.msrb.mxu0 %v3169_v22 }
0x125a   : > { %v1842_v24 = vsel %vm939_vm10, %v1839_v23, -inf }
0x125b   : > { %1843 = vmax.xlane.f32.xlu0 %v1842_v24  ;;  %v3172_v24 = vld [vmem:[%s4035_s9 + $0x78] sm:$0xff] }
0x125f   : > { %v1840_v25 = vpop.f32.mrf.mxu1 }
0x1267   : > { %v1963_v54 = vpop.f32.mrf.mxu1 }
0x1268   : > { %v2000_v55 = vpack.c.bf16 %v1963_v54, %v1963_v54 }
0x126a   : > { %v2005_v56 = vsel %vm956_vm11, %v2000_v55, 0 }
0x126b   : > { %2014 = vmatpush.bf16.msrb.mxu3 %v2005_v56 }
0x126f   : > { %v1965_v58 = vpop.f32.mrf.mxu1  ;;  %2114 = vmatpush.bf16.msra.mxu3 %v3168_v13  ;;  %v3274_v13 = vld [vmem:[%s3599_s6] sm:$0x1]  ;;  %s684_s6 = scalar_lea.vmem [#allocation2], %s683_s29 }
0x1270   : > { %s2586_s22 = sshll.u32 %s684_s6, 4  ;;  %s2587_s22 = int_to_ptr.vmem [resolvable:$true] %s2586_s22 }
0x1273   : > { %2115 = vmatpush.bf16.msra.mxu3 %v3167_v14 }
0x12ce   : > { %v1844_v32 = vpop.xlane.xlu0 %1843 }
0x12cf   : > { %v1845_v33 = vsub.f32 %v1839_v23, %v1844_v32 }
0x12d1   : > { %v1846_v34 = vmul.f32 1.442695, %v1845_v33 }
0x12d3   : > { %3253 = vpow2.f32 %v1846_v34 }
0x12d9   : > { %v3254_v35 = vpop.eup %3253 }
0x12da   : > { %v1848_v36 = vsel %vm939_vm10, %v3254_v35, 0.0 }
0x12db   : > { %1849 = vadd.xlane.f32.xlu1 %v1848_v36 }
0x134e   : > { %v1850_v3 = vpop.xlane.xlu1 %1849 }
0x134f   : > { %3255 = vrcp.f32 %v1850_v3 }
0x1355   : > { %v3256_v41 = vpop.eup %3255 }
0x1356   : > { %v1852_v42 = vmul.f32 %v3256_v41, %v3254_v35 }
0x1358   : > { %v1853_v43 = vpack.c.bf16 %v1852_v42, %v1852_v42 }
0x135a   : > { %2928 = vmatmul.msk.bf16.vlgmr.msra.gmra.mxu2 %vm919_vm9, %v1853_v43 }
0x135b   : > { %2084 = vmatpush.bf16.msra.mxu2 %v3166_v4 }
0x135f   : > { %2085 = vmatpush.bf16.msra.mxu2 %v3165_v45 }
0x136a   : > { %2969 = vmatmul.msk.bf16.vlgmr.msrb.gmra.mxu2 %vm919_vm9, %v1967_v47  ;;  %v3015_v47 = vld [vmem:[%s4038_s12 + $0x18] sm:$0xf] }
0x136b   : > { %v2211_v49 = vsel %vm956_vm11, %v3015_v47, 0 }
0x137a   : > { %2986 = vmatmul.msk.bf16.vlgmr.msra.gmra.mxu2 %vm747_vm5, %v3812_v10 }
0x13dd   : > { %v1870_v51 = vpop.f32.mrf.mxu2 }
0x13de   : > { %v1874_v52 = vpack.c.bf16 %v1870_v51, %v1870_v51 }
0x13e0   : > { %2973 = vmatmul.msk.bf16.vlgmr.msra.gmra.mxu1 %vm919_vm9, %v1874_v52 }
0x13e5   : > { %v1872_v53 = vpop.f32.mrf.mxu2 }
0x13ed   : > { %v1984_v57 = vpop.f32.mrf.mxu2 }
0x13ee   : > { %v1985_v59 = vadd.f32 %v1984_v57, %v3602_v17 }
0x13f0   : > { %v1988_v60 = vsel %vm939_vm10, %v1985_v59, -inf }
0x13f1   : > { %1989 = vmax.xlane.f32.xlu2 %v1988_v60 }
0x13f5   : > { %v1986_v61 = vpop.f32.mrf.mxu2 }
0x13fd   : > { %v2087_v63 = vpop.f32.mrf.mxu2 }
0x13fe   : > { %v2151_v32 = vpack.c.bf16 %v2087_v63, %v2087_v63 }
0x1405   : > { %v2089_v0 = vpop.f32.mrf.mxu2 }
0x1406   : > { %v3176_v0 = vld [vmem:[%s4037_s11 + $0x78] sm:$0xff] }
0x145d   : > { %v3867_v1 = vpop.f32.mrf.mxu1 }
0x1464   : > { %v1990_v2 = vpop.xlane.xlu2 %1989 }
0x1465   : > { %v1991_v5 = vsub.f32 %v1985_v59, %v1990_v2  ;;  %v2059_v6 = vpop.f32.mrf.mxu1  ;;  %v3175_v2 = vld [vmem:[%s4037_s11 + $0x70] sm:$0xff] }
0x1467   : > { %v1992_v7 = vmul.f32 1.442695, %v1991_v5 }
0x1469   : > { %3257 = vpow2.f32 %v1992_v7 }
0x146f   : > { %v3258_v11 = vpop.eup %3257 }
0x1470   : > { %v1994_v12 = vsel %vm939_vm10, %v3258_v11, 0.0 }
0x1471   : > { %1995 = vadd.xlane.f32.xlu0 %v1994_v12 }
0x14e4   : > { %v1996_v15 = vpop.xlane.xlu0 %1995 }
0x14e5   : > { %3259 = vrcp.f32 %v1996_v15 }
0x14eb   : > { %v3260_v16 = vpop.eup %3259 }
0x14ec   : > { %v1998_v62 = vmul.f32 %v3260_v16, %v3258_v11 }
0x14ee   : > { %v1999_v18 = vpack.c.bf16 %v1998_v62, %v1998_v62 }
0x14f0   : > { %2970 = vmatmul.msk.bf16.vlgmr.msrb.gmra.mxu3 %vm919_vm9, %v1999_v18 }
0x14f1   : > { %2220 = vmatpush.bf16.msrb.mxu3 %v2211_v49 }
0x1500   : > { %2999 = vmatmul.msk.bf16.vlgmr.msra.gmra.mxu3 %vm747_vm5, %v3552_v48 }
0x1573   : > { %v2016_v23 = vpop.f32.mrf.mxu3 }
0x1574   : > { %v2020_v25 = vpack.c.bf16 %v2016_v23, %v2016_v23 }
0x1576   : > { %2972 = vmatmul.msk.bf16.vlgmr.msra.gmra.mxu0 %vm919_vm9, %v2020_v25  ;;  %v3058_v25 = vld [vmem:[%s4038_s12 + $0x1c] sm:$0xf] }
0x1577   : > { %2250 = vmatpush.bf16.msra.mxu0 %v3172_v24 }
0x157b   : > { %v2018_v27 = vpop.f32.mrf.mxu3  ;;  %2251 = vmatpush.bf16.msra.mxu0 %v3171_v26  ;;  %v2377_v26 = vsel %vm956_vm11, %v3058_v25, 0 }
0x1583   : > { %v2117_v28 = vpop.f32.mrf.mxu3 }
0x1584   : > { %v2152_v29 = vpack.c.bf16 %v2117_v28, %v2117_v28 }
0x1586   : > { %v2157_v30 = vsel %vm919_vm9, %v2152_v29, 0  ;;  %3012 = vmatmul.msk.bf16.vlgmr.msrb.gmra.mxu0 %vm747_vm5, %v3552_v48 }
0x1587   : > { %2166 = vmatpush.bf16.xpose.msrb.mxu1 %v2157_v30 }
0x158b   : > { %v2119_v31 = vpop.f32.mrf.mxu3 }
0x158e   : > { %3013 = vmatmul.msk.bf16.vlgmr.msrb.gmra.mxu1 %vm919_vm9, %v2151_v32 }
0x158f   : > { %2280 = vmatpush.bf16.msra.mxu1 %v3174_v46 }
0x1596   : > { %3029 = vmatmul.msk.bf16.vlgmr.msra.gmra.mxu0 %vm747_vm5, %v3812_v10 }
0x15f3   : > { %v2038_v33 = vpop.f32.mrf.mxu0 }
0x15f4   : > { %v2058_v5 = vadd.f32 %v3867_v1, %v2038_v33 }
0x15fb   : > { %v2040_v34 = vpop.f32.mrf.mxu0 }
0x1603   : > { %v2147_v35 = vpop.f32.mrf.mxu0 }
0x1604   : > { %v2184_v36 = vpack.c.bf16 %v2147_v35, %v2147_v35 }
0x1606   : > { %v2189_v37 = vsel %vm956_vm11, %v2184_v36, 0 }
0x1607   : > { %2198 = vmatpush.bf16.msrb.mxu2 %v2189_v37 }
0x160b   : > { %v2149_v38 = vpop.f32.mrf.mxu0  ;;  %v2168_v39 = vpop.f32.mrf.mxu1  ;;  %2310 = vmatpush.bf16.msra.mxu2 %v3176_v0 }
0x160c   : > { %v2169_v40 = vadd.f32 %v2168_v39, %v3602_v17  ;;  %v3173_v17 = vld [vmem:[%s4036_s10 + $0x70] sm:$0xff] }
0x160d   : > { %2281 = vmatpush.bf16.msra.mxu1 %v3173_v17 }
0x160e   : > { %v2172_v48 = vsel %vm939_vm10, %v2169_v40, -inf }
0x160f   : > { %2173 = vmax.xlane.f32.xlu1 %v2172_v48  ;;  %2311 = vmatpush.bf16.msra.mxu2 %v3175_v2 }
0x1610   : > { %3042 = vmatmul.msk.bf16.vlgmr.msra.gmra.mxu1 %vm747_vm5, %v3273_v50 }
0x1611   : > { %2386 = vmatpush.bf16.msrb.mxu1 %v2377_v26 }
0x1613   : > { %v2170_v3 = vpop.f32.mrf.mxu1  ;;  %v2253_v41 = vpop.f32.mrf.mxu0 }
0x1614   : > { %v2317_v63 = vpack.c.bf16 %v2253_v41, %v2253_v41 }
0x161b   : > { %v2255_v42 = vpop.f32.mrf.mxu0 }
0x161c   : > { %v3178_v42 = vld [vmem:[%s4041_s15 + $0x18] sm:$0xff] }
0x1682   : > { %v2174_v4 = vpop.xlane.xlu1 %2173 }
0x1683   : > { %v2175_v10 = vsub.f32 %v2169_v40, %v2174_v4  ;;  %v3182_v4 = vld [vmem:[%s4043_s17 + $0x38] sm:$0xff] }
0x1685   : > { %v2176_v43 = vmul.f32 1.442695, %v2175_v10 }
0x1687   : > { %3261 = vpow2.f32 %v2176_v43 }
0x168d   : > { %v3262_v44 = vpop.eup %3261  ;;  %v2283_v55 = vpop.f32.mrf.mxu1 }
0x168e   : > { %v2178_v45 = vsel %vm939_vm10, %v3262_v44, 0.0  ;;  %v2318_v56 = vpack.c.bf16 %v2283_v55, %v2283_v55  ;;  %v3061_v55 = vld [vmem:[%s4040_s14 + $0x1] sm:$0x1] }
0x168f   : > { %2179 = vadd.xlane.f32.xlu2 %v2178_v45 }
0x1690   : > { %v2323_v57 = vsel %vm919_vm9, %v2318_v56, 0 }
0x1691   : > { %2332 = vmatpush.bf16.xpose.msra.mxu3 %v2323_v57 }
0x1695   : > { %v2285_v58 = vpop.f32.mrf.mxu1 }
0x1702   : > { %v2180_v51 = vpop.xlane.xlu2 %2179 }
0x1703   : > { %3263 = vrcp.f32 %v2180_v51 }
0x1709   : > { %v3264_v52 = vpop.eup %3263 }
0x170a   : > { %v2182_v53 = vmul.f32 %v3264_v52, %v3262_v44  ;;  %v3181_v44 = vld [vmem:[%s4043_s17 + $0x30] sm:$0xff]  ;;  %v3060_v52 = vld [vmem:[%s4039_s13 + $0x1] sm:$0x1] }
0x170c   : > { %v2183_v54 = vpack.c.bf16 %v2182_v53, %v2182_v53 }
0x170e   : > { %3014 = vmatmul.msk.bf16.vlgmr.msrb.gmra.mxu2 %vm919_vm9, %v2183_v54 }
0x170f   : > { %2451 = vmatpush.bf16.msrb.mxu2 %v3178_v42 }
0x171e   : > { %3055 = vmatmul.msk.bf16.vlgmr.msra.gmra.mxu2 %vm747_vm5, %v3273_v50 }
0x1791   : > { %v2200_v59 = vpop.f32.mrf.mxu2 }
0x1792   : > { %v2204_v60 = vpack.c.bf16 %v2200_v59, %v2200_v59  ;;  %v3180_v59 = vld [vmem:[%s4043_s17 + $0x28] sm:$0xff] }
0x1794   : > { %3016 = vmatmul.msk.bf16.vlgmr.msrb.gmra.mxu3 %vm919_vm9, %v2204_v60  ;;  %v3179_v60 = vld [vmem:[%s4043_s17 + $0x20] sm:$0xff] }
0x1795   : > { %2502 = vmatpush.bf16.msrb.mxu3 %v3182_v4 }
0x1799   : > { %v2202_v61 = vpop.f32.mrf.mxu2  ;;  %2503 = vmatpush.bf16.msrb.mxu3 %v3181_v44 }
0x179a   : > { %v3066_v61 = vld [vmem:[%s4042_s16 + $0x1] sm:$0x1] }
0x179d   : > { %2504 = vmatpush.bf16.msrb.mxu3 %v3180_v59 }
0x17a1   : > { %v2313_v62 = vpop.f32.mrf.mxu2  ;;  %2505 = vmatpush.bf16.msrb.mxu3 %v3179_v60 }
0x17a2   : > { %v2350_v18 = vpack.c.bf16 %v2313_v62, %v2313_v62 }
0x17a4   : > { %3056 = vmatmul.msk.bf16.vlgmr.msra.gmra.mxu3 %vm919_vm9, %v2317_v63  ;;  %v2355_v20 = vsel %vm956_vm11, %v2350_v18, 0 }
0x17a5   : > { %2364 = vmatpush.bf16.msrb.mxu0 %v2355_v20 }
0x17a9   : > { %v2315_v22 = vpop.f32.mrf.mxu2 }
0x1817   : > { %v2222_v6 = vpop.f32.mrf.mxu3 }
0x1818   : > { %v2226_v7 = vadd.f32 %v2222_v6, %v2058_v5 }
0x181f   : > { %v2224_v11 = vpop.f32.mrf.mxu3 }
0x1827   : > { %v2334_v12 = vpop.f32.mrf.mxu3 }
0x1828   : > { %v2335_v14 = vadd.f32 %v3274_v13, %v2334_v12 }
0x182a   : > { %v2338_v15 = vsel %vm939_vm10, %v2335_v14, -inf }
0x182b   : > { %2339 = vmax.xlane.f32.xlu0 %v2338_v15 }
0x182f   : > { %v2336_v16 = vpop.f32.mrf.mxu3 }
0x189e   : > { %v2340_v19 = vpop.xlane.xlu0 %2339 }
0x189f   : > { %v2341_v21 = vsub.f32 %v2335_v14, %v2340_v19 }
0x18a1   : > { %v2342_v1 = vmul.f32 1.442695, %v2341_v21  ;;  %v3184_v21 = vld [vmem:[%s4047_s21 + $0x8] sm:$0xff] }
0x18a2   : > { %2566 = vmatpush.bf16.msra.mxu0 %v3184_v21 }
0x18a3   : > { %3265 = vpow2.f32 %v2342_v1  ;;  %v3183_v1 = vld [vmem:[%s4047_s21] sm:$0xff] }
0x18a6   : > { %2567 = vmatpush.bf16.msra.mxu0 %v3183_v1 }
0x18a9   : > { %v3266_v23 = vpop.eup %3265 }
0x18aa   : > { %v2344_v24 = vsel %vm939_vm10, %v3266_v23, 0.0 }
0x18ab   : > { %2345 = vadd.xlane.f32.xlu1 %v2344_v24 }
0x191e   : > { %v2346_v27 = vpop.xlane.xlu1 %2345 }
0x191f   : > { %3267 = vrcp.f32 %v2346_v27 }
0x1925   : > { %v3268_v28 = vpop.eup %3267 }
0x1926   : > { %v2348_v29 = vmul.f32 %v3268_v28, %v3266_v23 }
0x1928   : > { %v2349_v30 = vpack.c.bf16 %v2348_v29, %v2348_v29 }
0x192a   : > { %3057 = vmatmul.msk.bf16.vlgmr.msrb.gmra.mxu0 %vm919_vm9, %v2349_v30 }
0x19a7   : > { %v2366_v31 = vpop.f32.mrf.mxu0 }
0x19a8   : > { %v2370_v32 = vpack.c.bf16 %v2366_v31, %v2366_v31  ;;  %v3102_v31 = vld [vmem:[%s4045_s19 + $0x1] sm:$0x1] }
0x19aa   : > { %3059 = vmatmul.msk.bf16.vlgmr.msrb.gmra.mxu1 %vm919_vm9, %v2370_v32 }
0x19af   : > { %v2368_v33 = vpop.f32.mrf.mxu0 }
0x1a27   : > { %v2388_v34 = vpop.f32.mrf.mxu1 }
0x1a28   : > { %v2392_v35 = vadd.f32 %v2388_v34, %v2226_v7  ;;  %v3084_v7 = vld [vmem:[%s4044_s18 + $0x1] sm:$0x1] }
0x1a2a   : > { %v2393_v36 = vadd.f32 %v2392_v35, %v3808_v9  ;;  %v3177_v9 = vld [vmem:[%s4041_s15 + $0x10] sm:$0xff] }
0x1a2b   : > { %2452 = vmatpush.bf16.msrb.mxu2 %v3177_v9 }
0x1a2c   : > { %v2398_v37 = vsel %vm696_vm0, %v2393_v36, 0.0 }
0x1a2d   : > { %2399 = vadd.xlane.f32.xlu2 %v2398_v37 }
0x1a2f   : > { %v2390_v38 = vpop.f32.mrf.mxu1 }
0x1aa0   : > { %v2400_v39 = vpop.xlane.xlu2 %2399 }
0x1aa1   : > { %v2401_v40 = vmul.f32 %v2400_v39, %v3507_v8 }
0x1aa3   : > { %v2402_v48 = vsub.f32 %v2393_v36, %v2401_v40 }
0x1aa5   : > { %v2403_v3 = vmul.f32 %v2402_v48, %v2402_v48 }
0x1aa7   : > { %v2404_v41 = vsel %vm696_vm0, %v2403_v3, 0.0 }
0x1aa8   : > { %2405 = vadd.xlane.f32.xlu0 %v2404_v41 }
0x1b1b   : > { %v2406_v10 = vpop.xlane.xlu0 %2405 }
0x1b1c   : > { %v2407_v43 = vmul.f32 %v2406_v10, %v3507_v8 }
0x1b1e   : > { %v2408_v45 = vadd.f32 1e-06, %v2407_v43 }
0x1b20   : > { %3269 = vrsqrt.f32 %v2408_v45  ;;  %vm2415_vm9 = vweird.f32 %v2408_v45 }
0x1b26   : > { %v3270_v46 = vpop.eup %3269 }
0x1b27   : > { %v2410_v17 = vmul.f32 %v3270_v46, %v2408_v45  ;;  %vm2416_vm8 = vweird.f32 %v3270_v46 }
0x1b28   : > { %vm2417_vm10 = vmor %vm2415_vm9, %vm2416_vm8 }
0x1b29   : > { %v2411_v47 = vmul.f32 %v3270_v46, %v2410_v17 }
0x1b2b   : > { %v2412_v49 = vmul.f32 0.5, %v2411_v47 }
0x1b2d   : > { %v2413_v50 = vsub.f32 1.5, %v2412_v49 }
0x1b2f   : > { %v2414_v51 = vmul.f32 %v3270_v46, %v2413_v50 }
0x1b31   : > { %v2418_v53 = vsel %vm2417_vm10, %v3270_v46, %v2414_v51 }
0x1b32   : > { %v2419_v54 = vmul.f32 %v2418_v53, %v2402_v48 }
0x1b34   : > { %v2420_v56 = vmul.f32 %v3060_v52, %v2419_v54 }
0x1b36   : > { %v2421_v57 = vadd.f32 %v3061_v55, %v2420_v56 }
0x1b38   : > { %v2422_v58 = vpack.c.bf16 %v2421_v57, %v2421_v57 }
0x1b3a   : > { %3075 = vmatmul.msk.bf16.vlgmr.msrb.gmra.mxu2 %vm747_vm5, %v2422_v58 }
0x1bbd   : > { %v2454_v63 = vpop.f32.mrf.mxu2 }
0x1bbe   : > { %v2455_v0 = vadd.f32 %v3066_v61, %v2454_v63 }
0x1bc0   : > { %v2458_v2 = vmax.f32 %v2455_v0, 0.0 }
0x1bc2   : > { %v2459_v5 = vpack.c.bf16 %v2458_v2, %v2458_v2 }
0x1bc4   : > { %3101 = vmatmul.msk.bf16.vlgmr.msrb.gmra.mxu3 %vm1587_vm15, %v2459_v5 }
0x1bc5   : > { %v2456_v6 = vpop.f32.mrf.mxu2 }
0x1c47   : > { %v2507_v11 = vpop.f32.mrf.mxu3 }
0x1c48   : > { %v2508_v12 = vadd.f32 %v3084_v7, %v2507_v11 }
0x1c4a   : > { %v2511_v13 = vadd.f32 %v2508_v12, %v2421_v57 }
0x1c4c   : > { %v2516_v14 = vsel %vm696_vm0, %v2511_v13, 0.0 }
0x1c4d   : > { %2517 = vadd.xlane.f32.xlu1 %v2516_v14 }
0x1c4f   : > { %v2509_v15 = vpop.f32.mrf.mxu3 }
0x1cc0   : > { %v2518_v16 = vpop.xlane.xlu1 %2517 }
0x1cc1   : > { %v2519_v62 = vmul.f32 %v2518_v16, %v3507_v8 }
0x1cc3   : > { %v2520_v18 = vsub.f32 %v2511_v13, %v2519_v62 }
0x1cc5   : > { %v2521_v19 = vmul.f32 %v2520_v18, %v2520_v18 }
0x1cc7   : > { %v2522_v20 = vsel %vm696_vm0, %v2521_v19, 0.0 }
0x1cc8   : > { %2523 = vadd.xlane.f32.xlu2 %v2522_v20 }
0x1d3b   : > { %v2524_v22 = vpop.xlane.xlu2 %2523 }
0x1d3c   : > { %v2525_v23 = vmul.f32 %v2524_v22, %v3507_v8  ;;  %v3103_v8 = vld [vmem:[%s4046_s20 + $0x1] sm:$0x1] }
0x1d3e   : > { %v2526_v24 = vadd.f32 1e-06, %v2525_v23 }
0x1d40   : > { %3271 = vrsqrt.f32 %v2526_v24  ;;  %vm2533_vm11 = vweird.f32 %v2526_v24 }
0x1d46   : > { %v3272_v25 = vpop.eup %3271 }
0x1d47   : > { %v2528_v26 = vmul.f32 %v3272_v25, %v2526_v24  ;;  %vm2534_vm0 = vweird.f32 %v3272_v25 }
0x1d48   : > { %vm2535_vm12 = vmor %vm2533_vm11, %vm2534_vm0 }
0x1d49   : > { %v2529_v27 = vmul.f32 %v3272_v25, %v2528_v26 }
0x1d4b   : > { %v2530_v28 = vmul.f32 0.5, %v2529_v27 }
0x1d4d   : > { %v2531_v29 = vsub.f32 1.5, %v2530_v28 }
0x1d4f   : > { %v2532_v30 = vmul.f32 %v3272_v25, %v2531_v29 }
0x1d51   : > { %v2536_v32 = vsel %vm2535_vm12, %v3272_v25, %v2532_v30 }
0x1d52   : > { %v2537_v33 = vmul.f32 %v2536_v32, %v2520_v18 }
0x1d54   : > { %v2538_v34 = vmul.f32 %v3102_v31, %v2537_v33 }
0x1d56   : > { %v2539_v35 = vadd.f32 %v3103_v8, %v2538_v34 }
0x1d58   : > { %v2540_v36 = vpack.c.bf16 %v2539_v35, %v2539_v35 }
0x1d5a   : > { %3112 = vmatmul.msk.bf16.vlgmr.msra.gmra.mxu0 %vm747_vm5, %v2540_v36 }
0x1dd7   : > { %v2569_v37 = vpop.f32.mrf.mxu0 }
0x1dd8   : > { %2574 = vst.msk [vmem:[%s684_s6] sm:$0x1] %vm2573_vm13, %v2569_v37 }
0x1dd9   : > { %3302 = shalt.err (!%p3299_p3)
}
0x1dda   : > { %3185 = dma.vmem_to_hbm [thread:$0]  (%p3493_p5), %s2587_s22, 16, %s2589_s2, %s2576_s27  }
0x1ddf   : > { %v2571_v38 = vpop.f32.mrf.mxu0 }
0x1de0 PF: > { %s4092_s29 = sld [smem:[#allocation7_spill]] }
0x1de1   : > { %s4093_s26 = sld [smem:[#allocation5_spill]] }
0x1de6   : > { %p3191_p4 = scmp.ge.s32.totalorder %s4092_s29, 2 }
0x1de7   : > { %s2600_s8 = sand.u32 1, %s4093_s26  }
0x1de8   : > { %p3188_p7 = pnand %p3191_p4, %p3497_p6  ;;  %s2601_s7 = scalar_lea.sflag [#allocation3], %s2600_s8 }
0x1dea   : > { %p3189_p8 = pneg %p3188_p7 }
0x1dec   : > { %3320 = dma.done.wait (%p3189_p8), %s2601_s7, 16  }
0x1ded   : > { %3322 = vsyncadd (%p3189_p8), %s2601_s7, 4294967280  ;;  %s4095_s30 = sld [smem:[#allocation8_spill]]  ;;  %s4098_s3 = smov %s3329_s28 }
0x1dee   : > { %s4096_s5 = sld [smem:[#allocation6_spill]] }
0x1def   : > { %s4097_s29 = sld [smem:[#allocation9_spill]] }
0x1df3   : > { %p32_p9 = scmp.ge.s32.totalorder %s4095_s30, 4  }
0x1df4   : > { %s4099_s28 = smov %s4096_s5 }
0x1df5   :  { %34 = sbr.rel (!%p32_p9) target bundleno = 14 (0xe), region = 186 }
0x1dfa   :  { %2606 = vsyncpa [#allocation3], 1 }
0x1dfb   :  { %2608 = vsyncpa [#allocation3 + $0x1], 1 }

</bundles_post_ra>
